<compile_context>
chip_gen: v7x
topology: tpu7x:2x2x1
jax: 0.10.0
libtpu: 0.0.40
codegen_flags: <defaults>
</compile_context>

<pallas_src>
import jax
import jax.numpy as jnp
from jax.experimental import pallas as pl
from jax.experimental.pallas import tpu as pltpu

LANE = 128


def _round_up(n, m):
    return (n + m - 1) // m * m


# ----------------------------------------------------------------------------
# In-register im2col for a 3x3 / pad=1 / stride=1 conv.
# ----------------------------------------------------------------------------
def _im2col_3x3(t):
    """t: (H, W, C) -> (H*W, 9*C) zero-padded patches, taps ordered kh*3+kw."""
    H, W, C = t.shape
    zrow = jnp.zeros((1, W, C), t.dtype)
    zcol = jnp.zeros((H + 2, 1, C), t.dtype)
    tp = jnp.concatenate([zrow, t, zrow], axis=0)          # (H+2, W,   C)
    tp = jnp.concatenate([zcol, tp, zcol], axis=1)         # (H+2, W+2, C)
    taps = [jax.lax.slice(tp, (kh, kw, 0), (kh + H, kw + W, C))
            for kh in range(3) for kw in range(3)]
    return jnp.concatenate(taps, axis=-1).reshape(H * W, 9 * C)


# ----------------------------------------------------------------------------
# Pallas kernel: full residual block for one image (grid iterates over batch).
# ----------------------------------------------------------------------------
def _residual_block_kernel(x_ref, w1_ref, b1_ref, w2_ref, b2_ref, out_ref):
    _, H, W, C = x_ref.shape
    x = x_ref[0]                                           # (H, W, C) bf16

    # conv1 (3x3, pad 1) + folded BN + ReLU : one K=9*C MXU matmul
    p1 = _im2col_3x3(x)                                    # (H*W, 9C) bf16
    t1 = jnp.maximum(
        jnp.dot(p1, w1_ref[...], preferred_element_type=jnp.float32)
        + b1_ref[...], 0.0)                                # (H*W, C) f32

    # conv2 (3x3, pad 1) + folded BN (no ReLU before the residual add)
    p2 = _im2col_3x3(t1.reshape(H, W, C).astype(jnp.bfloat16))
    t2 = (jnp.dot(p2, w2_ref[...], preferred_element_type=jnp.float32)
          + b2_ref[...])                                   # (H*W, C) f32

    # identity residual add (f32) + final ReLU; lane-dense store (C % 128 == 0)
    out = jnp.maximum(t2 + x.astype(jnp.float32).reshape(H * W, C), 0.0)
    out_ref[0] = out.reshape(H, W, C).astype(out_ref.dtype)


# ----------------------------------------------------------------------------
# BN folding (inference semantics) + pallas_call wrapper.
# ----------------------------------------------------------------------------
def _fold_bn(w_oihw, gamma, beta, mean, var, eps=1e-5):
    """Fold eval-mode BatchNorm into a bias-free conv.

    w_oihw: (Cout, Cin, kh, kw).  Returns (kh, kw, Cin, Cout) weight, (Cout,) bias.
    """
    scale = gamma / jnp.sqrt(var + eps)                    # (Cout,)
    w = jnp.transpose(w_oihw, (2, 3, 1, 0)) * scale        # (kh, kw, Cin, Cout)
    b = beta - mean * scale
    return w.astype(jnp.float32), b.astype(jnp.float32)


def residual_block_pallas(x_nchw, params, stride=1):
    # TODO(synk): stride>1 / downsample path not implemented in the kernel.
    assert stride == 1, "only the stride=1 / identity-residual path is implemented"
    N, Cin, H, W = x_nchw.shape
    Cf = params["w1"].shape[0]                             # n_filters
    assert Cin == Cf, "identity residual requires in_channels == n_filters"

    w1, b1 = _fold_bn(params["w1"], *params["bn1"])        # (3,3,Cin,Cf), (Cf,)
    w2, b2 = _fold_bn(params["w2"], *params["bn2"])        # (3,3,Cf, Cf), (Cf,)

    # Pad channels to a multiple of 128 -> lane-dense activations / weights /
    # output stores.  Padded channels carry zero weights & zero bias so they
    # stay exactly zero and are sliced off afterwards.
    Cp = _round_up(Cf, LANE)
    pc = Cp - Cf
    w1p = jnp.pad(w1, ((0, 0), (0, 0), (0, pc), (0, pc))).reshape(9 * Cp, Cp).astype(jnp.bfloat16)
    w2p = jnp.pad(w2, ((0, 0), (0, 0), (0, pc), (0, pc))).reshape(9 * Cp, Cp).astype(jnp.bfloat16)
    b1p = jnp.pad(b1, (0, pc)).reshape(1, Cp).astype(jnp.float32)
    b2p = jnp.pad(b2, (0, pc)).reshape(1, Cp).astype(jnp.float32)

    # NCHW -> NHWC, pad channels, bf16 (halves activation DMA; residual is
    # re-expanded to f32 inside the kernel).  If the surrounding model can
    # produce/consume NHWC these two transposes disappear entirely.
    x_nhwc = jnp.pad(jnp.transpose(x_nchw, (0, 2, 3, 1)),
                     ((0, 0), (0, 0), (0, 0), (0, pc))).astype(jnp.bfloat16)

    flops = 2 * N * H * W * (9 * Cp * Cp) * 2              # two 3x3 convs
    bytes_accessed = (x_nhwc.size * 2 + (w1p.size + w2p.size) * 2
                      + (b1p.size + b2p.size) * 4 + N * H * W * Cp * 4)

    out_nhwc = pl.pallas_call(
        _residual_block_kernel,
        out_shape=jax.ShapeDtypeStruct((N, H, W, Cp), jnp.float32),
        grid_spec=pltpu.PrefetchScalarGridSpec(
            num_scalar_prefetch=0,
            grid=(N,),
            in_specs=[
                pl.BlockSpec((1, H, W, Cp), lambda n: (n, 0, 0, 0)),
                pl.BlockSpec((9 * Cp, Cp), lambda n: (0, 0)),
                pl.BlockSpec((1, Cp), lambda n: (0, 0)),
                pl.BlockSpec((9 * Cp, Cp), lambda n: (0, 0)),
                pl.BlockSpec((1, Cp), lambda n: (0, 0)),
            ],
            out_specs=pl.BlockSpec((1, H, W, Cp), lambda n: (n, 0, 0, 0)),
        ),
        compiler_params=pltpu.CompilerParams(
            dimension_semantics=("parallel",),
            vmem_limit_bytes=32 * 1024 * 1024),
        cost_estimate=pl.CostEstimate(flops=flops, transcendentals=0,
                                      bytes_accessed=bytes_accessed),
    )(x_nhwc, w1p, b1p, w2p, b2p)

    return jnp.transpose(out_nhwc[..., :Cf], (0, 3, 1, 2))  # back to NCHW


# ----------------------------------------------------------------------------
# Pure-JAX reference (NCHW, mirrors the PyTorch module in eval mode)
# ----------------------------------------------------------------------------
def residual_block_reference(x, p, stride=1, eps=1e-5):
    def conv(x, w, s, pad):
        return jax.lax.conv_general_dilated(
            x, w, (s, s), pad, dimension_numbers=("NCHW", "OIHW", "NCHW"))

    def bn(x, stats):
        g, b, m, v = stats
        inv = (g / jnp.sqrt(v + eps))[None, :, None, None]
        return (x - m[None, :, None, None]) * inv + b[None, :, None, None]

    t = jax.nn.relu(bn(conv(x, p["w1"], stride, [(1, 1), (1, 1)]), p["bn1"]))
    t = bn(conv(t, p["w2"], 1, [(1, 1), (1, 1)]), p["bn2"])
    return jax.nn.relu(t + x)                              # identity residual


# ----------------------------------------------------------------------------
if __name__ == "__main__":
    N, C, H, W = 2, 4, 16, 16
    stride = 1

    key = jax.random.PRNGKey(0)
    ks = jax.random.split(key, 8)

    def bn_params(k, c):
        k0, k1, k2, k3 = jax.random.split(k, 4)
        gamma = jax.random.uniform(k0, (c,), jnp.float32, 0.5, 1.5)
        beta = 0.1 * jax.random.normal(k1, (c,), jnp.float32)
        mean = 0.1 * jax.random.normal(k2, (c,), jnp.float32)
        var = jax.random.uniform(k3, (c,), jnp.float32, 0.5, 1.5)
        return (gamma, beta, mean, var)

    params = {
        "w1": 0.1 * jax.random.normal(ks[0], (C, C, 3, 3), jnp.float32),
        "w2": 0.1 * jax.random.normal(ks[1], (C, C, 3, 3), jnp.float32),
        "bn1": bn_params(ks[2], C),
        "bn2": bn_params(ks[3], C),
    }

    x = jax.random.normal(ks[4], (N, C, H, W), jnp.float32)

    out = jax.block_until_ready(residual_block_pallas(x, params, stride=stride))
    ref = jax.block_until_ready(residual_block_reference(x, params, stride=stride))

    assert out.shape == (N, C, H, W), out.shape
    # Tolerance loosened vs a pure-f32 kernel because MXU inputs are bf16
    # (accumulation / bias / residual stay f32); structural bugs would show
    # up as O(1) errors, far above this bound.
    assert jnp.allclose(out, ref, rtol=2e-2, atol=1e-1), (
        float(jnp.max(jnp.abs(out - ref))))

    print("KERNEL_OK")
</pallas_src>

<mosaic_0001>
module attributes {stable_mosaic.version = 11 : i64} {
  func.func @_residual_block_kernel(%arg0: i32, %arg1: memref<1x16x16x128xbf16, #tpu.memory_space<vmem>>, %arg2: memref<1152x128xbf16, #tpu.memory_space<vmem>>, %arg3: memref<1x128xf32, #tpu.memory_space<vmem>>, %arg4: memref<1152x128xbf16, #tpu.memory_space<vmem>>, %arg5: memref<1x128xf32, #tpu.memory_space<vmem>>, %arg6: memref<1x16x16x128xf32, #tpu.memory_space<vmem>>) attributes {dimension_semantics = [#tpu.dimension_semantics<parallel>], iteration_bounds = array<i64: 2>, scalar_prefetch = 0 : i64, scratch_operands = 0 : i64, tpu.core_type = #tpu.core_type<tc>, window_params = [{transform_indices = @transform_0, window_bounds = array<i64: 1, 16, 16, 128>}, {pipeline_mode = #tpu.pipeline_mode<synchronous>, transform_indices = @transform_1, window_bounds = array<i64: 1152, 128>}, {pipeline_mode = #tpu.pipeline_mode<synchronous>, transform_indices = @transform_2, window_bounds = array<i64: 1, 128>}, {pipeline_mode = #tpu.pipeline_mode<synchronous>, transform_indices = @transform_3, window_bounds = array<i64: 1152, 128>}, {pipeline_mode = #tpu.pipeline_mode<synchronous>, transform_indices = @transform_4, window_bounds = array<i64: 1, 128>}, {transform_indices = @transform_5, window_bounds = array<i64: 1, 16, 16, 128>}]} {
    %c0 = arith.constant 0 : index
    %c0_0 = arith.constant 0 : index
    %c0_1 = arith.constant 0 : index
    %c0_2 = arith.constant 0 : index
    %0 = vector.load %arg1[%c0, %c0_0, %c0_1, %c0_2] : memref<1x16x16x128xbf16, #tpu.memory_space<vmem>>, vector<1x16x16x128xbf16>
    %1 = vector.shape_cast %0 : vector<1x16x16x128xbf16> to vector<16x16x128xbf16>
    %cst = arith.constant 0.000000e+00 : bf16
    %2 = vector.broadcast %cst : bf16 to vector<1x16x128xbf16>
    %cst_3 = arith.constant 0.000000e+00 : bf16
    %3 = vector.broadcast %cst_3 : bf16 to vector<18x1x128xbf16>
    %4 = tpu.concatenate %2, %1, %2 in 0 : vector<1x16x128xbf16>, vector<16x16x128xbf16>, vector<1x16x128xbf16> -> vector<18x16x128xbf16>
    %5 = tpu.concatenate %3, %4, %3 in 1 : vector<18x1x128xbf16>, vector<18x16x128xbf16>, vector<18x1x128xbf16> -> vector<18x18x128xbf16>
    %6 = vector.extract_strided_slice %5 {offsets = [0, 0, 0], sizes = [16, 16, 128], strides = [1, 1, 1]} : vector<18x18x128xbf16> to vector<16x16x128xbf16>
    %7 = vector.extract_strided_slice %5 {offsets = [0, 1, 0], sizes = [16, 16, 128], strides = [1, 1, 1]} : vector<18x18x128xbf16> to vector<16x16x128xbf16>
    %8 = vector.extract_strided_slice %5 {offsets = [0, 2, 0], sizes = [16, 16, 128], strides = [1, 1, 1]} : vector<18x18x128xbf16> to vector<16x16x128xbf16>
    %9 = vector.extract_strided_slice %5 {offsets = [1, 0, 0], sizes = [16, 16, 128], strides = [1, 1, 1]} : vector<18x18x128xbf16> to vector<16x16x128xbf16>
    %10 = vector.extract_strided_slice %5 {offsets = [1, 1, 0], sizes = [16, 16, 128], strides = [1, 1, 1]} : vector<18x18x128xbf16> to vector<16x16x128xbf16>
    %11 = vector.extract_strided_slice %5 {offsets = [1, 2, 0], sizes = [16, 16, 128], strides = [1, 1, 1]} : vector<18x18x128xbf16> to vector<16x16x128xbf16>
    %12 = vector.extract_strided_slice %5 {offsets = [2, 0, 0], sizes = [16, 16, 128], strides = [1, 1, 1]} : vector<18x18x128xbf16> to vector<16x16x128xbf16>
    %13 = vector.extract_strided_slice %5 {offsets = [2, 1, 0], sizes = [16, 16, 128], strides = [1, 1, 1]} : vector<18x18x128xbf16> to vector<16x16x128xbf16>
    %14 = vector.extract_strided_slice %5 {offsets = [2, 2, 0], sizes = [16, 16, 128], strides = [1, 1, 1]} : vector<18x18x128xbf16> to vector<16x16x128xbf16>
    %15 = tpu.concatenate %6, %7, %8, %9, %10, %11, %12, %13, %14 in 2 : vector<16x16x128xbf16>, vector<16x16x128xbf16>, vector<16x16x128xbf16>, vector<16x16x128xbf16>, vector<16x16x128xbf16>, vector<16x16x128xbf16>, vector<16x16x128xbf16>, vector<16x16x128xbf16>, vector<16x16x128xbf16> -> vector<16x16x1152xbf16>
    %16 = vector.shape_cast %15 : vector<16x16x1152xbf16> to vector<256x1152xbf16>
    %c0_4 = arith.constant 0 : index
    %c0_5 = arith.constant 0 : index
    %17 = vector.load %arg2[%c0_4, %c0_5] : memref<1152x128xbf16, #tpu.memory_space<vmem>>, vector<1152x128xbf16>
    %cst_6 = arith.constant dense<0.000000e+00> : vector<256x128xf32>
    %18 = tpu.matmul %16, %17, %cst_6 {dimension_numbers = #tpu.dot_dimension_numbers<[1], [0], [0], [1], [0, 0, 1, 1], [], []>} : vector<256x1152xbf16>, vector<1152x128xbf16>, vector<256x128xf32> -> vector<256x128xf32>
    %c0_7 = arith.constant 0 : index
    %c0_8 = arith.constant 0 : index
    %19 = vector.load %arg3[%c0_7, %c0_8] : memref<1x128xf32, #tpu.memory_space<vmem>>, vector<1x128xf32>
    %20 = vector.broadcast %19 : vector<1x128xf32> to vector<256x128xf32>
    %21 = arith.addf %18, %20 : vector<256x128xf32>
    %cst_9 = arith.constant 0.000000e+00 : f32
    %22 = vector.broadcast %cst_9 : f32 to vector<256x128xf32>
    %23 = arith.maximumf %21, %22 : vector<256x128xf32>
    %24 = vector.shape_cast %23 : vector<256x128xf32> to vector<16x16x128xf32>
    %25 = arith.truncf %24 : vector<16x16x128xf32> to vector<16x16x128xbf16>
    %cst_10 = arith.constant 0.000000e+00 : bf16
    %26 = vector.broadcast %cst_10 : bf16 to vector<1x16x128xbf16>
    %cst_11 = arith.constant 0.000000e+00 : bf16
    %27 = vector.broadcast %cst_11 : bf16 to vector<18x1x128xbf16>
    %28 = tpu.concatenate %26, %25, %26 in 0 : vector<1x16x128xbf16>, vector<16x16x128xbf16>, vector<1x16x128xbf16> -> vector<18x16x128xbf16>
    %29 = tpu.concatenate %27, %28, %27 in 1 : vector<18x1x128xbf16>, vector<18x16x128xbf16>, vector<18x1x128xbf16> -> vector<18x18x128xbf16>
    %30 = vector.extract_strided_slice %29 {offsets = [0, 0, 0], sizes = [16, 16, 128], strides = [1, 1, 1]} : vector<18x18x128xbf16> to vector<16x16x128xbf16>
    %31 = vector.extract_strided_slice %29 {offsets = [0, 1, 0], sizes = [16, 16, 128], strides = [1, 1, 1]} : vector<18x18x128xbf16> to vector<16x16x128xbf16>
    %32 = vector.extract_strided_slice %29 {offsets = [0, 2, 0], sizes = [16, 16, 128], strides = [1, 1, 1]} : vector<18x18x128xbf16> to vector<16x16x128xbf16>
    %33 = vector.extract_strided_slice %29 {offsets = [1, 0, 0], sizes = [16, 16, 128], strides = [1, 1, 1]} : vector<18x18x128xbf16> to vector<16x16x128xbf16>
    %34 = vector.extract_strided_slice %29 {offsets = [1, 1, 0], sizes = [16, 16, 128], strides = [1, 1, 1]} : vector<18x18x128xbf16> to vector<16x16x128xbf16>
    %35 = vector.extract_strided_slice %29 {offsets = [1, 2, 0], sizes = [16, 16, 128], strides = [1, 1, 1]} : vector<18x18x128xbf16> to vector<16x16x128xbf16>
    %36 = vector.extract_strided_slice %29 {offsets = [2, 0, 0], sizes = [16, 16, 128], strides = [1, 1, 1]} : vector<18x18x128xbf16> to vector<16x16x128xbf16>
    %37 = vector.extract_strided_slice %29 {offsets = [2, 1, 0], sizes = [16, 16, 128], strides = [1, 1, 1]} : vector<18x18x128xbf16> to vector<16x16x128xbf16>
    %38 = vector.extract_strided_slice %29 {offsets = [2, 2, 0], sizes = [16, 16, 128], strides = [1, 1, 1]} : vector<18x18x128xbf16> to vector<16x16x128xbf16>
    %39 = tpu.concatenate %30, %31, %32, %33, %34, %35, %36, %37, %38 in 2 : vector<16x16x128xbf16>, vector<16x16x128xbf16>, vector<16x16x128xbf16>, vector<16x16x128xbf16>, vector<16x16x128xbf16>, vector<16x16x128xbf16>, vector<16x16x128xbf16>, vector<16x16x128xbf16>, vector<16x16x128xbf16> -> vector<16x16x1152xbf16>
    %40 = vector.shape_cast %39 : vector<16x16x1152xbf16> to vector<256x1152xbf16>
    %c0_12 = arith.constant 0 : index
    %c0_13 = arith.constant 0 : index
    %41 = vector.load %arg4[%c0_12, %c0_13] : memref<1152x128xbf16, #tpu.memory_space<vmem>>, vector<1152x128xbf16>
    %cst_14 = arith.constant dense<0.000000e+00> : vector<256x128xf32>
    %42 = tpu.matmul %40, %41, %cst_14 {dimension_numbers = #tpu.dot_dimension_numbers<[1], [0], [0], [1], [0, 0, 1, 1], [], []>} : vector<256x1152xbf16>, vector<1152x128xbf16>, vector<256x128xf32> -> vector<256x128xf32>
    %c0_15 = arith.constant 0 : index
    %c0_16 = arith.constant 0 : index
    %43 = vector.load %arg5[%c0_15, %c0_16] : memref<1x128xf32, #tpu.memory_space<vmem>>, vector<1x128xf32>
    %44 = vector.broadcast %43 : vector<1x128xf32> to vector<256x128xf32>
    %45 = arith.addf %42, %44 : vector<256x128xf32>
    %46 = arith.extf %1 : vector<16x16x128xbf16> to vector<16x16x128xf32>
    %47 = vector.shape_cast %46 : vector<16x16x128xf32> to vector<256x128xf32>
    %48 = arith.addf %45, %47 : vector<256x128xf32>
    %cst_17 = arith.constant 0.000000e+00 : f32
    %49 = vector.broadcast %cst_17 : f32 to vector<256x128xf32>
    %50 = arith.maximumf %48, %49 : vector<256x128xf32>
    %51 = vector.shape_cast %50 : vector<256x128xf32> to vector<16x16x128xf32>
    %c0_18 = arith.constant 0 : index
    %c0_19 = arith.constant 0 : index
    %c0_20 = arith.constant 0 : index
    %c0_21 = arith.constant 0 : index
    %52 = vector.load %arg6[%c0_18, %c0_19, %c0_20, %c0_21] : memref<1x16x16x128xf32, #tpu.memory_space<vmem>>, vector<1x16x16x128xf32>
    %53 = vector.shape_cast %52 : vector<1x16x16x128xf32> to vector<16x16x128xf32>
    %54 = vector.shape_cast %51 : vector<16x16x128xf32> to vector<1x16x16x128xf32>
    tpu.vector_store %arg6[%c0_18, %c0_19, %c0_20, %c0_21], %54 {strides = array<i32>} : memref<1x16x16x128xf32, #tpu.memory_space<vmem>>, vector<1x16x16x128xf32>,
    return
  }
  func.func @transform_0(%arg0: i32) -> (i32, i32, i32, i32) {
    %c0_i32 = arith.constant 0 : i32
    %c0_i32_0 = arith.constant 0 : i32
    %c0_i32_1 = arith.constant 0 : i32
    %c0_i32_2 = arith.constant 0 : i32
    return %arg0, %c0_i32, %c0_i32_0, %c0_i32_1 : i32, i32, i32, i32
  }
  func.func @transform_1(%arg0: i32) -> (i32, i32) {
    %c0_i32 = arith.constant 0 : i32
    %c0_i32_0 = arith.constant 0 : i32
    %c0_i32_1 = arith.constant 0 : i32
    return %c0_i32, %c0_i32_0 : i32, i32
  }
  func.func @transform_2(%arg0: i32) -> (i32, i32) {
    %c0_i32 = arith.constant 0 : i32
    %c0_i32_0 = arith.constant 0 : i32
    %c0_i32_1 = arith.constant 0 : i32
    return %c0_i32, %c0_i32_0 : i32, i32
  }
  func.func @transform_3(%arg0: i32) -> (i32, i32) {
    %c0_i32 = arith.constant 0 : i32
    %c0_i32_0 = arith.constant 0 : i32
    %c0_i32_1 = arith.constant 0 : i32
    return %c0_i32, %c0_i32_0 : i32, i32
  }
  func.func @transform_4(%arg0: i32) -> (i32, i32) {
    %c0_i32 = arith.constant 0 : i32
    %c0_i32_0 = arith.constant 0 : i32
    %c0_i32_1 = arith.constant 0 : i32
    return %c0_i32, %c0_i32_0 : i32, i32
  }
  func.func @transform_5(%arg0: i32) -> (i32, i32, i32, i32) {
    %c0_i32 = arith.constant 0 : i32
    %c0_i32_0 = arith.constant 0 : i32
    %c0_i32_1 = arith.constant 0 : i32
    %c0_i32_2 = arith.constant 0 : i32
    return %arg0, %c0_i32, %c0_i32_0, %c0_i32_1 : i32, i32, i32, i32
  }
}

</mosaic_0001>

<bundles_post_ra>
// kernel: tpu_custom_call.1
= control target key start
LH: loop header
LB: loop body
LE: loop exit
PB: predicated region body
PF: predicated region fallthrough
CT: control target
= control target key end

     0   :  { %10 = vsyncpa [#allocation3], 0  ;;  %s7873_s0 = inlined_call_operand.hbm [shape: bf16[2,16,16,128], index: 0, kind: input, shape index: {}]   ;;  %s7874_s1 = inlined_call_operand.hbm [shape: bf16[1152,128], index: 1, kind: input, shape index: {}]   ;;  %s7875_s2 = inlined_call_operand.vmem [shape: f32[1,128], index: 2, kind: input, shape index: {}]   ;;  %s7876_s3 = inlined_call_operand.hbm [shape: bf16[1152,128], index: 3, kind: input, shape index: {}]   ;;  %s7877_s4 = inlined_call_operand.vmem [shape: f32[1,128], index: 4, kind: input, shape index: {}]   ;;  %s7878_s5 = inlined_call_operand.hbm [shape: f32[2,16,16,128], index: 5, kind: output, shape index: {}]  }
   0x1   :  { %12 = vsyncpa [#allocation3 + $0x1], 0 }
   0x2   :  { %13 = vsyncpa [#allocation6], 0 }
   0x3   :  { %14 = vsyncpa [#allocation4], 0 }
   0x4   :  { %16 = vsyncpa [#allocation4 + $0x1], 0  ;;  %s6121_s18 = smov 0   ;;  %s6123_s19 = smov 0  }
   0x5   :  { %s6125_s20 = smov 0   ;;  %s6127_s21 = smov 0  }
   0x6 LB: > { %s6142_s22 = sadd.s32 4294967295, %s6080_s21   ;;  %s4438_s23 = sadd.s32 4294967294, %s6080_s21   ;;  %s6080_s21 = sphi %s6127_s21, %s7950_s21   ;;  %s6076_s20 = sphi %s6125_s20, %s7949_s20   ;;  %s6072_s19 = sphi %s6123_s19, %s7948_s19   ;;  %s6068_s18 = sphi %s6121_s18, %s7947_s18  }
   0x7   : > { %p42_p0 = scmp.ne.s32.totalorder %s6072_s19, %s6068_s18  ;;  %p7879_p1 = scmp.eq.s32.totalorder %s6142_s22, 0 }
   0x8   : > { %p156_p3 = scmp.eq.s32.totalorder %s4438_s23, 1  ;;  %p4439_p5 = scmp.ge.s32.totalorder %s6080_s21, 1 }
   0x9   : > { %p6151_p4 = por %p7879_p1, %p42_p0  ;;  %p163_p7 = scmp.lt.s32.totalorder %s6080_s21, 3 }
   0xa   : > { %p6156_p6 = por %p156_p3, %p42_p0  ;;  %s6082_s27 = smov [#allocation5]  }
   0xb   : > { %s7902_s24 = scalar_select %p6151_p4, 1, 0 }
   0xc   : > { %s7903_s25 = scalar_select %p6156_p6, 1, 0 }
   0xd   : > { %p6161_p8 = pnand %p4439_p5, %p163_p7  ;;  %s175_s28 = sshll.u32 %s6082_s27, 4  ;;  %s6165_s28 = int_to_ptr.vmem [resolvable:$true] %s175_s28 }
   0xe   : > { %s6083_s30 = smov [#allocation7]   ;;  %s5924_s9 = scalar_lea.hbm %s7874_s1, 9216 }
   0xf   : > { %p5672_p9 = pneg %p6161_p8  ;;  %s191_s6 = sshll.u32 %s6083_s30, 4  ;;  %s6176_s6 = int_to_ptr.vmem [resolvable:$true] %s191_s6 }
  0x10   : > { %p5925_p12 = scmp.ne.s32.totalorder %s7874_s1, %s5924_s9  ;;  %p5931_p5 = scmp.lt.u32.totalorder %s5924_s9, %s7874_s1 }
  0x11   : > { %p6172_p11 = pnand %p5672_p9, %p7879_p1 }
  0x13   : > { %p5926_p13 = pneg %p6172_p11 }
  0x15   : > { %p5927_p0 = pnand %p5926_p13, %p5925_p12 }
  0x17   : > { %p5928_p3 = pneg %p5927_p0 }
  0x19   : > { %p5933_p7 = pnand %p5931_p5, %p5928_p3 }
  0x1b   : > { %5936 = shalt.err (!%p5933_p7)
}
  0x1c   : > { %s5937_s14 = scalar_lea.vmem %s6165_s28, 9216  ;;  %p5945_p2 = scmp.lt.s32.totalorder %s6165_s28, %s6165_s28 }
  0x1d   : > { %p5938_p9 = scmp.ne.s32.totalorder %s6165_s28, %s5937_s14  ;;  %p5946_p12 = scmp.lt.s32.totalorder %s5937_s14, %s5937_s14 }
  0x1f   : > { %p5940_p10 = pnand %p5938_p9, %p5926_p13  ;;  %p5947_p0 = por %p5946_p12, %p5945_p2 }
  0x21   : > { %p5941_p1 = pneg %p5940_p10 }
  0x23   : > { %p5948_p6 = pnand %p5947_p0, %p5941_p1 }
  0x25   : > { %5951 = shalt.err (!%p5948_p6)
}
  0x26   : > { %s6084_s15 = smov 64   ;;  %s6085_s16 = smov 4  }
  0x27   : > { %5675 = dma.hbm_to_vmem [thread:$0]  (!%p6172_p11), %s7874_s1, 9216, %s6165_s28, [#allocation6], %s6084_s15, %s6084_s15, %s6085_s16  }
  0x28   : > { %s5952_s7 = scalar_lea.hbm %s7876_s3, 9216 }
  0x29   : > { %p5953_p1 = scmp.ne.s32.totalorder %s7876_s3, %s5952_s7  ;;  %p5959_p10 = scmp.lt.u32.totalorder %s5952_s7, %s7876_s3 }
  0x2b   : > { %p5955_p2 = pnand %p5953_p1, %p5926_p13 }
  0x2d   : > { %p5956_p6 = pneg %p5955_p2 }
  0x2f   : > { %p5961_p3 = pnand %p5959_p10, %p5956_p6 }
  0x31   : > { %5964 = shalt.err (!%p5961_p3)
}
  0x32   : > { %s5965_s28 = scalar_lea.vmem %s6176_s6, 9216  ;;  %p5973_p12 = scmp.lt.s32.totalorder %s6176_s6, %s6176_s6 }
  0x33   : > { %p5966_p5 = scmp.ne.s32.totalorder %s6176_s6, %s5965_s28  ;;  %p5974_p0 = scmp.lt.s32.totalorder %s5965_s28, %s5965_s28 }
  0x35   : > { %p5968_p7 = pnand %p5966_p5, %p5926_p13  ;;  %p5975_p1 = por %p5974_p0, %p5973_p12 }
  0x37   : > { %p5969_p9 = pneg %p5968_p7 }
  0x39   : > { %p5976_p2 = pnand %p5975_p1, %p5969_p9 }
  0x3b   : > { %5979 = shalt.err (!%p5976_p2)
}
  0x3c   : > { %5678 = dma.hbm_to_vmem [thread:$0]  (!%p6172_p11), %s7876_s3, 9216, %s6176_s6, [#allocation6], %s6084_s15, %s6084_s15, %s6085_s16  }
  0x3d   : > { %s6237_s29 = sadd.s32 1, %s6080_s21   ;;  %s29_s14 = sadd.s32 1, %s6076_s20 }
  0x3e   : > { %s26_s17 = ssub.s32 %s6080_s21, %s6237_s29  ;;  %p36_p13 = scmp.ne.s32.totalorder %s6076_s20, %s6072_s19 }
  0x3f   : > { %p27_p6 = scmp.eq.s32.totalorder %s26_s17, 0  ;;  %p37_p10 = scmp.eq.s32.totalorder %s6080_s21, 0 }
  0x40   : > { %p7906_p3 = scmp.eq.s32.totalorder %s6142_s22, 1  ;;  %p5689_p7 = scmp.lt.s32.totalorder %s6080_s21, 2 }
  0x41   : > { %s6253_s27 = scalar_select %p27_p6, %s6076_s20, %s29_s14  }
  0x42   : > { %p6247_p5 = por %p7906_p3, %p36_p13  ;;  %p38_p9 = por %p37_p10, %p36_p13 }
  0x43   : > { %s208_s30 = sand.u32 1, %s6076_s20   ;;  %s4618_s6 = sshll.u32 %s6080_s21, 11 }
  0x44   : > { %s7907_s23 = scalar_select %p6247_p5, 1, 0 }
  0x45   : > { %s4443_s7 = sshll.u32 %s208_s30, 7  ;;  %s6260_s10 = scalar_lea.hbm %s7873_s0, %s4618_s6 }
  0x46   : > { %s212_s11 = scalar_lea.vmem [#allocation2], %s4443_s7  ;;  %p6264_p11 = pnand %p5689_p7, %p38_p9 }
  0x47   : > { %s219_s28 = sshll.u32 %s212_s11, 4  ;;  %s6268_s13 = scalar_lea.sflag [#allocation3], %s208_s30  ;;  %s6262_s28 = int_to_ptr.vmem [resolvable:$true] %s219_s28 }
  0x48   : > { %s5980_s14 = scalar_lea.hbm %s6260_s10, 2048  ;;  %p5982_p0 = pneg %p6264_p11 }
  0x49   : > { %p5981_p12 = scmp.ne.s32.totalorder %s6260_s10, %s5980_s14  ;;  %s5985_s6 = scalar_lea.hbm %s7873_s0, 4096 }
  0x4a   : > { %p5986_p13 = scmp.lt.u32.totalorder %s6260_s10, %s7873_s0  ;;  %p5987_p6 = scmp.lt.u32.totalorder %s5985_s6, %s5980_s14 }
  0x4b   : > { %p5983_p1 = pnand %p5982_p0, %p5981_p12  ;;  %p5989_p3 = scmp.lt.u32.totalorder %s5980_s14, %s6260_s10 }
  0x4c   : > { %p5988_p10 = por %p5987_p6, %p5986_p13 }
  0x4d   : > { %p5984_p2 = pneg %p5983_p1 }
  0x4e   : > { %p5990_p7 = por %p5989_p3, %p5988_p10 }
  0x50   : > { %p5991_p9 = pnand %p5990_p7, %p5984_p2 }
  0x52   : > { %5994 = shalt.err (!%p5991_p9)
}
  0x53   : > { %s5995_s30 = scalar_lea.vmem %s6262_s28, 2048  ;;  %s6086_s11 = smov [#allocation2]  }
  0x54   : > { %p5996_p12 = scmp.ne.s32.totalorder %s6262_s28, %s5995_s30  ;;  %s6000_s17 = sshll.u32 %s6086_s11, 4  ;;  %s6001_s17 = int_to_ptr.vmem [resolvable:$false] %s6000_s17 }
  0x55   : > { %s6002_s7 = scalar_lea.vmem %s6001_s17, 4096  ;;  %p6003_p4 = scmp.lt.s32.totalorder %s6262_s28, %s6001_s17 }
  0x56   : > { %p5998_p1 = pnand %p5996_p12, %p5982_p0  ;;  %p6004_p13 = scmp.lt.s32.totalorder %s6002_s7, %s5995_s30 }
  0x58   : > { %p5999_p5 = pneg %p5998_p1  ;;  %p6005_p6 = por %p6004_p13, %p6003_p4 }
  0x5a   : > { %p6006_p10 = pnand %p6005_p6, %p5999_p5 }
  0x5c   : > { %6009 = shalt.err (!%p6006_p10)
}
  0x5d   : > { %5682 = dma.hbm_to_vmem [thread:$0]  (!%p6264_p11), %s6260_s10, 2048, %s6262_s28, %s6268_s13, %s6084_s15, %s6084_s15, %s6085_s16  }
  0x5e   : > { %231 = sbr.rel (%p6161_p8) target bundleno = 1174 (0x496), region = 40 }
  0x65   : > { %s6302_s14 = sand.u32 1, %s6072_s19   ;;  %p7909_p4 = scmp.ne.s32.totalorder %s7902_s24, 0 }
  0x66   : > { %s4447_s6 = sshll.u32 %s6302_s14, 7  ;;  %s234_s8 = scalar_lea.sflag [#allocation3], %s6302_s14 }
  0x67   : > { %s6306_s9 = scalar_lea.vmem [#allocation2], %s4447_s6 }
  0x68   : > { %6055 = dma.done.wait (%p7909_p4), %s234_s8, 2048  }
  0x69   : > { %6057 = vsyncadd (%p7909_p4), %s234_s8, 4294965248  ;;  %p7910_p5 = scmp.eq.s32.totalorder %s6142_s22, 0 }
  0x6b   : > { %6059 = dma.done.wait (%p7910_p5), [#allocation6], 18432   ;;  %p7911_p8 = pmov %p7910_p5 }
  0x6c   : > { %vm538_vm0 = vcmask 1040384   ;;  %vm539_vm1 = vsmask.f32 256  ;;  %v6087_v0 = vmov 0   ;;  %vm575_vm3 = vsmask.f32 7424 }
  0x6d   : > { %6061 = vsyncadd (%p7911_p8), [#allocation6], 4294948864  ;;  %v388_v1 = vrot.slane %v6087_v0, 7  ;;  %v5732_v10 = vld [vmem:[#allocation5 + $0x40] sm:$0xff]   ;;  %v5736_v16 = vld [vmem:[#allocation5 + $0x48] sm:$0xff]   ;;  %vm816_vm4 = vcmask 1046528  }
  0x6e   : > { %vm6316_vm2 = vmand %vm538_vm0, %vm539_vm1  ;;  %v5733_v11 = vld [vmem:[#allocation5] sm:$0xff]   ;;  %4620 = vmatprep.subr.bf16.mxu0 %v5732_v10  ;;  %v5737_v17 = vld [vmem:[#allocation5 + $0x8] sm:$0xff]   ;;  %s4450_s10 = sshll.u32 %s6302_s14, 8  ;;  %s4619_s12 = sshll.u32 %s6142_s22, 12 }
  0x6f   : > { %v6322_v3 = vsel %vm6316_vm2, 0, %v388_v1  ;;  %v6326_v4 = vsel %vm6316_vm2, %v388_v1, 0  ;;  %v5734_v13 = vld [vmem:[#allocation5 + $0xc0] sm:$0xff]   ;;  %4621 = vmatpush3.bf16.msra.mxu0 %v5733_v11  ;;  %v5738_v18 = vld [vmem:[#allocation5 + $0xc8] sm:$0xff]   ;;  %v5740_v20 = vld [vmem:[#allocation5 + $0x50] sm:$0xff]   ;;  %s7746_s28 = scalar_lea.vmem [#allocation8], %s4450_s10  ;;  %s7824_s17 = scalar_lea.hbm %s7878_s5, %s4619_s12 }
  0x70   : > { %7914 = vst [vmem:[#allocation12_spill] sm:$0xff] %v6322_v3  ;;  %v577_v5 = vshrl.u32 %v6322_v3, 16  ;;  %v579_v6 = vshll.u32 %v6322_v3, 16  ;;  %v584_v7 = vshll.u32 %v6326_v4, 16  ;;  %v5735_v14 = vld [vmem:[#allocation5 + $0x80] sm:$0xff]   ;;  %4732 = vmatprep.subr.bf16.mxu1 %v5734_v13  ;;  %4622 = vmatprep.subr.bf16.mxu0 %v5736_v16  ;;  %v5739_v19 = vld [vmem:[#allocation5 + $0x88] sm:$0xff]  }
  0x71   : > { %4733 = vmatpush3.bf16.msra.mxu1 %v5735_v14  ;;  %v5741_v21 = vld [vmem:[#allocation5 + $0x10] sm:$0xff]   ;;  %v5744_v24 = vld [vmem:[#allocation5 + $0x58] sm:$0xff]   ;;  %v5748_v28 = vld [vmem:[#allocation5 + $0x60] sm:$0xff]   ;;  %v817_v48 = vrot.slane %v6322_v3, 1  ;;  %v818_v49 = vrot.slane %v6326_v4, 1  ;;  %s4346_s13 = sshll.u32 %s7746_s28, 4  ;;  %s7826_s13 = int_to_ptr.vmem [resolvable:$true] %s4346_s13 }
  0x72   : > { %v581_v8 = vrot.slane %v579_v6, 1  ;;  %v586_v9 = vrot.slane %v584_v7, 1  ;;  %4734 = vmatprep.subr.bf16.mxu1 %v5738_v18  ;;  %v5742_v22 = vld [vmem:[#allocation5 + $0xd0] sm:$0xff]   ;;  %v5745_v25 = vld [vmem:[#allocation5 + $0x18] sm:$0xff]   ;;  %v5749_v29 = vld [vmem:[#allocation5 + $0x20] sm:$0xff]   ;;  %s4333_s22 = scalar_lea.sflag [#allocation4], %s6302_s14 }
  0x73   : > { %4623 = vmatpush3.bf16.msra.mxu0 %v5737_v17  ;;  %v5743_v23 = vld [vmem:[#allocation5 + $0x90] sm:$0xff]   ;;  %v5746_v26 = vld [vmem:[#allocation5 + $0xd8] sm:$0xff]   ;;  %v5750_v30 = vld [vmem:[#allocation5 + $0xe0] sm:$0xff]   ;;  %s6010_s7 = scalar_lea.vmem %s7826_s13, 4096  ;;  %p7944_p0 = scmp.ne.s32.totalorder %s7907_s23, 0 }
  0x74   : > { %v582_v12 = vor.u32 %v581_v8, %v577_v5  ;;  %4624 = vmatprep.subr.bf16.mxu0 %v5740_v20  ;;  %v5747_v27 = vld [vmem:[#allocation5 + $0x98] sm:$0xff]   ;;  %v5751_v31 = vld [vmem:[#allocation5 + $0xa0] sm:$0xff]   ;;  %v5752_v32 = vld [vmem:[#allocation5 + $0x68] sm:$0xff]   ;;  %v6345_v5 = vsel %vm816_vm4, %v817_v48, %v818_v49  ;;  %p6011_p11 = scmp.ne.s32.totalorder %s7826_s13, %s6010_s7  ;;  %s6088_s6 = smov [#allocation8]  }
  0x75   : > { %4735 = vmatpush3.bf16.msra.mxu1 %v5739_v19  ;;  %v5753_v33 = vld [vmem:[#allocation5 + $0x28] sm:$0xff]   ;;  %v5756_v36 = vld [vmem:[#allocation5 + $0x70] sm:$0xff]   ;;  %v5760_v40 = vld [vmem:[#allocation5 + $0x78] sm:$0xff]   ;;  %7916 = vst [vmem:[#allocation14_spill] sm:$0xff] %v6345_v5  ;;  %s6014_s8 = sshll.u32 %s6088_s6, 4  ;;  %s6015_s8 = int_to_ptr.vmem [resolvable:$false] %s6014_s8 }
  0x76   : > { %v6332_v15 = vsel %vm575_vm3, %v582_v12, %v586_v9  ;;  %4736 = vmatprep.subr.bf16.mxu1 %v5742_v22  ;;  %v5754_v34 = vld [vmem:[#allocation5 + $0xe8] sm:$0xff]   ;;  %v5757_v37 = vld [vmem:[#allocation5 + $0x30] sm:$0xff]   ;;  %v5761_v41 = vld [vmem:[#allocation5 + $0x38] sm:$0xff]   ;;  %p6012_p2 = pnand %p6011_p11, %p7944_p0  ;;  %p6017_p7 = scmp.lt.s32.totalorder %s7826_s13, %s6015_s8 }
  0x77   : > { %7915 = vst [vmem:[#allocation13_spill] sm:$0xff] %v6332_v15  ;;  %1515 = vmatprep.mubr.bf16.mxu0 %v6332_v15  ;;  %4625 = vmatpush3.bf16.msra.mxu0 %v5741_v21  ;;  %v5755_v35 = vld [vmem:[#allocation5 + $0xa8] sm:$0xff]   ;;  %v5758_v38 = vld [vmem:[#allocation5 + $0xf0] sm:$0xff]   ;;  %v5762_v42 = vld [vmem:[#allocation5 + $0xf8] sm:$0xff]  }
  0x78   : > { %4626 = vmatprep.subr.bf16.mxu0 %v5744_v24  ;;  %v5759_v39 = vld [vmem:[#allocation5 + $0xb0] sm:$0xff]   ;;  %v5763_v43 = vld [vmem:[#allocation5 + $0xb8] sm:$0xff]   ;;  %v5764_v44 = vld [vmem:[#allocation5 + $0x140] sm:$0xff]   ;;  %p6013_p3 = pneg %p6012_p2 }
  0x79   : > { %4737 = vmatpush3.bf16.msra.mxu1 %v5743_v23  ;;  %v273_v45 = vld [vmem:[%s6306_s9] sm:$0xff]   ;;  %v275_v47 = vld [vmem:[%s6306_s9 + $0x8] sm:$0xff]   ;;  %v277_v51 = vld [vmem:[%s6306_s9 + $0x10] sm:$0xff]  }
  0x7a   : > { %4738 = vmatprep.subr.bf16.mxu1 %v5746_v26  ;;  %v5766_v46 = vld [vmem:[#allocation5 + $0x100] sm:$0xff]   ;;  %v5768_v50 = vld [vmem:[#allocation5 + $0x148] sm:$0xff]   ;;  %v393_v52 = vshrl.u32 %v273_v45, 16  ;;  %v396_v53 = vshll.u32 %v273_v45, 16  ;;  %v400_v54 = vshrl.u32 %v275_v47, 16  ;;  %v403_v55 = vshll.u32 %v275_v47, 16 }
  0x7b   : > { %4627 = vmatpush3.bf16.msra.mxu0 %v5745_v25  ;;  %v5770_v56 = vld [vmem:[#allocation5 + $0x108] sm:$0xff]   ;;  %v279_v57 = vld [vmem:[%s6306_s9 + $0x18] sm:$0xff]   ;;  %v407_v59 = vshrl.u32 %v277_v51, 16  ;;  %v410_v60 = vshll.u32 %v277_v51, 16  ;;  %v5772_v61 = vld [vmem:[#allocation5 + $0x150] sm:$0xff]  }
  0x7c   : > { %4628 = vmatprep.subr.bf16.mxu0 %v5748_v28  ;;  %v395_v58 = vrot.slane %v393_v52, 7  ;;  %v402_v62 = vrot.slane %v400_v54, 7  ;;  %v5774_v4 = vld [vmem:[#allocation5 + $0x110] sm:$0xff]   ;;  %v5776_v9 = vld [vmem:[#allocation5 + $0x158] sm:$0xff]   ;;  %v414_v13 = vshrl.u32 %v279_v57, 16 }
  0x7d   : > { %4739 = vmatpush3.bf16.msra.mxu1 %v5747_v27  ;;  %v409_v1 = vrot.slane %v407_v59, 7  ;;  %v5778_v22 = vld [vmem:[#allocation5 + $0x118] sm:$0xff]   ;;  %v5780_v27 = vld [vmem:[#allocation5 + $0x160] sm:$0xff]  }
  0x7e   : > { %4740 = vmatprep.subr.bf16.mxu1 %v5750_v30  ;;  %v398_v63 = vor.u32 %v396_v53, %v395_v58  ;;  %v559_v0 = vsel %vm6316_vm2, %v395_v58, 0  ;;  %v405_v7 = vor.u32 %v403_v55, %v402_v62  ;;  %v6349_v8 = vsel %vm6316_vm2, %v402_v62, 0  ;;  %v6404_v59 = vld [vmem:[%s6306_s9 + $0x38] sm:$0xff]  }
  0x7f   : > { %4629 = vmatpush3.bf16.msra.mxu0 %v5749_v29  ;;  %v596_v6 = vshll.u32 %v559_v0, 16  ;;  %v608_v11 = vshll.u32 %v6349_v8, 16  ;;  %v412_v12 = vor.u32 %v410_v60, %v409_v1  ;;  %v821_v18 = vrot.slane %v559_v0, 1  ;;  %v5788_v60 = vld [vmem:[#allocation5 + $0x170] sm:$0xff]   ;;  %v5791_v0 = vld [vmem:[#allocation5 + $0x1c0] sm:$0xff]  }
  0x80   : > { %4630 = vmatprep.subr.bf16.mxu0 %v5752_v32  ;;  %v542_v10 = vsel %vm6316_vm2, 0, %v398_v63  ;;  %v6356_v17 = vsel %vm6316_vm2, 0, %v405_v7  ;;  %v6368_v26 = vsel %vm6316_vm2, %v409_v1, 0  ;;  %v416_v32 = vrot.slane %v414_v13, 7 }
  0x81   : > { %4741 = vmatpush3.bf16.msra.mxu1 %v5751_v31  ;;  %1676 = vmatprep.mubr.bf16.mxu1 %v542_v10  ;;  %v589_v14 = vshrl.u32 %v542_v10, 16  ;;  %v591_v16 = vshll.u32 %v542_v10, 16  ;;  %v598_v19 = vrot.slane %v596_v6, 1  ;;  %v601_v20 = vshrl.u32 %v6356_v17, 16 }
  0x82   : > { %4742 = vmatprep.subr.bf16.mxu1 %v5754_v34  ;;  %v603_v21 = vshll.u32 %v6356_v17, 16  ;;  %v820_v24 = vrot.slane %v542_v10, 1  ;;  %v6364_v25 = vsel %vm6316_vm2, 0, %v412_v12  ;;  %v610_v29 = vrot.slane %v608_v11, 1  ;;  %v5792_v11 = vld [vmem:[#allocation5 + $0x180] sm:$0xff]  }
  0x83   : > { %4631 = vmatpush3.bf16.msra.mxu0 %v5753_v33  ;;  %v593_v23 = vrot.slane %v591_v16, 1  ;;  %v615_v30 = vshll.u32 %v6364_v25, 16  ;;  %v620_v34 = vshll.u32 %v6368_v26, 16  ;;  %v824_v47 = vrot.slane %v6349_v8, 1 }
  0x84   : > { %4632 = vmatprep.subr.bf16.mxu0 %v5756_v36  ;;  %v605_v28 = vrot.slane %v603_v21, 1  ;;  %v281_v36 = vld [vmem:[%s6306_s9 + $0x20] sm:$0xff]   ;;  %v6391_v48 = vsel %vm6316_vm2, %v416_v32, 0  ;;  %v823_v49 = vrot.slane %v6356_v17, 1  ;;  %v826_v12 = vrot.slane %v6364_v25, 1 }
  0x85   : > { %4743 = vmatpush3.bf16.msra.mxu1 %v5755_v35  ;;  %v594_v31 = vor.u32 %v593_v23, %v589_v14  ;;  %v417_v35 = vshll.u32 %v279_v57, 16  ;;  %v421_v54 = vshrl.u32 %v281_v36, 16  ;;  %v424_v55 = vshll.u32 %v281_v36, 16 }
  0x86   : > { %4744 = vmatprep.subr.bf16.mxu1 %v5758_v38  ;;  %v606_v33 = vor.u32 %v605_v28, %v601_v20  ;;  %v632_v57 = vshll.u32 %v6391_v48, 16  ;;  %v6409_v6 = vsel %vm816_vm4, %v823_v49, %v824_v47  ;;  %v827_v14 = vrot.slane %v6368_v26, 1  ;;  %v5793_v20 = vld [vmem:[#allocation5 + $0x1c8] sm:$0xff]   ;;  %v6432_v28 = vld [vmem:[%s6306_s9 + $0x40] sm:$0xff]   ;;  %v5798_v47 = vld [vmem:[#allocation5 + $0x1d8] sm:$0xff]  }
  0x87   : > { %4633 = vmatpush3.bf16.msra.mxu0 %v5757_v37  ;;  %v283_v37 = vld [vmem:[%s6306_s9 + $0x28] sm:$0xff]   ;;  %v6375_v38 = vsel %vm575_vm3, %v594_v31, %v598_v19  ;;  %v419_v45 = vor.u32 %v417_v35, %v416_v32  ;;  %v423_v62 = vrot.slane %v421_v54, 7  ;;  %v5800_v54 = vld [vmem:[#allocation5 + $0x178] sm:$0xff]  }
  0x88   : > { %4634 = vmatprep.subr.bf16.mxu0 %v5760_v40  ;;  %v613_v40 = vshrl.u32 %v6364_v25, 16  ;;  %v428_v58 = vshrl.u32 %v283_v37, 16  ;;  %v431_v63 = vshll.u32 %v283_v37, 16  ;;  %v5794_v26 = vld [vmem:[#allocation5 + $0x188] sm:$0xff]  }
  0x89   : > { %4745 = vmatpush3.bf16.msra.mxu1 %v5759_v39  ;;  %v6378_v39 = vsel %vm816_vm4, %v820_v24, %v821_v18  ;;  %v6398_v51 = vsel %vm6316_vm2, 0, %v419_v45  ;;  %v426_v8 = vor.u32 %v424_v55, %v423_v62  ;;  %v634_v18 = vrot.slane %v632_v57, 1  ;;  %v5797_v45 = vld [vmem:[#allocation5 + $0x190] sm:$0xff]  }
  0x8a   : > { %4746 = vmatprep.subr.bf16.mxu1 %v5762_v42  ;;  %v6382_v42 = vld [vmem:[%s6306_s9 + $0x30] sm:$0xff]   ;;  %v627_v53 = vshll.u32 %v6398_v51, 16  ;;  %v6427_v21 = vsel %vm6316_vm2, %v423_v62, 0  ;;  %v449_v57 = vshrl.u32 %v6432_v28, 16 }
  0x8b   : > { %4635 = vmatpush3.bf16.msra.mxu0 %v5761_v41  ;;  %v617_v41 = vrot.slane %v615_v30, 1  ;;  %v6418_v13 = vsel %vm6316_vm2, 0, %v426_v8  ;;  %v438_v19 = vshll.u32 %v6382_v42, 16  ;;  %v644_v31 = vshll.u32 %v6427_v21, 16 }
  0x8c   : > { %4844 = vmatprep.subr.bf16.mxu0 %v5764_v44  ;;  %v6386_v44 = vsel %vm575_vm3, %v606_v33, %v610_v29  ;;  %v629_v1 = vrot.slane %v627_v53, 1  ;;  %v6435_v29 = vsel %vm816_vm4, %v826_v12, %v827_v14  ;;  %v5796_v33 = vld [vmem:[#allocation5 + $0x1d0] sm:$0xff]   ;;  %v833_v62 = vrot.slane %v6427_v21, 1 }
  0x8d   : > { %4747 = vmatpush3.bf16.msra.mxu1 %v5763_v43  ;;  %v5782_v43 = vld [vmem:[#allocation5 + $0x120] sm:$0xff]   ;;  %v618_v52 = vor.u32 %v617_v41, %v613_v40  ;;  %v830_v40 = vrot.slane %v6391_v48, 1  ;;  %v451_v14 = vrot.slane %v449_v57, 7  ;;  %v5808_v57 = vld [vmem:[#allocation5 + $0x1f0] sm:$0xff]  }
  0x8e   : > { %1516 = vmatmul.mubr.bf16.vlgmr.msra.gmra.mrb[0].mxu0 %v6322_v3  ;;  %4956 = vmatprep.subr.bf16.mxu1 %v5791_v0 }
  0x8f   : > { %4845 = vmatpush3.bf16.msra.mxu0 %v5766_v46  ;;  %1523 = vmatprep.mubr.bf16.mxu0 %v6375_v38  ;;  %v5784_v46 = vld [vmem:[#allocation5 + $0x168] sm:$0xff]  }
  0x90   : > { %4846 = vmatprep.subr.bf16.mxu0 %v5768_v50  ;;  %1677 = vmatmul.mubr.bf16.vlgmr.msra.gmra.mrb[0].mxu1 %v6345_v5  ;;  %v622_v50 = vrot.slane %v620_v34, 1  ;;  %v637_v34 = vshrl.u32 %v6418_v13, 16  ;;  %v6631_v5 = vld [vmem:[%s6306_s9 + $0x78] sm:$0xff]  }
  0x91   : > { %1684 = vmatprep.mubr.bf16.mxu1 %v6356_v17  ;;  %4957 = vmatpush3.bf16.msra.mxu1 %v5792_v11 }
  0x92   : > { %v6412_v7 = vsel %vm575_vm3, %v618_v52, %v622_v50  ;;  %4958 = vmatprep.subr.bf16.mxu1 %v5793_v20  ;;  %v646_v52 = vrot.slane %v644_v31, 1  ;;  %v5805_v31 = vld [vmem:[#allocation5 + $0x1e8] sm:$0xff]  }
  0x93   : > { %4847 = vmatpush3.bf16.msra.mxu0 %v5770_v56  ;;  %v5786_v56 = vld [vmem:[#allocation5 + $0x128] sm:$0xff]  }
  0x94   : > { %4848 = vmatprep.subr.bf16.mxu0 %v5772_v61  ;;  %v625_v61 = vshrl.u32 %v6398_v51, 16 }
  0x95   : > { %4959 = vmatpush3.bf16.msra.mxu1 %v5794_v26 }
  0x96   : > { %1524 = vmatmul.mubr.bf16.gmra.mrb[4].mxu0 %v542_v10  ;;  %v5790_v10 = vld [vmem:[#allocation5 + $0x130] sm:$0xff]   ;;  %v630_v16 = vor.u32 %v629_v1, %v625_v61  ;;  %4960 = vmatprep.subr.bf16.mxu1 %v5796_v33  ;;  %v832_v61 = vrot.slane %v6418_v13, 1 }
  0x97   : > { %4849 = vmatpush3.bf16.msra.mxu0 %v5774_v4  ;;  %1531 = vmatprep.mubr.bf16.mxu0 %v6386_v44  ;;  %v435_v4 = vshrl.u32 %v6382_v42, 16  ;;  %v445_v42 = vshll.u32 %v6404_v59, 16 }
  0x98   : > { %4850 = vmatprep.subr.bf16.mxu0 %v5776_v9  ;;  %1685 = vmatmul.mubr.bf16.gmra.mrb[4].mxu1 %v6378_v39  ;;  %v430_v9 = vrot.slane %v428_v58, 7  ;;  %v6438_v30 = vsel %vm575_vm3, %v630_v16, %v634_v18  ;;  %v6472_v58 = vld [vmem:[%s6306_s9 + $0x50] sm:$0xff]   ;;  %v452_v16 = vshll.u32 %v6432_v28, 16  ;;  %v6495_v18 = vld [vmem:[%s6306_s9 + $0x58] sm:$0xff]  }
  0x99   : > { %1692 = vmatprep.mubr.bf16.mxu1 %v6364_v25  ;;  %v437_v24 = vrot.slane %v435_v4, 7  ;;  %4961 = vmatpush3.bf16.msra.mxu1 %v5797_v45  ;;  %v463_v28 = vshrl.u32 %v6472_v58, 16  ;;  %v297_v45 = vld [vmem:[%s6306_s9 + $0x60] sm:$0xff]  }
  0x9a   : > { %v433_v23 = vor.u32 %v431_v63, %v430_v9  ;;  %v6443_v32 = vsel %vm6316_vm2, %v430_v9, 0  ;;  %4962 = vmatprep.subr.bf16.mxu1 %v5798_v47  ;;  %v5802_v63 = vld [vmem:[#allocation5 + $0x138] sm:$0xff]   ;;  %v5806_v47 = vld [vmem:[#allocation5 + $0x1a8] sm:$0xff]  }
  0x9b   : > { %4851 = vmatpush3.bf16.msra.mxu0 %v5778_v22  ;;  %v639_v22 = vshll.u32 %v6418_v13, 16  ;;  %v440_v37 = vor.u32 %v438_v19, %v437_v24  ;;  %v656_v49 = vshll.u32 %v6443_v32, 16  ;;  %v6468_v55 = vsel %vm6316_vm2, %v437_v24, 0  ;;  %v5803_v19 = vld [vmem:[#allocation5 + $0x1e0] sm:$0xff]  }
  0x9c   : > { %4852 = vmatprep.subr.bf16.mxu0 %v5780_v27  ;;  %v442_v27 = vshrl.u32 %v6404_v59, 16  ;;  %v6448_v36 = vsel %vm6316_vm2, 0, %v433_v23  ;;  %v5799_v59 = vld [vmem:[#allocation5 + $0x198] sm:$0xff]   ;;  %v836_v21 = vrot.slane %v6443_v32, 1  ;;  %v5804_v23 = vld [vmem:[#allocation5 + $0x1a0] sm:$0xff]  }
  0x9d   : > { %v641_v35 = vrot.slane %v639_v22, 1  ;;  %7917 = vst [vmem:[#allocation15_spill] sm:$0xff] %v6448_v36  ;;  %v651_v48 = vshll.u32 %v6448_v36, 16  ;;  %v6464_v53 = vsel %vm6316_vm2, 0, %v440_v37  ;;  %v649_v0 = vshrl.u32 %v6448_v36, 16  ;;  %4963 = vmatpush3.bf16.msra.mxu1 %v5799_v59 }
  0x9e   : > { %1532 = vmatmul.mubr.bf16.gmra.mrb[8].mxu0 %v6356_v17  ;;  %v444_v41 = vrot.slane %v442_v27, 7  ;;  %7918 = vst [vmem:[#allocation16_spill] sm:$0xff] %v6464_v53  ;;  %v658_v4 = vrot.slane %v656_v49, 1  ;;  %v663_v8 = vshll.u32 %v6464_v53, 16  ;;  %v835_v20 = vrot.slane %v6448_v36, 1  ;;  %4964 = vmatprep.subr.bf16.mxu1 %v5803_v19 }
  0x9f   : > { %4853 = vmatpush3.bf16.msra.mxu0 %v5782_v43  ;;  %1539 = vmatprep.mubr.bf16.mxu0 %v6412_v7  ;;  %v6453_v43 = vld [vmem:[%s6306_s9 + $0x48] sm:$0xff]   ;;  %v642_v50 = vor.u32 %v641_v35, %v637_v34  ;;  %v653_v1 = vrot.slane %v651_v48, 1  ;;  %v661_v27 = vshrl.u32 %v6464_v53, 16  ;;  %v838_v26 = vrot.slane %v6464_v53, 1 }
  0xa0   : > { %4854 = vmatprep.subr.bf16.mxu0 %v5784_v46  ;;  %1693 = vmatmul.mubr.bf16.gmra.mrb[8].mxu1 %v6409_v6  ;;  %v829_v46 = vrot.slane %v6398_v51, 1  ;;  %v6487_v11 = vsel %vm6316_vm2, %v444_v41, 0  ;;  %v456_v22 = vshrl.u32 %v6453_v43, 16  ;;  %v665_v32 = vrot.slane %v663_v8, 1  ;;  %v5809_v8 = vld [vmem:[#allocation5 + $0x1b0] sm:$0xff]  }
  0xa1   : > { %1700 = vmatprep.mubr.bf16.mxu1 %v6398_v51  ;;  %v6482_v9 = vsel %vm575_vm3, %v642_v50, %v646_v52  ;;  %v654_v24 = vor.u32 %v653_v1, %v649_v0  ;;  %v680_v35 = vshll.u32 %v6487_v11, 16  ;;  %v839_v37 = vrot.slane %v6468_v55, 1  ;;  %4965 = vmatpush3.bf16.msra.mxu1 %v5804_v23 }
  0xa2   : > { %v6520_v48 = vsel %vm816_vm4, %v832_v61, %v833_v62  ;;  %v458_v49 = vrot.slane %v456_v22, 7  ;;  %v459_v50 = vshll.u32 %v6453_v43, 16  ;;  %4966 = vmatprep.subr.bf16.mxu1 %v5805_v31  ;;  %v470_v61 = vshrl.u32 %v6495_v18, 16 }
  0xa3   : > { %4855 = vmatpush3.bf16.msra.mxu0 %v5786_v56  ;;  %v447_v56 = vor.u32 %v445_v42, %v444_v41  ;;  %v6513_v42 = vsel %vm6316_vm2, %v451_v14, 0  ;;  %7919 = vst [vmem:[#allocation17_spill] sm:$0xff] %v6520_v48  ;;  %v6524_v52 = vsel %vm575_vm3, %v654_v24, %v658_v4  ;;  %v666_v62 = vor.u32 %v665_v32, %v661_v27 }
  0xa4   : > { %4856 = vmatprep.subr.bf16.mxu0 %v5788_v60  ;;  %v6475_v60 = vsel %vm816_vm4, %v829_v46, %v830_v40  ;;  %v454_v40 = vor.u32 %v452_v16, %v451_v14  ;;  %v6517_v46 = vld [vmem:[%s6306_s9 + $0x68] sm:$0xff]   ;;  %7920 = vst [vmem:[#allocation18_spill] sm:$0xff] %v6524_v52  ;;  %v692_v1 = vshll.u32 %v6513_v42, 16  ;;  %v473_v4 = vshll.u32 %v6495_v18, 16  ;;  %v5810_v14 = vld [vmem:[#allocation5 + $0x1f8] sm:$0xff]  }
  0xa5   : > { %v6491_v12 = vsel %vm6316_vm2, 0, %v447_v56  ;;  %v466_v56 = vshll.u32 %v6472_v58, 16  ;;  %4967 = vmatpush3.bf16.msra.mxu1 %v5806_v47  ;;  %v461_v58 = vor.u32 %v459_v50, %v458_v49  ;;  %v6540_v16 = vsel %vm816_vm4, %v835_v20, %v836_v21 }
  0xa6   : > { %1540 = vmatmul.mubr.bf16.gmra.mrb[12].mxu0 %v6364_v25  ;;  %v675_v34 = vshll.u32 %v6491_v12, 16  ;;  %v6532_v43 = vsel %vm6316_vm2, 0, %v454_v40  ;;  %4968 = vmatprep.subr.bf16.mxu1 %v5808_v57  ;;  %7921 = vst [vmem:[#allocation19_spill] sm:$0xff] %v6540_v16  ;;  %v6546_v23 = vsel %vm816_vm4, %v838_v26, %v839_v37  ;;  %v6550_v27 = vsel %vm6316_vm2, %v458_v49, 0  ;;  %v6559_v40 = vld [vmem:[#allocation5 + $0x200] sm:$0xff]  }
  0xa7   : > { %4857 = vmatpush3.bf16.msra.mxu0 %v5790_v10  ;;  %1547 = vmatprep.mubr.bf16.mxu0 %v6438_v30  ;;  %v668_v10 = vshll.u32 %v6468_v55, 16  ;;  %v465_v55 = vrot.slane %v463_v28, 7  ;;  %7922 = vst [vmem:[#allocation20_spill] sm:$0xff] %v6546_v23  ;;  %v477_v28 = vshrl.u32 %v297_v45, 16  ;;  %v687_v20 = vshll.u32 %v6532_v43, 16 }
  0xa8   : > { %1701 = vmatmul.mubr.bf16.gmra.mrb[12].mxu1 %v6435_v29  ;;  %4858 = vmatprep.subr.bf16.mxu0 %v5800_v54  ;;  %v673_v54 = vshrl.u32 %v6491_v12, 16  ;;  %v677_v59 = vrot.slane %v675_v34, 1  ;;  %v480_v32 = vshll.u32 %v297_v45, 16  ;;  %v6557_v34 = vld [vmem:[%s6306_s9 + $0x70] sm:$0xff]   ;;  %v6563_v26 = vsel %vm6316_vm2, 0, %v461_v58 }
  0xa9   : > { %1708 = vmatprep.mubr.bf16.mxu1 %v6418_v13  ;;  %v670_v33 = vrot.slane %v668_v10, 1  ;;  %v472_v10 = vrot.slane %v470_v61, 7  ;;  %v468_v22 = vor.u32 %v466_v56, %v465_v55  ;;  %4969 = vmatpush3.bf16.msra.mxu1 %v5809_v8  ;;  %v6567_v37 = vsel %vm6316_vm2, %v465_v55, 0 }
  0xaa   : > { %v678_v24 = vor.u32 %v677_v59, %v673_v54  ;;  %v484_v47 = vshrl.u32 %v6517_v46, 16  ;;  %4970 = vmatprep.subr.bf16.mxu1 %v5810_v14  ;;  %v6570_v49 = vrot.slane %v692_v1, 1  ;;  %v704_v45 = vshll.u32 %v6550_v27, 16 }
  0xab   : > { %4859 = vmatpush3.bf16.msra.mxu0 %v5802_v63  ;;  %v682_v63 = vrot.slane %v680_v35, 1  ;;  %v6553_v31 = vsel %vm575_vm3, %v666_v62, %v670_v33  ;;  %v475_v21 = vor.u32 %v473_v4, %v472_v10  ;;  %v5811_v35 = vld [vmem:[#allocation5 + $0x1b8] sm:$0xff]   ;;  %v479_v33 = vrot.slane %v477_v28, 7 }
  0xac   : > { %7923 = vst [vmem:[#allocation21_spill] sm:$0xff] %v6553_v31  ;;  %v6575_v50 = vsel %vm6316_vm2, 0, %v468_v22  ;;  %v487_v54 = vshll.u32 %v6517_v46, 16  ;;  %5564 = vmatprep.subr.bf16.mxu0 %v6559_v40  ;;  %v486_v59 = vrot.slane %v484_v47, 7  ;;  %v699_v61 = vshll.u32 %v6563_v26, 16 }
  0xad   : > { %v6580_v56 = vsel %vm575_vm3, %v678_v24, %v682_v63  ;;  %v482_v57 = vor.u32 %v480_v32, %v479_v33  ;;  %v716_v62 = vshll.u32 %v6567_v37, 16  ;;  %v6587_v1 = vsel %vm6316_vm2, 0, %v475_v21  ;;  %4971 = vmatpush3.bf16.msra.mxu1 %v5811_v35 }
  0xae   : > { %1548 = vmatmul.mubr.bf16.gmra.mrb[16].mxu0 %v6398_v51  ;;  %7924 = vst [vmem:[#allocation22_spill] sm:$0xff] %v6580_v56  ;;  %v6591_v46 = vsel %vm6316_vm2, %v472_v10, 0  ;;  %v689_v63 = vrot.slane %v687_v20, 1  ;;  %v711_v8 = vshll.u32 %v6575_v50, 16  ;;  %v697_v58 = vshrl.u32 %v6563_v26, 16 }
  0xaf   : > { %1555 = vmatprep.mubr.bf16.mxu0 %v6482_v9  ;;  %v706_v14 = vrot.slane %v704_v45, 1  ;;  %v847_v22 = vrot.slane %v6563_v26, 1  ;;  %v489_v24 = vor.u32 %v487_v54, %v486_v59  ;;  %v723_v10 = vshll.u32 %v6587_v1, 16 }
  0xb0   : > { %1709 = vmatmul.mubr.bf16.gmra.mrb[16].mxu1 %v6475_v60  ;;  %v728_v28 = vshll.u32 %v6591_v46, 16  ;;  %v6605_v20 = vsel %vm6316_vm2, 0, %v482_v57  ;;  %v6609_v21 = vsel %vm6316_vm2, %v479_v33, 0  ;;  %v701_v32 = vrot.slane %v699_v61, 1 }
  0xb1   : > { %1716 = vmatprep.mubr.bf16.mxu1 %v6448_v36  ;;  %v709_v35 = vshrl.u32 %v6575_v50, 16  ;;  %v718_v47 = vrot.slane %v716_v62, 1  ;;  %v851_v45 = vrot.slane %v6567_v37, 1  ;;  %v713_v54 = vrot.slane %v711_v8, 1 }
  0xb2   : > { %v850_v4 = vrot.slane %v6575_v50, 1  ;;  %v6616_v55 = vsel %vm6316_vm2, %v486_v59, 0  ;;  %v491_v57 = vshrl.u32 %v6557_v34, 16  ;;  %v735_v33 = vshll.u32 %v6605_v20, 16 }
  0xb3   : > { %v740_v61 = vshll.u32 %v6609_v21, 16  ;;  %v6624_v62 = vsel %vm6316_vm2, 0, %v489_v24  ;;  %v721_v37 = vshrl.u32 %v6587_v1, 16  ;;  %v725_v8 = vrot.slane %v723_v10, 1 }
  0xb4   : > { %v730_v0 = vrot.slane %v728_v28, 1  ;;  %v853_v41 = vrot.slane %v6587_v1, 1  ;;  %v752_v19 = vshll.u32 %v6616_v55, 16  ;;  %v733_v18 = vshrl.u32 %v6605_v20, 16 }
  0xb5   : > { %v747_v3 = vshll.u32 %v6624_v62, 16  ;;  %v493_v24 = vrot.slane %v491_v57, 7  ;;  %v494_v15 = vshll.u32 %v6557_v34, 16  ;;  %v737_v10 = vrot.slane %v735_v33, 1 }
  0xb6   : > { %1556 = vmatmul.mubr.bf16.gmra.mrb[20].mxu0 %v6418_v13  ;;  %v742_v28 = vrot.slane %v740_v61, 1  ;;  %v856_v59 = vrot.slane %v6605_v20, 1  ;;  %v859_v57 = vrot.slane %v6624_v62, 1  ;;  %v7926_v33 = vrot.slane %v6487_v11, 1 }
  0xb7   : > { %1563 = vmatprep.mubr.bf16.mxu0 %v6524_v52  ;;  %v749_v52 = vrot.slane %v747_v3, 1  ;;  %v496_v34 = vor.u32 %v494_v15, %v493_v24  ;;  %v7927_v61 = vrot.slane %v6491_v12, 1  ;;  %v498_v15 = vshrl.u32 %v6631_v5, 16 }
  0xb8   : > { %1717 = vmatmul.mubr.bf16.gmra.mrb[20].mxu1 %v6520_v48  ;;  %v7928_v11 = vrot.slane %v6513_v42, 1 }
  0xb9   : > { %1724 = vmatprep.mubr.bf16.mxu1 %v6464_v53  ;;  %v6663_v3 = vsel %vm6316_vm2, 0, %v496_v34  ;;  %v7931_v34 = vrot.slane %v6591_v46, 1  ;;  %v7932_v46 = vrot.slane %v6609_v21, 1 }
  0xbe   : > { %1564 = vmatmul.mubr.bf16.gmra.mrb[24].mxu0 %v6448_v36  ;;  %v754_v36 = vrot.slane %v752_v19, 1 }
  0xbf   : > { %1571 = vmatprep.mubr.bf16.mxu0 %v6553_v31  ;;  %v745_v31 = vshrl.u32 %v6624_v62, 16 }
  0xc0   : > { %1725 = vmatmul.mubr.bf16.gmra.mrb[24].mxu1 %v6540_v16 }
  0xc1   : > { %1732 = vmatprep.mubr.bf16.mxu1 %v6491_v12 }
  0xc6   : > { %1572 = vmatmul.mubr.bf16.gmra.mrb[28].mxu0 %v6464_v53  ;;  %v7925_v53 = vshrl.u32 %v6532_v43, 16 }
  0xc7   : > { %1579 = vmatprep.mubr.bf16.mxu0 %v6580_v56  ;;  %v6654_v56 = vsel %vm816_vm4, %v7927_v61, %v7926_v33  ;;  %v6713_v33 = vsel %vm816_vm4, %v853_v41, %v7931_v34  ;;  %v6726_v41 = vsel %vm816_vm4, %v856_v59, %v7932_v46  ;;  %v5813_v61 = vld [vmem:[#allocation5 + $0x208] sm:$0xff]  }
  0xc8   : > { %1733 = vmatmul.mubr.bf16.gmra.mrb[28].mxu1 %v6546_v23  ;;  %v690_v16 = vor.u32 %v689_v63, %v7925_v53  ;;  %v6647_v23 = vsel %vm6316_vm2, %v493_v24, 0  ;;  %v702_v53 = vor.u32 %v701_v32, %v697_v58  ;;  %v714_v63 = vor.u32 %v713_v54, %v709_v35 }
  0xc9   : > { %1740 = vmatprep.mubr.bf16.mxu1 %v6532_v43  ;;  %v7930_v58 = vrot.slane %v6550_v27, 1  ;;  %v501_v24 = vshll.u32 %v6631_v5, 16  ;;  %v759_v35 = vshll.u32 %v6663_v3, 16  ;;  %v6697_v54 = vrot.slane %v498_v15, 7  ;;  %v5815_v15 = vld [vmem:[#allocation5 + $0x218] sm:$0xff]  }
  0xca   : > { %v6658_v48 = vsel %vm575_vm3, %v690_v16, %v6570_v49  ;;  %v7929_v16 = vrot.slane %v6532_v43, 1  ;;  %v6677_v49 = vsel %vm575_vm3, %v702_v53, %v706_v14  ;;  %v6689_v32 = vsel %vm575_vm3, %v714_v63, %v718_v47  ;;  %v7937_v53 = vld [vmem:[#allocation21_spill] sm:$0xff] }
  0xcb   : > { %v6686_v42 = vsel %vm816_vm4, %v847_v22, %v7930_v58  ;;  %v764_v14 = vshll.u32 %v6647_v23, 16  ;;  %v726_v27 = vor.u32 %v725_v8, %v721_v37  ;;  %v6701_v22 = vsel %vm816_vm4, %v850_v4, %v851_v45 }
  0xcc   : > { %v6674_v19 = vsel %vm816_vm4, %v7929_v16, %v7928_v11  ;;  %v738_v5 = vor.u32 %v737_v10, %v733_v18  ;;  %v761_v45 = vrot.slane %v759_v35, 1  ;;  %v750_v18 = vor.u32 %v749_v52, %v745_v31  ;;  %v7940_v11 = vld [vmem:[#allocation22_spill] sm:$0xff] }
  0xcd   : > { %v6704_v47 = vsel %vm575_vm3, %v726_v27, %v730_v0  ;;  %v757_v0 = vshrl.u32 %v6663_v3, 16  ;;  %v860_v8 = vrot.slane %v6616_v55, 1  ;;  %v766_v52 = vrot.slane %v764_v14, 1 }
  0xce   : > { %1580 = vmatmul.mubr.bf16.gmra.mrb[32].mxu0 %v6491_v12  ;;  %v6716_v4 = vsel %vm575_vm3, %v738_v5, %v742_v28  ;;  %v6729_v37 = vsel %vm575_vm3, %v750_v18, %v754_v36  ;;  %v503_v31 = vor.u32 %v501_v24, %v6697_v54  ;;  %v862_v55 = vrot.slane %v6663_v3, 1 }
  0xcf   : > { %1587 = vmatprep.mubr.bf16.mxu0 %v6658_v48  ;;  %v762_v10 = vor.u32 %v761_v45, %v757_v0  ;;  %v6738_v21 = vsel %vm816_vm4, %v859_v57, %v860_v8  ;;  %v863_v28 = vrot.slane %v6647_v23, 1  ;;  %v5814_v23 = vld [vmem:[#allocation5 + $0x210] sm:$0xff]   ;;  %v574_v46 = vsel %vm6316_vm2, %v6697_v54, 0 }
  0xd0   : > { %1741 = vmatmul.mubr.bf16.gmra.mrb[32].mxu1 %v6654_v56  ;;  %v6745_v59 = vsel %vm6316_vm2, 0, %v503_v31 }
  0xd1   : > { %1748 = vmatprep.mubr.bf16.mxu1 %v6563_v26  ;;  %v6741_v36 = vsel %vm575_vm3, %v762_v10, %v766_v52  ;;  %v6754_v57 = vsel %vm816_vm4, %v862_v55, %v863_v28  ;;  %v884_v0 = vshll.u32 %v6745_v59, 16  ;;  %v882_v55 = vshrl.u32 %v6745_v59, 16 }
  0xd6   : > { %1588 = vmatmul.mubr.bf16.gmra.mrb[36].mxu0 %v6532_v43 }
  0xd7   : > { %1595 = vmatprep.mubr.bf16.mxu0 %v6677_v49 }
  0xd8   : > { %1749 = vmatmul.mubr.bf16.gmra.mrb[36].mxu1 %v6674_v19 }
  0xd9   : > { %1756 = vmatprep.mubr.bf16.mxu1 %v6575_v50 }
  0xde   : > { %1596 = vmatmul.mubr.bf16.gmra.mrb[40].mxu0 %v6563_v26 }
  0xdf   : > { %1603 = vmatprep.mubr.bf16.mxu0 %v6689_v32 }
  0xe0   : > { %1757 = vmatmul.mubr.bf16.gmra.mrb[40].mxu1 %v6686_v42 }
  0xe1   : > { %1764 = vmatprep.mubr.bf16.mxu1 %v6587_v1 }
  0xe6   : > { %1604 = vmatmul.mubr.bf16.gmra.mrb[44].mxu0 %v6575_v50 }
  0xe7   : > { %1611 = vmatprep.mubr.bf16.mxu0 %v6704_v47 }
  0xe8   : > { %1765 = vmatmul.mubr.bf16.gmra.mrb[44].mxu1 %v6701_v22 }
  0xe9   : > { %1772 = vmatprep.mubr.bf16.mxu1 %v6605_v20 }
  0xee   : > { %1612 = vmatmul.mubr.bf16.gmra.mrb[48].mxu0 %v6587_v1 }
  0xef   : > { %1619 = vmatprep.mubr.bf16.mxu0 %v6716_v4 }
  0xf0   : > { %1773 = vmatmul.mubr.bf16.gmra.mrb[48].mxu1 %v6713_v33 }
  0xf1   : > { %1780 = vmatprep.mubr.bf16.mxu1 %v6624_v62 }
  0xf6   : > { %1620 = vmatmul.mubr.bf16.gmra.mrb[52].mxu0 %v6605_v20 }
  0xf7   : > { %1627 = vmatprep.mubr.bf16.mxu0 %v6729_v37 }
  0xf8   : > { %1781 = vmatmul.mubr.bf16.gmra.mrb[52].mxu1 %v6726_v41 }
  0xf9   : > { %1788 = vmatprep.mubr.bf16.mxu1 %v6663_v3 }
  0xfe   : > { %1628 = vmatmul.mubr.bf16.gmra.mrb[56].mxu0 %v6624_v62 }
  0xff   : > { %1635 = vmatprep.mubr.bf16.mxu0 %v6741_v36 }
 0x100   : > { %1789 = vmatmul.mubr.bf16.gmra.mrb[56].mxu1 %v6738_v21 }
 0x101   : > { %1796 = vmatprep.mubr.bf16.mxu1 %v6745_v59 }
 0x106   : > { %1636 = vmatmul.mubr.bf16.gmra.mrb[60].mxu0 %v6663_v3 }
 0x107   : > { %1837 = vmatprep.mubr.bf16.mxu0 %v6378_v39  ;;  %v5819_v39 = vld [vmem:[#allocation5 + $0x238] sm:$0xff]  }
 0x108   : > { %1797 = vmatmul.mubr.bf16.gmra.mrb[60].mxu1 %v6754_v57 }
 0x109   : > { %1998 = vmatprep.mubr.bf16.mxu1 %v6386_v44 }
 0x10e   : > { %1838 = vmatmul.mubr.bf16.vlgmr.msra.gmra.mrb[64].mxu0 %v6375_v38  ;;  %v5817_v38 = vld [vmem:[#allocation5 + $0x228] sm:$0xff]  }
 0x10f   : > { %5565 = vmatpush3.bf16.msra.mxu0 %v6559_v40  ;;  %1845 = vmatprep.mubr.bf16.mxu0 %v6409_v6  ;;  %v7934_v40 = vld [vmem:[#allocation18_spill] sm:$0xff] }
 0x110   : > { %1999 = vmatmul.mubr.bf16.vlgmr.msra.gmra.mrb[64].mxu1 %v6356_v17  ;;  %5566 = vmatprep.subr.bf16.mxu0 %v5813_v61  ;;  %v5816_v17 = vld [vmem:[#allocation5 + $0x220] sm:$0xff]  }
 0x111   : > { %2006 = vmatprep.mubr.bf16.mxu1 %v6412_v7 }
 0x113   : > { %5567 = vmatpush3.bf16.msra.mxu0 %v5813_v61 }
 0x114   : > { %5568 = vmatprep.subr.bf16.mxu0 %v5814_v23 }
 0x116   : > { %1846 = vmatmul.mubr.bf16.gmra.mrb[68].mxu0 %v6386_v44  ;;  %v7933_v44 = vld [vmem:[#allocation17_spill] sm:$0xff] }
 0x117   : > { %1853 = vmatprep.mubr.bf16.mxu0 %v6435_v29  ;;  %5569 = vmatpush3.bf16.msra.mxu0 %v5814_v23 }
 0x118   : > { %2007 = vmatmul.mubr.bf16.gmra.mrb[68].mxu1 %v6364_v25  ;;  %5570 = vmatprep.subr.bf16.mxu0 %v5815_v15  ;;  %v5818_v25 = vld [vmem:[#allocation5 + $0x230] sm:$0xff]  }
 0x119   : > { %2014 = vmatprep.mubr.bf16.mxu1 %v6438_v30 }
 0x11b   : > { %5571 = vmatpush3.bf16.msra.mxu0 %v5815_v15  ;;  %v886_v15 = vrot.slane %v884_v0, 1 }
 0x11c   : > { %5572 = vmatprep.subr.bf16.mxu0 %v5816_v17 }
 0x11e   : > { %1854 = vmatmul.mubr.bf16.gmra.mrb[72].mxu0 %v6412_v7  ;;  %v7936_v7 = vld [vmem:[#allocation19_spill] sm:$0xff] }
 0x11f   : > { %1861 = vmatprep.mubr.bf16.mxu0 %v6475_v60  ;;  %5573 = vmatpush3.bf16.msra.mxu0 %v5816_v17  ;;  %v889_v17 = vshll.u32 %v574_v46, 16 }
 0x120   : > { %2015 = vmatmul.mubr.bf16.gmra.mrb[72].mxu1 %v6398_v51  ;;  %5574 = vmatprep.subr.bf16.mxu0 %v5817_v38  ;;  %v7935_v51 = vld [vmem:[#allocation15_spill] sm:$0xff] }
 0x121   : > { %2022 = vmatprep.mubr.bf16.mxu1 %v6482_v9 }
 0x123   : > { %5575 = vmatpush3.bf16.msra.mxu0 %v5817_v38 }
 0x124   : > { %5576 = vmatprep.subr.bf16.mxu0 %v5818_v25 }
 0x126   : > { %1862 = vmatmul.mubr.bf16.gmra.mrb[76].mxu0 %v6438_v30  ;;  %v7938_v30 = vld [vmem:[#allocation16_spill] sm:$0xff] }
 0x127   : > { %1869 = vmatprep.mubr.bf16.mxu0 %v7933_v44  ;;  %5577 = vmatpush3.bf16.msra.mxu0 %v5818_v25 }
 0x128   : > { %2023 = vmatmul.mubr.bf16.gmra.mrb[76].mxu1 %v6418_v13  ;;  %5578 = vmatprep.subr.bf16.mxu0 %v5819_v39  ;;  %v7939_v13 = vld [vmem:[#allocation20_spill] sm:$0xff] }
 0x129   : > { %2030 = vmatprep.mubr.bf16.mxu1 %v7934_v40 }
 0x12b   : > { %5579 = vmatpush3.bf16.msra.mxu0 %v5819_v39 }
 0x12e   : > { %1870 = vmatmul.mubr.bf16.gmra.mrb[80].mxu0 %v6482_v9 }
 0x12f   : > { %1877 = vmatprep.mubr.bf16.mxu0 %v7936_v7 }
 0x130   : > { %2031 = vmatmul.mubr.bf16.gmra.mrb[80].mxu1 %v7935_v51  ;;  %v891_v51 = vrot.slane %v889_v17, 1  ;;  %v7941_v17 = vld [vmem:[#allocation13_spill] sm:$0xff] }
 0x131   : > { %2038 = vmatprep.mubr.bf16.mxu1 %v7937_v53 }
 0x136   : > { %1878 = vmatmul.mubr.bf16.gmra.mrb[84].mxu0 %v7934_v40  ;;  %v887_v40 = vor.u32 %v886_v15, %v882_v55 }
 0x137   : > { %1885 = vmatprep.mubr.bf16.mxu0 %v7939_v13 }
 0x138   : > { %2039 = vmatmul.mubr.bf16.gmra.mrb[84].mxu1 %v7938_v30 }
 0x139   : > { %2046 = vmatprep.mubr.bf16.mxu1 %v7940_v11 }
 0x13e   : > { %1886 = vmatmul.mubr.bf16.gmra.mrb[88].mxu0 %v7937_v53 }
 0x13f   : > { %1893 = vmatprep.mubr.bf16.mxu0 %v6654_v56 }
 0x140   : > { %2047 = vmatmul.mubr.bf16.gmra.mrb[88].mxu1 %v6491_v12 }
 0x141   : > { %2054 = vmatprep.mubr.bf16.mxu1 %v6658_v48 }
 0x146   : > { %1894 = vmatmul.mubr.bf16.gmra.mrb[92].mxu0 %v7940_v11 }
 0x147   : > { %1901 = vmatprep.mubr.bf16.mxu0 %v6674_v19 }
 0x148   : > { %2055 = vmatmul.mubr.bf16.gmra.mrb[92].mxu1 %v6532_v43 }
 0x149   : > { %2062 = vmatprep.mubr.bf16.mxu1 %v6677_v49 }
 0x14e   : > { %1902 = vmatmul.mubr.bf16.gmra.mrb[96].mxu0 %v6658_v48 }
 0x14f   : > { %1909 = vmatprep.mubr.bf16.mxu0 %v6686_v42 }
 0x150   : > { %2063 = vmatmul.mubr.bf16.gmra.mrb[96].mxu1 %v6563_v26  ;;  %v6806_v26 = vld [vmem:[%s7875_s2] ss:$0 sm:$0xff] }
 0x151   : > { %2070 = vmatprep.mubr.bf16.mxu1 %v6689_v32 }
 0x156   : > { %1910 = vmatmul.mubr.bf16.gmra.mrb[100].mxu0 %v6677_v49 }
 0x157   : > { %1917 = vmatprep.mubr.bf16.mxu0 %v6701_v22 }
 0x158   : > { %2071 = vmatmul.mubr.bf16.gmra.mrb[100].mxu1 %v6575_v50 }
 0x159   : > { %2078 = vmatprep.mubr.bf16.mxu1 %v6704_v47 }
 0x15e   : > { %1918 = vmatmul.mubr.bf16.gmra.mrb[104].mxu0 %v6689_v32 }
 0x15f   : > { %1925 = vmatprep.mubr.bf16.mxu0 %v6713_v33 }
 0x160   : > { %2079 = vmatmul.mubr.bf16.gmra.mrb[104].mxu1 %v6587_v1 }
 0x161   : > { %v4636_v9 = vpop.f32.mrb[0].mxu0  ;;  %2086 = vmatprep.mubr.bf16.mxu1 %v6716_v4 }
 0x162   : > { %v4637_v12 = vpop.f32.mrb[1].mxu0 }
 0x163   : > { %v4638_v43 = vadd.f32 %v4637_v12, %v4636_v9  ;;  %v4639_v16 = vpop.f32.mrb[2].mxu0  ;;  %v4748_v49 = vpop.f32.mrb[0].mxu1 }
 0x164   : > { %v4640_v63 = vpop.f32.mrb[3].mxu0  ;;  %v4749_v58 = vpop.f32.mrb[1].mxu1 }
 0x165   : > { %v4641_v48 = vadd.f32 %v4640_v63, %v4639_v16  ;;  %v1518_v50 = vadd.f32 %v4638_v43, %v6806_v26  ;;  %v4750_v24 = vadd.f32 %v4749_v58, %v4748_v49  ;;  %v4751_v35 = vpop.f32.mrb[2].mxu1  ;;  %v892_v49 = vsel %vm575_vm3, %v887_v40, %v891_v51  ;;  %v5820_v58 = vld [vmem:[#allocation7 + $0x40] sm:$0xff]  }
 0x166   : > { %v4752_v32 = vpop.f32.mrb[3].mxu1  ;;  %1926 = vmatmul.mubr.bf16.gmra.mrb[108].mxu0 %v6704_v47  ;;  %5092 = vmatprep.subr.bf16.mxu1 %v5820_v58 }
 0x167   : > { %v1521_v14 = vadd.f32 %v4641_v48, %v6806_v26  ;;  %v4753_v27 = vadd.f32 %v4752_v32, %v4751_v35  ;;  %v6813_v1 = vadd.f32 %v4750_v24, %v1518_v50  ;;  %1933 = vmatprep.mubr.bf16.mxu0 %v6726_v41 }
 0x168   : > { %2087 = vmatmul.mubr.bf16.gmra.mrb[108].mxu1 %v6605_v20 }
 0x169   : > { %2094 = vmatprep.mubr.bf16.mxu1 %v6729_v37  ;;  %v6818_v5 = vadd.f32 %v4753_v27, %v1521_v14  ;;  %v4642_v34 = vpop.f32.mrb[4].mxu0  ;;  %v5821_v14 = vld [vmem:[#allocation7] sm:$0xff]   ;;  %v896_v27 = vrot.slane %v6745_v59, 1 }
 0x16a   : > { %v4643_v45 = vpop.f32.mrb[5].mxu0  ;;  %5093 = vmatpush3.bf16.msra.mxu1 %v5821_v14 }
 0x16b   : > { %v4754_v18 = vpop.f32.mrb[4].mxu1  ;;  %v4644_v47 = vadd.f32 %v4643_v45, %v4642_v34  ;;  %v4645_v8 = vpop.f32.mrb[6].mxu0  ;;  %v897_v34 = vrot.slane %v574_v46, 1 }
 0x16c   : > { %v4755_v10 = vpop.f32.mrb[5].mxu1  ;;  %v4646_v52 = vpop.f32.mrb[7].mxu0 }
 0x16d   : > { %v4756_v20 = vadd.f32 %v4755_v10, %v4754_v18  ;;  %v4757_v31 = vpop.f32.mrb[6].mxu1  ;;  %v1526_v28 = vadd.f32 %v4644_v47, %v6806_v26  ;;  %v4647_v61 = vadd.f32 %v4646_v52, %v4645_v8 }
 0x16e   : > { %v4758_v23 = vpop.f32.mrb[7].mxu1  ;;  %1934 = vmatmul.mubr.bf16.gmra.mrb[112].mxu0 %v6716_v4 }
 0x16f   : > { %v4759_v38 = vadd.f32 %v4758_v23, %v4757_v31  ;;  %v1529_v25 = vadd.f32 %v4647_v61, %v6806_v26  ;;  %1941 = vmatprep.mubr.bf16.mxu0 %v6738_v21  ;;  %v6830_v54 = vadd.f32 %v4756_v20, %v1526_v28  ;;  %v6847_v31 = vsel %vm816_vm4, %v896_v27, %v897_v34 }
 0x170   : > { %2095 = vmatmul.mubr.bf16.gmra.mrb[112].mxu1 %v6624_v62 }
 0x171   : > { %2102 = vmatprep.mubr.bf16.mxu1 %v6741_v36  ;;  %v4648_v39 = vpop.f32.mrb[8].mxu0  ;;  %v6833_v53 = vadd.f32 %v4759_v38, %v1529_v25 }
 0x172   : > { %v4649_v30 = vpop.f32.mrb[9].mxu0 }
 0x173   : > { %v4760_v11 = vpop.f32.mrb[8].mxu1  ;;  %v4650_v9 = vadd.f32 %v4649_v30, %v4648_v39  ;;  %v4651_v12 = vpop.f32.mrb[10].mxu0 }
 0x174   : > { %v4761_v4 = vpop.f32.mrb[9].mxu1  ;;  %v4652_v43 = vpop.f32.mrb[11].mxu0 }
 0x175   : > { %v4762_v16 = vadd.f32 %v4761_v4, %v4760_v11  ;;  %v4763_v63 = vpop.f32.mrb[10].mxu1  ;;  %v1534_v62 = vadd.f32 %v4650_v9, %v6806_v26  ;;  %v4653_v48 = vadd.f32 %v4652_v43, %v4651_v12 }
 0x176   : > { %v4764_v50 = vpop.f32.mrb[11].mxu1  ;;  %1942 = vmatmul.mubr.bf16.gmra.mrb[116].mxu0 %v6729_v37 }
 0x177   : > { %v4765_v24 = vadd.f32 %v4764_v50, %v4763_v63  ;;  %v1537_v35 = vadd.f32 %v4653_v48, %v6806_v26  ;;  %1949 = vmatprep.mubr.bf16.mxu0 %v6754_v57  ;;  %v6841_v32 = vadd.f32 %v4762_v16, %v1534_v62  ;;  %v5822_v16 = vld [vmem:[#allocation7 + $0x48] sm:$0xff]   ;;  %v7942_v50 = vld [vmem:[#allocation12_spill] sm:$0xff] }
 0x178   : > { %2103 = vmatmul.mubr.bf16.gmra.mrb[116].mxu1 %v6663_v3  ;;  %v5823_v63 = vld [vmem:[#allocation7 + $0x8] sm:$0xff]   ;;  %5094 = vmatprep.subr.bf16.mxu1 %v5822_v16 }
 0x179   : > { %2110 = vmatprep.mubr.bf16.mxu1 %v892_v49  ;;  %v4654_v0 = vpop.f32.mrb[12].mxu0  ;;  %v6844_v45 = vadd.f32 %v4765_v24, %v1537_v35  ;;  %5095 = vmatpush3.bf16.msra.mxu1 %v5823_v63 }
 0x17a   : > { %v4655_v18 = vpop.f32.mrb[13].mxu0 }
 0x17b   : > { %v4766_v47 = vpop.f32.mrb[12].mxu1  ;;  %v4656_v37 = vadd.f32 %v4655_v18, %v4654_v0  ;;  %v4657_v8 = vpop.f32.mrb[14].mxu0 }
 0x17c   : > { %v4767_v10 = vpop.f32.mrb[13].mxu1  ;;  %v4658_v52 = vpop.f32.mrb[15].mxu0 }
 0x17d   : > { %v4768_v3 = vadd.f32 %v4767_v10, %v4766_v47  ;;  %v4769_v20 = vpop.f32.mrb[14].mxu1  ;;  %v1542_v55 = vadd.f32 %v4656_v37, %v6806_v26  ;;  %v4659_v28 = vadd.f32 %v4658_v52, %v4657_v8 }
 0x17e   : > { %v4770_v46 = vpop.f32.mrb[15].mxu1  ;;  %1950 = vmatmul.mubr.bf16.gmra.mrb[120].mxu0 %v6741_v36 }
 0x17f   : > { %v4771_v61 = vadd.f32 %v4770_v46, %v4769_v20  ;;  %v1545_v23 = vadd.f32 %v4659_v28, %v6806_v26  ;;  %1957 = vmatprep.mubr.bf16.mxu0 %v6847_v31  ;;  %v6854_v15 = vadd.f32 %v4768_v3, %v1542_v55 }
 0x180   : > { %2111 = vmatmul.mubr.bf16.gmra.mrb[120].mxu1 %v6745_v59 }
 0x181   : > { %2118 = vmatprep.mubr.bf16.mxu1 %v7941_v17  ;;  %v4660_v38 = vpop.f32.mrb[16].mxu0  ;;  %v6857_v25 = vadd.f32 %v4771_v61, %v1545_v23 }
 0x182   : > { %v4661_v39 = vpop.f32.mrb[17].mxu0 }
 0x183   : > { %v4772_v40 = vpop.f32.mrb[16].mxu1  ;;  %v4662_v51 = vadd.f32 %v4661_v39, %v4660_v38  ;;  %v4663_v30 = vpop.f32.mrb[18].mxu0 }
 0x184   : > { %v4773_v11 = vpop.f32.mrb[17].mxu1  ;;  %v4664_v9 = vpop.f32.mrb[19].mxu0 }
 0x185   : > { %v4774_v36 = vadd.f32 %v4773_v11, %v4772_v40  ;;  %v4775_v12 = vpop.f32.mrb[18].mxu1  ;;  %v1550_v4 = vadd.f32 %v4662_v51, %v6806_v26  ;;  %v4665_v59 = vadd.f32 %v4664_v9, %v4663_v30 }
 0x186   : > { %v4776_v43 = vpop.f32.mrb[19].mxu1  ;;  %1958 = vmatmul.mubr.bf16.gmra.mrb[124].mxu0 %v892_v49 }
 0x187   : > { %v4777_v62 = vadd.f32 %v4776_v43, %v4775_v12  ;;  %v1553_v48 = vadd.f32 %v4665_v59, %v6806_v26  ;;  %5580 = vmatprep.mubr.bf16.mxu0 %v6409_v6  ;;  %v6863_v58 = vadd.f32 %v4774_v36, %v1550_v4  ;;  %v5824_v36 = vld [vmem:[#allocation7 + $0x50] sm:$0xff]  }
 0x188   : > { %2119 = vmatmul.mubr.bf16.gmra.mrb[124].mxu1 %v7942_v50  ;;  %v5825_v12 = vld [vmem:[#allocation7 + $0x10] sm:$0xff]   ;;  %5096 = vmatprep.subr.bf16.mxu1 %v5824_v36 }
 0x189   : > { %3431 = vmatprep.mubr.bf16.mxu1 %v7941_v17  ;;  %v4666_v14 = vpop.f32.mrb[20].mxu0  ;;  %v6866_v24 = vadd.f32 %v4777_v62, %v1553_v48  ;;  %5097 = vmatpush3.bf16.msra.mxu1 %v5825_v12 }
 0x18a   : > { %v4667_v35 = vpop.f32.mrb[21].mxu0 }
 0x18b   : > { %v4778_v27 = vpop.f32.mrb[20].mxu1  ;;  %v4668_v34 = vadd.f32 %v4667_v35, %v4666_v14  ;;  %v4669_v0 = vpop.f32.mrb[22].mxu0 }
 0x18c   : > { %v4779_v49 = vpop.f32.mrb[21].mxu1  ;;  %v4670_v18 = vpop.f32.mrb[23].mxu0 }
 0x18d   : > { %v4780_v47 = vadd.f32 %v4779_v49, %v4778_v27  ;;  %v4781_v37 = vpop.f32.mrb[22].mxu1  ;;  %v1558_v8 = vadd.f32 %v4668_v34, %v6806_v26  ;;  %v4671_v6 = vadd.f32 %v4670_v18, %v4669_v0 }
 0x18e   : > { %v4782_v10 = vpop.f32.mrb[23].mxu1  ;;  %5581 = vmatmul.mubr.bf16.vlgmr.msra.gmra.mrb[128].mxu0 %v6435_v29 }
 0x18f   : > { %v4783_v52 = vadd.f32 %v4782_v10, %v4781_v37  ;;  %v1561_v3 = vadd.f32 %v4671_v6, %v6806_v26  ;;  %5584 = vmatprep.mubr.bf16.mxu0 %v6475_v60  ;;  %v6872_v20 = vadd.f32 %v4780_v47, %v1558_v8 }
 0x191   : > { %v4672_v55 = vpop.f32.mrb[24].mxu0  ;;  %v6874_v28 = vadd.f32 %v4783_v52, %v1561_v3 }
 0x192   : > { %v4673_v46 = vpop.f32.mrb[25].mxu0 }
 0x193   : > { %v4784_v61 = vpop.f32.mrb[24].mxu1  ;;  %v4674_v23 = vadd.f32 %v4673_v46, %v4672_v55  ;;  %v4675_v38 = vpop.f32.mrb[26].mxu0 }
 0x194   : > { %v4785_v39 = vpop.f32.mrb[25].mxu1  ;;  %v4676_v40 = vpop.f32.mrb[27].mxu0 }
 0x195   : > { %v4786_v51 = vadd.f32 %v4785_v39, %v4784_v61  ;;  %v4787_v30 = vpop.f32.mrb[26].mxu1  ;;  %v1566_v11 = vadd.f32 %v4674_v23, %v6806_v26  ;;  %v4677_v29 = vadd.f32 %v4676_v40, %v4675_v38 }
 0x196   : > { %v4788_v9 = vpop.f32.mrb[27].mxu1  ;;  %5585 = vmatmul.mubr.bf16.gmra.mrb[132].mxu0 %v7933_v44 }
 0x197   : > { %v4789_v60 = vadd.f32 %v4788_v9, %v4787_v30  ;;  %v1569_v4 = vadd.f32 %v4677_v29, %v6806_v26  ;;  %5588 = vmatprep.mubr.bf16.mxu0 %v7936_v7  ;;  %v6880_v59 = vadd.f32 %v4786_v51, %v1566_v11  ;;  %v5826_v51 = vld [vmem:[#allocation7 + $0x58] sm:$0xff]  }
 0x198   : > { %v5827_v30 = vld [vmem:[#allocation7 + $0x18] sm:$0xff]   ;;  %5098 = vmatprep.subr.bf16.mxu1 %v5826_v51 }
 0x199   : > { %v4678_v43 = vpop.f32.mrb[28].mxu0  ;;  %v6882_v16 = vadd.f32 %v4789_v60, %v1569_v4  ;;  %5099 = vmatpush3.bf16.msra.mxu1 %v5827_v30 }
 0x19a   : > { %v4679_v63 = vpop.f32.mrb[29].mxu0 }
 0x19b   : > { %v4790_v62 = vpop.f32.mrb[28].mxu1  ;;  %v4680_v48 = vadd.f32 %v4679_v63, %v4678_v43  ;;  %v4681_v14 = vpop.f32.mrb[30].mxu0 }
 0x19c   : > { %v4791_v35 = vpop.f32.mrb[29].mxu1  ;;  %v4682_v27 = vpop.f32.mrb[31].mxu0 }
 0x19d   : > { %v4792_v34 = vadd.f32 %v4791_v35, %v4790_v62  ;;  %v4793_v0 = vpop.f32.mrb[30].mxu1  ;;  %v1574_v44 = vadd.f32 %v4680_v48, %v6806_v26  ;;  %v4683_v49 = vadd.f32 %v4682_v27, %v4681_v14 }
 0x19e   : > { %v4794_v18 = vpop.f32.mrb[31].mxu1  ;;  %5589 = vmatmul.mubr.bf16.gmra.mrb[136].mxu0 %v7939_v13 }
 0x19f   : > { %v4795_v7 = vadd.f32 %v4794_v18, %v4793_v0  ;;  %v1577_v47 = vadd.f32 %v4683_v49, %v6806_v26  ;;  %5592 = vmatprep.mubr.bf16.mxu0 %v6654_v56  ;;  %v6888_v37 = vadd.f32 %v4792_v34, %v1574_v44 }
 0x1a1   : > { %v4684_v8 = vpop.f32.mrb[32].mxu0  ;;  %v6890_v6 = vadd.f32 %v4795_v7, %v1577_v47 }
 0x1a2   : > { %v4685_v10 = vpop.f32.mrb[33].mxu0 }
 0x1a3   : > { %v4796_v52 = vpop.f32.mrb[32].mxu1  ;;  %v4686_v3 = vadd.f32 %v4685_v10, %v4684_v8  ;;  %v4687_v55 = vpop.f32.mrb[34].mxu0 }
 0x1a4   : > { %v4797_v46 = vpop.f32.mrb[33].mxu1  ;;  %v4688_v61 = vpop.f32.mrb[35].mxu0 }
 0x1a5   : > { %v4798_v23 = vadd.f32 %v4797_v46, %v4796_v52  ;;  %v4799_v38 = vpop.f32.mrb[34].mxu1  ;;  %v1582_v39 = vadd.f32 %v4686_v3, %v6806_v26  ;;  %v4689_v13 = vadd.f32 %v4688_v61, %v4687_v55 }
 0x1a6   : > { %v4800_v40 = vpop.f32.mrb[35].mxu1  ;;  %5593 = vmatmul.mubr.bf16.gmra.mrb[140].mxu0 %v6674_v19 }
 0x1a7   : > { %v4801_v56 = vadd.f32 %v4800_v40, %v4799_v38  ;;  %v1585_v11 = vadd.f32 %v4689_v13, %v6806_v26  ;;  %v6895_v29 = vadd.f32 %v4798_v23, %v1582_v39  ;;  %5596 = vmatprep.mubr.bf16.mxu0 %v6686_v42  ;;  %v5828_v23 = vld [vmem:[#allocation7 + $0x60] sm:$0xff]  }
 0x1a8   : > { %v5829_v38 = vld [vmem:[#allocation7 + $0x20] sm:$0xff]   ;;  %5100 = vmatprep.subr.bf16.mxu1 %v5828_v23 }
 0x1a9   : > { %v6898_v9 = vadd.f32 %v4801_v56, %v1585_v11  ;;  %v4690_v36 = vpop.f32.mrb[36].mxu0  ;;  %5101 = vmatpush3.bf16.msra.mxu1 %v5829_v38 }
 0x1aa   : > { %v4691_v12 = vpop.f32.mrb[37].mxu0 }
 0x1ab   : > { %v4802_v60 = vpop.f32.mrb[36].mxu1  ;;  %v4692_v4 = vadd.f32 %v4691_v12, %v4690_v36  ;;  %v4693_v43 = vpop.f32.mrb[38].mxu0 }
 0x1ac   : > { %v4803_v63 = vpop.f32.mrb[37].mxu1  ;;  %v4694_v62 = vpop.f32.mrb[39].mxu0 }
 0x1ad   : > { %v4804_v48 = vadd.f32 %v4803_v63, %v4802_v60  ;;  %v4805_v14 = vpop.f32.mrb[38].mxu1  ;;  %v1590_v19 = vadd.f32 %v4692_v4, %v6806_v26  ;;  %v4695_v35 = vadd.f32 %v4694_v62, %v4693_v43 }
 0x1ae   : > { %v4806_v27 = vpop.f32.mrb[39].mxu1  ;;  %5597 = vmatmul.mubr.bf16.gmra.mrb[144].mxu0 %v6701_v22 }
 0x1af   : > { %v4807_v34 = vadd.f32 %v4806_v27, %v4805_v14  ;;  %v1593_v42 = vadd.f32 %v4695_v35, %v6806_v26  ;;  %v6903_v0 = vadd.f32 %v4804_v48, %v1590_v19  ;;  %5600 = vmatprep.mubr.bf16.mxu0 %v6713_v33 }
 0x1b1   : > { %v6906_v44 = vadd.f32 %v4807_v34, %v1593_v42  ;;  %v4696_v49 = vpop.f32.mrb[40].mxu0 }
 0x1b2   : > { %v4697_v18 = vpop.f32.mrb[41].mxu0 }
 0x1b3   : > { %v4808_v7 = vpop.f32.mrb[40].mxu1  ;;  %v4698_v47 = vadd.f32 %v4697_v18, %v4696_v49  ;;  %v4699_v8 = vpop.f32.mrb[42].mxu0 }
 0x1b4   : > { %v4809_v10 = vpop.f32.mrb[41].mxu1  ;;  %v4700_v52 = vpop.f32.mrb[43].mxu0 }
 0x1b5   : > { %v4810_v3 = vadd.f32 %v4809_v10, %v4808_v7  ;;  %v4811_v55 = vpop.f32.mrb[42].mxu1  ;;  %v1598_v46 = vadd.f32 %v4698_v47, %v6806_v26  ;;  %v4701_v22 = vadd.f32 %v4700_v52, %v4699_v8 }
 0x1b6   : > { %v4812_v61 = vpop.f32.mrb[43].mxu1  ;;  %5601 = vmatmul.mubr.bf16.gmra.mrb[148].mxu0 %v6726_v41 }
 0x1b7   : > { %v4813_v39 = vadd.f32 %v4812_v61, %v4811_v55  ;;  %v1601_v33 = vadd.f32 %v4701_v22, %v6806_v26  ;;  %v6911_v13 = vadd.f32 %v4810_v3, %v1598_v46  ;;  %5604 = vmatprep.mubr.bf16.mxu0 %v6738_v21  ;;  %v5830_v3 = vld [vmem:[#allocation7 + $0x68] sm:$0xff]   ;;  %v7943_v22 = vld [vmem:[#allocation14_spill] sm:$0xff] }
 0x1b8   : > { %v5831_v55 = vld [vmem:[#allocation7 + $0x28] sm:$0xff]   ;;  %5102 = vmatprep.subr.bf16.mxu1 %v5830_v3 }
 0x1b9   : > { %v6914_v40 = vadd.f32 %v4813_v39, %v1601_v33  ;;  %v4702_v51 = vpop.f32.mrb[44].mxu0  ;;  %5103 = vmatpush3.bf16.msra.mxu1 %v5831_v55  ;;  %v5832_v55 = vld [vmem:[#allocation7 + $0x70] sm:$0xff]  }
 0x1ba   : > { %v4703_v30 = vpop.f32.mrb[45].mxu0  ;;  %5104 = vmatprep.subr.bf16.mxu1 %v5832_v55 }
 0x1bb   : > { %v4814_v56 = vpop.f32.mrb[44].mxu1  ;;  %v4704_v11 = vadd.f32 %v4703_v30, %v4702_v51  ;;  %v4705_v36 = vpop.f32.mrb[46].mxu0 }
 0x1bc   : > { %v4815_v12 = vpop.f32.mrb[45].mxu1  ;;  %v4706_v60 = vpop.f32.mrb[47].mxu0 }
 0x1bd   : > { %v4816_v4 = vadd.f32 %v4815_v12, %v4814_v56  ;;  %v4817_v43 = vpop.f32.mrb[46].mxu1  ;;  %v1606_v41 = vadd.f32 %v4704_v11, %v6806_v26  ;;  %v4707_v63 = vadd.f32 %v4706_v60, %v4705_v36 }
 0x1be   : > { %v4818_v62 = vpop.f32.mrb[47].mxu1  ;;  %5605 = vmatmul.mubr.bf16.gmra.mrb[152].mxu0 %v6754_v57 }
 0x1bf   : > { %v4819_v48 = vadd.f32 %v4818_v62, %v4817_v43  ;;  %v1609_v21 = vadd.f32 %v4707_v63, %v6806_v26  ;;  %v6919_v14 = vadd.f32 %v4816_v4, %v1606_v41  ;;  %5608 = vmatprep.mubr.bf16.mxu0 %v6847_v31 }
 0x1c1   : > { %v6922_v19 = vadd.f32 %v4819_v48, %v1609_v21  ;;  %v4708_v35 = vpop.f32.mrb[48].mxu0 }
 0x1c2   : > { %v4709_v27 = vpop.f32.mrb[49].mxu0 }
 0x1c3   : > { %v4820_v34 = vpop.f32.mrb[48].mxu1  ;;  %v4710_v42 = vadd.f32 %v4709_v27, %v4708_v35  ;;  %v4711_v49 = vpop.f32.mrb[50].mxu0  ;;  %v5834_v35 = vld [vmem:[#allocation7 + $0xc0] sm:$0xff]  }
 0x1c4   : > { %v4821_v18 = vpop.f32.mrb[49].mxu1  ;;  %v4712_v7 = vpop.f32.mrb[51].mxu0  ;;  %5204 = vmatprep.subr.bf16.mxu0 %v5834_v35 }
 0x1c5   : > { %v4822_v47 = vadd.f32 %v4821_v18, %v4820_v34  ;;  %v4823_v8 = vpop.f32.mrb[50].mxu1  ;;  %v1614_v10 = vadd.f32 %v4710_v42, %v6806_v26  ;;  %v4713_v57 = vadd.f32 %v4712_v7, %v4711_v49  ;;  %v5835_v42 = vld [vmem:[#allocation7 + $0x80] sm:$0xff]  }
 0x1c6   : > { %v4824_v52 = vpop.f32.mrb[51].mxu1  ;;  %5609 = vmatmul.mubr.bf16.gmra.mrb[156].mxu0 %v7943_v22 }
 0x1c7   : > { %v4825_v46 = vadd.f32 %v4824_v52, %v4823_v8  ;;  %v1617_v31 = vadd.f32 %v4713_v57, %v6806_v26  ;;  %v6927_v61 = vadd.f32 %v4822_v47, %v1614_v10  ;;  %5205 = vmatpush3.bf16.msra.mxu0 %v5835_v42 }
 0x1c9   : > { %v6929_v23 = vadd.f32 %v4825_v46, %v1617_v31  ;;  %v4714_v38 = vpop.f32.mrb[52].mxu0  ;;  %v5833_v46 = vld [vmem:[#allocation7 + $0x30] sm:$0xff]   ;;  %v5836_v31 = vld [vmem:[#allocation7 + $0xc8] sm:$0xff]  }
 0x1ca   : > { %v4715_v39 = vpop.f32.mrb[53].mxu0  ;;  %5206 = vmatprep.subr.bf16.mxu0 %v5836_v31  ;;  %5105 = vmatpush3.bf16.msra.mxu1 %v5833_v46  ;;  %v5845_v46 = vld [vmem:[#allocation7 + $0xa0] sm:$0xff]  }
 0x1cb   : > { %v4826_v33 = vpop.f32.mrb[52].mxu1  ;;  %v4716_v51 = vadd.f32 %v4715_v39, %v4714_v38  ;;  %v4717_v30 = vpop.f32.mrb[54].mxu0  ;;  %v5837_v39 = vld [vmem:[#allocation7 + $0x88] sm:$0xff]  }
 0x1cc   : > { %v4827_v56 = vpop.f32.mrb[53].mxu1  ;;  %v4718_v11 = vpop.f32.mrb[55].mxu0  ;;  %5207 = vmatpush3.bf16.msra.mxu0 %v5837_v39 }
 0x1cd   : > { %v4828_v36 = vadd.f32 %v4827_v56, %v4826_v33  ;;  %v4829_v12 = vpop.f32.mrb[54].mxu1  ;;  %v1622_v60 = vadd.f32 %v4716_v51, %v6806_v26  ;;  %v4719_v4 = vadd.f32 %v4718_v11, %v4717_v30  ;;  %v5838_v11 = vld [vmem:[#allocation7 + $0xd0] sm:$0xff]  }
 0x1ce   : > { %v4830_v43 = vpop.f32.mrb[55].mxu1  ;;  %5208 = vmatprep.subr.bf16.mxu0 %v5838_v11 }
 0x1cf   : > { %v4831_v41 = vadd.f32 %v4830_v43, %v4829_v12  ;;  %v1625_v63 = vadd.f32 %v4719_v4, %v6806_v26  ;;  %v6933_v62 = vadd.f32 %v4828_v36, %v1622_v60  ;;  %v5839_v60 = vld [vmem:[#allocation7 + $0x90] sm:$0xff]  }
 0x1d0   : > { %5209 = vmatpush3.bf16.msra.mxu0 %v5839_v60  ;;  %v5842_v60 = vld [vmem:[#allocation7 + $0x78] sm:$0xff]  }
 0x1d1   : > { %v6935_v48 = vadd.f32 %v4831_v41, %v1625_v63  ;;  %v4720_v21 = vpop.f32.mrb[56].mxu0  ;;  %5106 = vmatprep.subr.bf16.mxu1 %v5842_v60 }
 0x1d2   : > { %v4721_v27 = vpop.f32.mrb[57].mxu0 }
 0x1d3   : > { %v4832_v34 = vpop.f32.mrb[56].mxu1  ;;  %v4722_v49 = vadd.f32 %v4721_v27, %v4720_v21  ;;  %v4723_v18 = vpop.f32.mrb[58].mxu0 }
 0x1d4   : > { %v4833_v7 = vpop.f32.mrb[57].mxu1  ;;  %v4724_v47 = vpop.f32.mrb[59].mxu0 }
 0x1d5   : > { %v4834_v8 = vadd.f32 %v4833_v7, %v4832_v34  ;;  %v4835_v10 = vpop.f32.mrb[58].mxu1  ;;  %v1630_v57 = vadd.f32 %v4722_v49, %v6806_v26  ;;  %v4725_v52 = vadd.f32 %v4724_v47, %v4723_v18  ;;  %v5840_v49 = vld [vmem:[#allocation7 + $0xd8] sm:$0xff]  }
 0x1d6   : > { %v4836_v3 = vpop.f32.mrb[59].mxu1  ;;  %v5841_v7 = vld [vmem:[#allocation7 + $0x98] sm:$0xff]   ;;  %5210 = vmatprep.subr.bf16.mxu0 %v5840_v49 }
 0x1d7   : > { %v4837_v38 = vadd.f32 %v4836_v3, %v4835_v10  ;;  %v1633_v33 = vadd.f32 %v4725_v52, %v6806_v26  ;;  %v6939_v51 = vadd.f32 %v4834_v8, %v1630_v57  ;;  %5211 = vmatpush3.bf16.msra.mxu0 %v5841_v7  ;;  %v5844_v52 = vld [vmem:[#allocation7 + $0xe0] sm:$0xff]  }
 0x1d8   : > { %5212 = vmatprep.subr.bf16.mxu0 %v5844_v52 }
 0x1d9   : > { %v6941_v30 = vadd.f32 %v4837_v38, %v1633_v33  ;;  %v4726_v56 = vpop.f32.mrb[60].mxu0 }
 0x1da   : > { %v4727_v36 = vpop.f32.mrb[61].mxu0 }
 0x1db   : > { %v4838_v12 = vpop.f32.mrb[60].mxu1  ;;  %v4728_v4 = vadd.f32 %v4727_v36, %v4726_v56  ;;  %v4729_v43 = vpop.f32.mrb[62].mxu0  ;;  %5213 = vmatpush3.bf16.msra.mxu0 %v5845_v46 }
 0x1dc   : > { %v4839_v41 = vpop.f32.mrb[61].mxu1  ;;  %v4730_v63 = vpop.f32.mrb[63].mxu0 }
 0x1dd   : > { %v4840_v21 = vadd.f32 %v4839_v41, %v4838_v12  ;;  %v4841_v35 = vpop.f32.mrb[62].mxu1  ;;  %v1638_v27 = vadd.f32 %v4728_v4, %v6806_v26  ;;  %v4731_v34 = vadd.f32 %v4730_v63, %v4729_v43  ;;  %v5846_v4 = vld [vmem:[#allocation7 + $0xe8] sm:$0xff]  }
 0x1de   : > { %v4842_v42 = vpop.f32.mrb[63].mxu1  ;;  %v5847_v41 = vld [vmem:[#allocation7 + $0xa8] sm:$0xff]   ;;  %5214 = vmatprep.subr.bf16.mxu0 %v5846_v4 }
 0x1df   : > { %v4843_v18 = vadd.f32 %v4842_v42, %v4841_v35  ;;  %v1641_v47 = vadd.f32 %v4731_v34, %v6806_v26  ;;  %v6945_v8 = vadd.f32 %v4840_v21, %v1638_v27  ;;  %5215 = vmatpush3.bf16.msra.mxu0 %v5847_v41  ;;  %v5848_v34 = vld [vmem:[#allocation7 + $0xf0] sm:$0xff]  }
 0x1e0   : > { %5216 = vmatprep.subr.bf16.mxu0 %v5848_v34 }
 0x1e1   : > { %v6947_v10 = vadd.f32 %v4843_v18, %v1641_v47  ;;  %v4860_v57 = vpop.f32.mrb[64].mxu0  ;;  %v5849_v18 = vld [vmem:[#allocation7 + $0xb0] sm:$0xff]  }
 0x1e2   : > { %v4861_v3 = vpop.f32.mrb[65].mxu0 }
 0x1e3   : > { %v4972_v55 = vpop.f32.mrb[64].mxu1  ;;  %v4862_v31 = vadd.f32 %v4861_v3, %v4860_v57  ;;  %v4863_v38 = vpop.f32.mrb[66].mxu0  ;;  %5217 = vmatpush3.bf16.msra.mxu0 %v5849_v18 }
 0x1e4   : > { %v4973_v39 = vpop.f32.mrb[65].mxu1  ;;  %v4864_v33 = vpop.f32.mrb[67].mxu0 }
 0x1e5   : > { %v4974_v56 = vadd.f32 %v4973_v39, %v4972_v55  ;;  %v4975_v11 = vpop.f32.mrb[66].mxu1  ;;  %v1840_v26 = vadd.f32 %v4862_v31, %v6813_v1  ;;  %v4865_v36 = vadd.f32 %v4864_v33, %v4863_v38  ;;  %v5843_v1 = vld [vmem:[#allocation7 + $0x38] sm:$0xff]  }
 0x1e6   : > { %v4976_v12 = vpop.f32.mrb[67].mxu1  ;;  %5107 = vmatpush3.bf16.msra.mxu1 %v5843_v1  ;;  %v5850_v38 = vld [vmem:[#allocation7 + $0xf8] sm:$0xff]  }
 0x1e7   : > { %v4977_v43 = vadd.f32 %v4976_v12, %v4975_v11  ;;  %v1843_v63 = vadd.f32 %v4865_v36, %v6818_v5  ;;  %v6951_v21 = vadd.f32 %v4974_v56, %v1840_v26  ;;  %v5851_v33 = vld [vmem:[#allocation7 + $0xb8] sm:$0xff]   ;;  %5218 = vmatprep.subr.bf16.mxu0 %v5850_v38 }
 0x1e8   : > { %5219 = vmatpush3.bf16.msra.mxu0 %v5851_v33 }
 0x1e9   : > { %v4866_v35 = vpop.f32.mrb[68].mxu0  ;;  %v6953_v27 = vadd.f32 %v4977_v43, %v1843_v63  ;;  %3432 = vmatmul.mubr.bf16.vlgmr.msra.gmra.mrb[128].mxu1 %v7942_v50 }
 0x1ea   : > { %v4867_v42 = vpop.f32.mrb[69].mxu0 }
 0x1eb   : > { %v4978_v49 = vpop.f32.mrb[68].mxu1  ;;  %v4868_v7 = vadd.f32 %v4867_v42, %v4866_v35  ;;  %v4869_v47 = vpop.f32.mrb[70].mxu0 }
 0x1ec   : > { %v4979_v57 = vpop.f32.mrb[69].mxu1  ;;  %v4870_v52 = vpop.f32.mrb[71].mxu0 }
 0x1ed   : > { %v4980_v3 = vadd.f32 %v4979_v57, %v4978_v49  ;;  %v4981_v5 = vpop.f32.mrb[70].mxu1  ;;  %v1848_v55 = vadd.f32 %v4868_v7, %v6830_v54  ;;  %v4871_v46 = vadd.f32 %v4870_v52, %v4869_v47  ;;  %v5852_v7 = vld [vmem:[#allocation7 + $0x140] sm:$0xff]  }
 0x1ee   : > { %v4982_v31 = vpop.f32.mrb[71].mxu1  ;;  %5316 = vmatprep.subr.bf16.mxu1 %v5852_v7 }
 0x1ef   : > { %v4983_v39 = vadd.f32 %v4982_v31, %v4981_v5  ;;  %v1851_v56 = vadd.f32 %v4871_v46, %v6833_v53  ;;  %v6957_v11 = vadd.f32 %v4980_v3, %v1848_v55 }
 0x1f1   : > { %v4872_v26 = vpop.f32.mrb[72].mxu0  ;;  %v6960_v36 = vadd.f32 %v4983_v39, %v1851_v56 }
 0x1f2   : > { %v4873_v12 = vpop.f32.mrb[73].mxu0 }
 0x1f3   : > { %v4984_v60 = vpop.f32.mrb[72].mxu1  ;;  %v4874_v4 = vadd.f32 %v4873_v12, %v4872_v26  ;;  %v4875_v54 = vpop.f32.mrb[74].mxu0  ;;  %v5853_v26 = vld [vmem:[#allocation7 + $0x100] sm:$0xff]  }
 0x1f4   : > { %v4985_v43 = vpop.f32.mrb[73].mxu1  ;;  %v4876_v41 = vpop.f32.mrb[75].mxu0  ;;  %5317 = vmatpush3.bf16.msra.mxu1 %v5853_v26 }
 0x1f5   : > { %v4986_v63 = vadd.f32 %v4985_v43, %v4984_v60  ;;  %v4987_v35 = vpop.f32.mrb[74].mxu1  ;;  %v1856_v34 = vadd.f32 %v4874_v4, %v6841_v32  ;;  %v4877_v53 = vadd.f32 %v4876_v41, %v4875_v54 }
 0x1f6   : > { %v4988_v42 = vpop.f32.mrb[75].mxu1 }
 0x1f7   : > { %v4989_v49 = vadd.f32 %v4988_v42, %v4987_v35  ;;  %v1859_v1 = vadd.f32 %v4877_v53, %v6844_v45  ;;  %v6964_v18 = vadd.f32 %v4986_v63, %v1856_v34 }
 0x1f9   : > { %v4878_v47 = vpop.f32.mrb[76].mxu0  ;;  %v6966_v57 = vadd.f32 %v4989_v49, %v1859_v1 }
 0x1fa   : > { %v4879_v52 = vpop.f32.mrb[77].mxu0 }
 0x1fb   : > { %v4990_v3 = vpop.f32.mrb[76].mxu1  ;;  %v4880_v5 = vadd.f32 %v4879_v52, %v4878_v47  ;;  %v4881_v55 = vpop.f32.mrb[78].mxu0 }
 0x1fc   : > { %v4991_v46 = vpop.f32.mrb[77].mxu1  ;;  %v4882_v31 = vpop.f32.mrb[79].mxu0 }
 0x1fd   : > { %v4992_v38 = vadd.f32 %v4991_v46, %v4990_v3  ;;  %v4993_v32 = vpop.f32.mrb[78].mxu1  ;;  %v1864_v39 = vadd.f32 %v4880_v5, %v6854_v15  ;;  %v4883_v33 = vadd.f32 %v4882_v31, %v4881_v55  ;;  %v5854_v3 = vld [vmem:[#allocation7 + $0x148] sm:$0xff]  }
 0x1fe   : > { %v4994_v56 = vpop.f32.mrb[79].mxu1  ;;  %5318 = vmatprep.subr.bf16.mxu1 %v5854_v3 }
 0x1ff   : > { %v4995_v45 = vadd.f32 %v4994_v56, %v4993_v32  ;;  %v1867_v12 = vadd.f32 %v4883_v33, %v6857_v25  ;;  %v6970_v60 = vadd.f32 %v4992_v38, %v1864_v39 }
 0x201   : > { %v4884_v4 = vpop.f32.mrb[80].mxu0  ;;  %v6972_v54 = vadd.f32 %v4995_v45, %v1867_v12 }
 0x202   : > { %v4885_v43 = vpop.f32.mrb[81].mxu0 }
 0x203   : > { %v4996_v41 = vpop.f32.mrb[80].mxu1  ;;  %v4886_v63 = vadd.f32 %v4885_v43, %v4884_v4  ;;  %v4887_v35 = vpop.f32.mrb[82].mxu0  ;;  %v5855_v4 = vld [vmem:[#allocation7 + $0x108] sm:$0xff]  }
 0x204   : > { %v4997_v34 = vpop.f32.mrb[81].mxu1  ;;  %v4888_v53 = vpop.f32.mrb[83].mxu0  ;;  %5319 = vmatpush3.bf16.msra.mxu1 %v5855_v4 }
 0x205   : > { %v4998_v42 = vadd.f32 %v4997_v34, %v4996_v41  ;;  %v4999_v15 = vpop.f32.mrb[82].mxu1  ;;  %v1872_v49 = vadd.f32 %v4886_v63, %v6863_v58  ;;  %v4889_v1 = vadd.f32 %v4888_v53, %v4887_v35 }
 0x206   : > { %v5000_v7 = vpop.f32.mrb[83].mxu1 }
 0x207   : > { %v5001_v47 = vadd.f32 %v5000_v7, %v4999_v15  ;;  %v1875_v25 = vadd.f32 %v4889_v1, %v6866_v24  ;;  %v6976_v52 = vadd.f32 %v4998_v42, %v1872_v49 }
 0x209   : > { %v4890_v5 = vpop.f32.mrb[84].mxu0  ;;  %v6978_v55 = vadd.f32 %v5001_v47, %v1875_v25 }
 0x20a   : > { %v4891_v46 = vpop.f32.mrb[85].mxu0 }
 0x20b   : > { %v5002_v31 = vpop.f32.mrb[84].mxu1  ;;  %v4892_v38 = vadd.f32 %v4891_v46, %v4890_v5  ;;  %v4893_v32 = vpop.f32.mrb[86].mxu0 }
 0x20c   : > { %v5003_v39 = vpop.f32.mrb[85].mxu1  ;;  %v4894_v33 = vpop.f32.mrb[87].mxu0 }
 0x20d   : > { %v5004_v56 = vadd.f32 %v5003_v39, %v5002_v31  ;;  %v5005_v58 = vpop.f32.mrb[86].mxu1  ;;  %v1880_v45 = vadd.f32 %v4892_v38, %v6872_v20  ;;  %v4895_v26 = vadd.f32 %v4894_v33, %v4893_v32  ;;  %v5856_v31 = vld [vmem:[#allocation7 + $0x150] sm:$0xff]  }
 0x20e   : > { %v5006_v12 = vpop.f32.mrb[87].mxu1  ;;  %5320 = vmatprep.subr.bf16.mxu1 %v5856_v31 }
 0x20f   : > { %v5007_v24 = vadd.f32 %v5006_v12, %v5005_v58  ;;  %v1883_v43 = vadd.f32 %v4895_v26, %v6874_v28  ;;  %v6982_v41 = vadd.f32 %v5004_v56, %v1880_v45 }
 0x211   : > { %v4896_v63 = vpop.f32.mrb[88].mxu0  ;;  %v6984_v35 = vadd.f32 %v5007_v24, %v1883_v43 }
 0x212   : > { %v4897_v34 = vpop.f32.mrb[89].mxu0 }
 0x213   : > { %v5008_v53 = vpop.f32.mrb[88].mxu1  ;;  %v4898_v42 = vadd.f32 %v4897_v34, %v4896_v63  ;;  %v4899_v15 = vpop.f32.mrb[90].mxu0  ;;  %v5857_v63 = vld [vmem:[#allocation7 + $0x110] sm:$0xff]  }
 0x214   : > { %v5009_v49 = vpop.f32.mrb[89].mxu1  ;;  %v4900_v1 = vpop.f32.mrb[91].mxu0  ;;  %5321 = vmatpush3.bf16.msra.mxu1 %v5857_v63 }
 0x215   : > { %v5010_v7 = vadd.f32 %v5009_v49, %v5008_v53  ;;  %v5011_v20 = vpop.f32.mrb[90].mxu1  ;;  %v1888_v47 = vadd.f32 %v4898_v42, %v6880_v59  ;;  %v4901_v25 = vadd.f32 %v4900_v1, %v4899_v15 }
 0x216   : > { %v5012_v3 = vpop.f32.mrb[91].mxu1 }
 0x217   : > { %v5013_v5 = vadd.f32 %v5012_v3, %v5011_v20  ;;  %v1891_v28 = vadd.f32 %v4901_v25, %v6882_v16  ;;  %v6988_v46 = vadd.f32 %v5010_v7, %v1888_v47 }
 0x219   : > { %v4902_v38 = vpop.f32.mrb[92].mxu0  ;;  %v6990_v32 = vadd.f32 %v5013_v5, %v1891_v28 }
 0x21a   : > { %v4903_v39 = vpop.f32.mrb[93].mxu0 }
 0x21b   : > { %v5014_v33 = vpop.f32.mrb[92].mxu1  ;;  %v4904_v56 = vadd.f32 %v4903_v39, %v4902_v38  ;;  %v4905_v58 = vpop.f32.mrb[94].mxu0 }
 0x21c   : > { %v5015_v45 = vpop.f32.mrb[93].mxu1  ;;  %v4906_v26 = vpop.f32.mrb[95].mxu0 }
 0x21d   : > { %v5016_v12 = vadd.f32 %v5015_v45, %v5014_v33  ;;  %v5017_v59 = vpop.f32.mrb[94].mxu1  ;;  %v1896_v24 = vadd.f32 %v4904_v56, %v6888_v37  ;;  %v4907_v4 = vadd.f32 %v4906_v26, %v4905_v58  ;;  %v5858_v33 = vld [vmem:[#allocation7 + $0x158] sm:$0xff]  }
 0x21e   : > { %v5018_v43 = vpop.f32.mrb[95].mxu1  ;;  %v5859_v56 = vld [vmem:[#allocation7 + $0x118] sm:$0xff]   ;;  %5322 = vmatprep.subr.bf16.mxu1 %v5858_v33  ;;  %v5863_v33 = vld [vmem:[#allocation7 + $0x120] sm:$0xff]  }
 0x21f   : > { %v5019_v16 = vadd.f32 %v5018_v43, %v5017_v59  ;;  %v1899_v34 = vadd.f32 %v4907_v4, %v6890_v6  ;;  %v6994_v53 = vadd.f32 %v5016_v12, %v1896_v24  ;;  %5323 = vmatpush3.bf16.msra.mxu1 %v5859_v56 }
 0x221   : > { %v4908_v42 = vpop.f32.mrb[96].mxu0  ;;  %v6996_v15 = vadd.f32 %v5019_v16, %v1899_v34 }
 0x222   : > { %v4909_v49 = vpop.f32.mrb[97].mxu0 }
 0x223   : > { %v5020_v1 = vpop.f32.mrb[96].mxu1  ;;  %v4910_v7 = vadd.f32 %v4909_v49, %v4908_v42  ;;  %v4911_v20 = vpop.f32.mrb[98].mxu0  ;;  %v5860_v42 = vld [vmem:[#allocation7 + $0x1c0] sm:$0xff]  }
 0x224   : > { %v5021_v47 = vpop.f32.mrb[97].mxu1  ;;  %v4912_v25 = vpop.f32.mrb[99].mxu0  ;;  %5428 = vmatprep.subr.bf16.mxu0 %v5860_v42 }
 0x225   : > { %v5022_v3 = vadd.f32 %v5021_v47, %v5020_v1  ;;  %v5023_v37 = vpop.f32.mrb[98].mxu1  ;;  %v1904_v5 = vadd.f32 %v4910_v7, %v6895_v29  ;;  %v4913_v28 = vadd.f32 %v4912_v25, %v4911_v20 }
 0x226   : > { %v5024_v31 = vpop.f32.mrb[99].mxu1 }
 0x227   : > { %v5025_v38 = vadd.f32 %v5024_v31, %v5023_v37  ;;  %v1907_v6 = vadd.f32 %v4913_v28, %v6898_v9  ;;  %v7000_v39 = vadd.f32 %v5022_v3, %v1904_v5  ;;  %v5862_v31 = vld [vmem:[#allocation7 + $0x160] sm:$0xff]  }
 0x228   : > { %5324 = vmatprep.subr.bf16.mxu1 %v5862_v31 }
 0x229   : > { %v4914_v58 = vpop.f32.mrb[100].mxu0  ;;  %v7002_v45 = vadd.f32 %v5025_v38, %v1907_v6  ;;  %5325 = vmatpush3.bf16.msra.mxu1 %v5863_v33  ;;  %v5866_v33 = vld [vmem:[#allocation7 + $0x168] sm:$0xff]  }
 0x22a   : > { %v4915_v26 = vpop.f32.mrb[101].mxu0  ;;  %5326 = vmatprep.subr.bf16.mxu1 %v5866_v33 }
 0x22b   : > { %v5026_v12 = vpop.f32.mrb[100].mxu1  ;;  %v4916_v59 = vadd.f32 %v4915_v26, %v4914_v58  ;;  %v4917_v24 = vpop.f32.mrb[102].mxu0 }
 0x22c   : > { %v5027_v4 = vpop.f32.mrb[101].mxu1  ;;  %v4918_v29 = vpop.f32.mrb[103].mxu0 }
 0x22d   : > { %v5028_v43 = vadd.f32 %v5027_v4, %v5026_v12  ;;  %v5029_v16 = vpop.f32.mrb[102].mxu1  ;;  %v1912_v63 = vadd.f32 %v4916_v59, %v6903_v0  ;;  %v4919_v9 = vadd.f32 %v4918_v29, %v4917_v24 }
 0x22e   : > { %v5030_v34 = vpop.f32.mrb[103].mxu1 }
 0x22f   : > { %v5031_v49 = vadd.f32 %v5030_v34, %v5029_v16  ;;  %v1915_v1 = vadd.f32 %v4919_v9, %v6906_v44  ;;  %v7006_v7 = vadd.f32 %v5028_v43, %v1912_v63 }
 0x231   : > { %v4920_v20 = vpop.f32.mrb[104].mxu0  ;;  %v7008_v47 = vadd.f32 %v5031_v49, %v1915_v1 }
 0x232   : > { %v4921_v25 = vpop.f32.mrb[105].mxu0 }
 0x233   : > { %v5032_v3 = vpop.f32.mrb[104].mxu1  ;;  %v4922_v37 = vadd.f32 %v4921_v25, %v4920_v20  ;;  %v4923_v5 = vpop.f32.mrb[106].mxu0 }
 0x234   : > { %v5033_v28 = vpop.f32.mrb[105].mxu1  ;;  %v4924_v38 = vpop.f32.mrb[107].mxu0 }
 0x235   : > { %v5034_v0 = vadd.f32 %v5033_v28, %v5032_v3  ;;  %v5035_v6 = vpop.f32.mrb[106].mxu1  ;;  %v1920_v56 = vadd.f32 %v4922_v37, %v6911_v13  ;;  %v4925_v58 = vadd.f32 %v4924_v38, %v4923_v5 }
 0x236   : > { %v5036_v44 = vpop.f32.mrb[107].mxu1 }
 0x237   : > { %v5037_v26 = vadd.f32 %v5036_v44, %v5035_v6  ;;  %v1923_v12 = vadd.f32 %v4925_v58, %v6914_v40  ;;  %v7012_v59 = vadd.f32 %v5034_v0, %v1920_v56 }
 0x239   : > { %v4926_v24 = vpop.f32.mrb[108].mxu0  ;;  %v7014_v4 = vadd.f32 %v5037_v26, %v1923_v12 }
 0x23a   : > { %v4927_v29 = vpop.f32.mrb[109].mxu0 }
 0x23b   : > { %v5038_v43 = vpop.f32.mrb[108].mxu1  ;;  %v4928_v16 = vadd.f32 %v4927_v29, %v4926_v24  ;;  %v4929_v63 = vpop.f32.mrb[110].mxu0 }
 0x23c   : > { %v5039_v9 = vpop.f32.mrb[109].mxu1  ;;  %v4930_v34 = vpop.f32.mrb[111].mxu0 }
 0x23d   : > { %v5040_v42 = vadd.f32 %v5039_v9, %v5038_v43  ;;  %v5041_v13 = vpop.f32.mrb[110].mxu1  ;;  %v1928_v49 = vadd.f32 %v4928_v16, %v6919_v14  ;;  %v4931_v1 = vadd.f32 %v4930_v34, %v4929_v63  ;;  %v5867_v14 = vld [vmem:[#allocation7 + $0x128] sm:$0xff]  }
 0x23e   : > { %v5042_v20 = vpop.f32.mrb[111].mxu1  ;;  %5327 = vmatpush3.bf16.msra.mxu1 %v5867_v14  ;;  %v5870_v14 = vld [vmem:[#allocation7 + $0x170] sm:$0xff]  }
 0x23f   : > { %v5043_v25 = vadd.f32 %v5042_v20, %v5041_v13  ;;  %v1931_v40 = vadd.f32 %v4931_v1, %v6922_v19  ;;  %v7018_v3 = vadd.f32 %v5040_v42, %v1928_v49  ;;  %5328 = vmatprep.subr.bf16.mxu1 %v5870_v14 }
 0x241   : > { %v4932_v37 = vpop.f32.mrb[112].mxu0  ;;  %v7020_v5 = vadd.f32 %v5043_v25, %v1931_v40 }
 0x242   : > { %v4933_v28 = vpop.f32.mrb[113].mxu0 }
 0x243   : > { %v5044_v31 = vpop.f32.mrb[112].mxu1  ;;  %v4934_v38 = vadd.f32 %v4933_v28, %v4932_v37  ;;  %v4935_v0 = vpop.f32.mrb[114].mxu0 }
 0x244   : > { %v5045_v6 = vpop.f32.mrb[113].mxu1  ;;  %v4936_v56 = vpop.f32.mrb[115].mxu0 }
 0x245   : > { %v5046_v58 = vadd.f32 %v5045_v6, %v5044_v31  ;;  %v5047_v44 = vpop.f32.mrb[114].mxu1  ;;  %v1936_v26 = vadd.f32 %v4934_v38, %v6927_v61  ;;  %v4937_v12 = vadd.f32 %v4936_v56, %v4935_v0 }
 0x246   : > { %v5048_v24 = vpop.f32.mrb[115].mxu1 }
 0x247   : > { %v5049_v19 = vadd.f32 %v5048_v24, %v5047_v44  ;;  %v1939_v29 = vadd.f32 %v4937_v12, %v6929_v23  ;;  %v7024_v43 = vadd.f32 %v5046_v58, %v1936_v26 }
 0x249   : > { %v4938_v16 = vpop.f32.mrb[116].mxu0  ;;  %v7026_v63 = vadd.f32 %v5049_v19, %v1939_v29 }
 0x24a   : > { %v4939_v9 = vpop.f32.mrb[117].mxu0 }
 0x24b   : > { %v5050_v34 = vpop.f32.mrb[116].mxu1  ;;  %v4940_v42 = vadd.f32 %v4939_v9, %v4938_v16  ;;  %v4941_v13 = vpop.f32.mrb[118].mxu0 }
 0x24c   : > { %v5051_v49 = vpop.f32.mrb[117].mxu1  ;;  %v4942_v1 = vpop.f32.mrb[119].mxu0 }
 0x24d   : > { %v5052_v20 = vadd.f32 %v5051_v49, %v5050_v34  ;;  %v5053_v61 = vpop.f32.mrb[118].mxu1  ;;  %v1944_v25 = vadd.f32 %v4940_v42, %v6933_v62  ;;  %v4943_v40 = vadd.f32 %v4942_v1, %v4941_v13  ;;  %v5871_v62 = vld [vmem:[#allocation7 + $0x130] sm:$0xff]  }
 0x24e   : > { %v5054_v37 = vpop.f32.mrb[119].mxu1  ;;  %5329 = vmatpush3.bf16.msra.mxu1 %v5871_v62 }
 0x24f   : > { %v5055_v28 = vadd.f32 %v5054_v37, %v5053_v61  ;;  %v1947_v23 = vadd.f32 %v4943_v40, %v6935_v48  ;;  %v7030_v31 = vadd.f32 %v5052_v20, %v1944_v25 }
 0x251   : > { %v4944_v38 = vpop.f32.mrb[120].mxu0  ;;  %v7032_v0 = vadd.f32 %v5055_v28, %v1947_v23 }
 0x252   : > { %v4945_v6 = vpop.f32.mrb[121].mxu0 }
 0x253   : > { %v5056_v33 = vpop.f32.mrb[120].mxu1  ;;  %v4946_v56 = vadd.f32 %v4945_v6, %v4944_v38  ;;  %v4947_v58 = vpop.f32.mrb[122].mxu0 }
 0x254   : > { %v5057_v44 = vpop.f32.mrb[121].mxu1  ;;  %v4948_v26 = vpop.f32.mrb[123].mxu0 }
 0x255   : > { %v5058_v12 = vadd.f32 %v5057_v44, %v5056_v33  ;;  %v5059_v24 = vpop.f32.mrb[122].mxu1  ;;  %v1952_v19 = vadd.f32 %v4946_v56, %v6939_v51  ;;  %v4949_v29 = vadd.f32 %v4948_v26, %v4947_v58 }
 0x256   : > { %v5060_v16 = vpop.f32.mrb[123].mxu1 }
 0x257   : > { %v5061_v48 = vadd.f32 %v5060_v16, %v5059_v24  ;;  %v1955_v9 = vadd.f32 %v4949_v29, %v6941_v30  ;;  %v7036_v34 = vadd.f32 %v5058_v12, %v1952_v19  ;;  %v5874_v24 = vld [vmem:[#allocation7 + $0x178] sm:$0xff]  }
 0x258   : > { %v5875_v19 = vld [vmem:[#allocation7 + $0x138] sm:$0xff]   ;;  %5330 = vmatprep.subr.bf16.mxu1 %v5874_v24 }
 0x259   : > { %v4950_v42 = vpop.f32.mrb[124].mxu0  ;;  %v7038_v13 = vadd.f32 %v5061_v48, %v1955_v9  ;;  %5331 = vmatpush3.bf16.msra.mxu1 %v5875_v19  ;;  %v5864_v19 = vld [vmem:[#allocation7 + $0x1c8] sm:$0xff]  }
 0x25a   : > { %v4951_v49 = vpop.f32.mrb[125].mxu0 }
 0x25b   : > { %v5062_v1 = vpop.f32.mrb[124].mxu1  ;;  %v4952_v20 = vadd.f32 %v4951_v49, %v4950_v42  ;;  %v4953_v61 = vpop.f32.mrb[126].mxu0 }
 0x25c   : > { %v5063_v25 = vpop.f32.mrb[125].mxu1  ;;  %v4954_v40 = vpop.f32.mrb[127].mxu0 }
 0x25d   : > { %v5064_v37 = vadd.f32 %v5063_v25, %v5062_v1  ;;  %v5065_v51 = vpop.f32.mrb[126].mxu1  ;;  %v1960_v28 = vadd.f32 %v4952_v20, %v6945_v8  ;;  %v4955_v23 = vadd.f32 %v4954_v40, %v4953_v61 }
 0x25e   : > { %v5066_v38 = vpop.f32.mrb[127].mxu1 }
 0x25f   : > { %v5067_v6 = vadd.f32 %v5066_v38, %v5065_v51  ;;  %v1963_v30 = vadd.f32 %v4955_v23, %v6947_v10  ;;  %v7042_v33 = vadd.f32 %v5064_v37, %v1960_v28 }
 0x261   : > { %v5582_v56 = vpop.f32.mrb[128].mxu0  ;;  %v7044_v58 = vadd.f32 %v5067_v6, %v1963_v30 }
 0x262   : > { %v2170_v44 = vadd.f32 %v5582_v56, %v6957_v11  ;;  %v2161_v14 = vpop.f32.mrb[129].mxu0 }
 0x263   : > { %v2162_v26 = vadd.f32 %v2161_v14, %v6951_v21  ;;  %v5583_v12 = vpop.f32.mrb[130].mxu0 }
 0x264   : > { %v2173_v62 = vadd.f32 %v5583_v12, %v6960_v36  ;;  %v2164_v8 = vpop.f32.mrb[131].mxu0  ;;  %v2290_v10 = vmax.f32 %v2170_v44, 0.0 }
 0x265   : > { %v2165_v29 = vadd.f32 %v2164_v8, %v6953_v27  ;;  %v2288_v48 = vmax.f32 %v2162_v26, 0.0 }
 0x266   : > { %v2291_v16 = vmax.f32 %v2173_v62, 0.0 }
 0x267   : > { %v2289_v9 = vmax.f32 %v2165_v29, 0.0 }
 0x268   : > { %v2321_v42 = vpack.c.bf16 %v2291_v16, %v2290_v10 }
 0x269   : > { %v2320_v49 = vpack.c.bf16 %v2289_v9, %v2288_v48  ;;  %v5586_v11 = vpop.f32.mrb[132].mxu0 }
 0x26a   : > { %v2344_v1 = vshrl.u32 %v2321_v42, 16  ;;  %v2186_v21 = vadd.f32 %v5586_v11, %v6970_v60  ;;  %v2177_v20 = vpop.f32.mrb[133].mxu0  ;;  %v2347_v37 = vshll.u32 %v2321_v42, 16 }
 0x26b   : > { %v2337_v61 = vshrl.u32 %v2320_v49, 16  ;;  %v2178_v36 = vadd.f32 %v2177_v20, %v6964_v18  ;;  %v5587_v25 = vpop.f32.mrb[134].mxu0  ;;  %v2340_v23 = vshll.u32 %v2320_v49, 16 }
 0x26c   : > { %v2346_v40 = vrot.slane %v2344_v1, 7  ;;  %v2189_v27 = vadd.f32 %v5587_v25, %v6972_v54  ;;  %v2180_v51 = vpop.f32.mrb[135].mxu0  ;;  %v2294_v30 = vmax.f32 %v2186_v21, 0.0 }
 0x26d   : > { %v2339_v28 = vrot.slane %v2337_v61, 7  ;;  %v2181_v38 = vadd.f32 %v2180_v51, %v6966_v57  ;;  %v2292_v56 = vmax.f32 %v2178_v36, 0.0  ;;  %v5861_v57 = vld [vmem:[#allocation7 + $0x180] sm:$0xff]  }
 0x26e   : > { %v2349_v6 = vor.u32 %v2347_v37, %v2346_v40  ;;  %v2295_v44 = vmax.f32 %v2189_v27, 0.0  ;;  %v7056_v60 = vsel %vm6316_vm2, %v2346_v40, 0  ;;  %v5865_v40 = vld [vmem:[#allocation7 + $0x188] sm:$0xff]  }
 0x26f   : > { %v2342_v14 = vor.u32 %v2340_v23, %v2339_v28  ;;  %v7060_v18 = vsel %vm6316_vm2, %v2339_v28, 0  ;;  %v2293_v26 = vmax.f32 %v2181_v38, 0.0  ;;  %v2532_v9 = vshll.u32 %v7056_v60, 16  ;;  %v5868_v23 = vld [vmem:[#allocation7 + $0x1d0] sm:$0xff]  }
 0x270   : > { %v7062_v54 = vpack.c.bf16 %v2295_v44, %v2294_v30  ;;  %v7066_v12 = vsel %vm6316_vm2, 0, %v2349_v6  ;;  %v2520_v16 = vshll.u32 %v7060_v18, 16  ;;  %v2738_v21 = vrot.slane %v7060_v18, 1 }
 0x271   : > { %v2322_v24 = vpack.c.bf16 %v2293_v26, %v2292_v56  ;;  %v5590_v62 = vpop.f32.mrb[136].mxu0  ;;  %v7070_v8 = vsel %vm6316_vm2, 0, %v2342_v14  ;;  %v2527_v48 = vshll.u32 %v7066_v12, 16 }
 0x272   : > { %v2202_v29 = vadd.f32 %v5590_v62, %v6982_v41  ;;  %v2193_v10 = vpop.f32.mrb[137].mxu0  ;;  %3592 = vmatprep.mubr.bf16.mxu0 %v7070_v8  ;;  %v2515_v1 = vshll.u32 %v7070_v8, 16  ;;  %v7081_v41 = vld [vmem:[#allocation7 + $0x200] sm:$0xff]   ;;  %v2358_v20 = vshrl.u32 %v7062_v54, 16  ;;  %v2513_v25 = vshrl.u32 %v7070_v8, 16 }
 0x273   : > { %v2351_v42 = vshrl.u32 %v2322_v24, 16  ;;  %v2194_v49 = vadd.f32 %v2193_v10, %v6976_v52  ;;  %v5591_v11 = vpop.f32.mrb[138].mxu0  ;;  %3593 = vmatmul.mubr.bf16.vlgmr.msra.gmra.mrb[160].mxu0 %v7943_v22  ;;  %v2525_v52 = vshrl.u32 %v7066_v12, 16  ;;  %v2354_v27 = vshll.u32 %v2322_v24, 16  ;;  %5612 = vmatprep.subr.bf16.mxu1 %v7081_v41 }
 0x274   : > { %v2205_v61 = vadd.f32 %v5591_v11, %v6984_v35  ;;  %v2196_v36 = vpop.f32.mrb[139].mxu0  ;;  %3600 = vmatprep.mubr.bf16.mxu0 %v7066_v12  ;;  %5429 = vmatpush3.bf16.msra.mxu0 %v5861_v57  ;;  %v2517_v28 = vrot.slane %v2515_v1, 1  ;;  %v2298_v38 = vmax.f32 %v2202_v29, 0.0  ;;  %v2522_v6 = vrot.slane %v2520_v16, 1 }
 0x275   : > { %v2353_v37 = vrot.slane %v2351_v42, 7  ;;  %v2197_v51 = vadd.f32 %v2196_v36, %v6978_v55  ;;  %5430 = vmatprep.subr.bf16.mxu0 %v5864_v19  ;;  %v2529_v30 = vrot.slane %v2527_v48, 1  ;;  %v2296_v44 = vmax.f32 %v2194_v49, 0.0  ;;  %v5869_v48 = vld [vmem:[#allocation7 + $0x190] sm:$0xff]  }
 0x276   : > { %v2299_v35 = vmax.f32 %v2205_v61, 0.0  ;;  %v2518_v18 = vor.u32 %v2517_v28, %v2513_v25  ;;  %v2360_v26 = vrot.slane %v2358_v20, 7  ;;  %v2737_v24 = vrot.slane %v7070_v8, 1  ;;  %v5872_v20 = vld [vmem:[#allocation7 + $0x1d8] sm:$0xff]  }
 0x277   : > { %v2356_v56 = vor.u32 %v2354_v27, %v2353_v37  ;;  %v2297_v14 = vmax.f32 %v2197_v51, 0.0  ;;  %v2530_v62 = vor.u32 %v2529_v30, %v2525_v52  ;;  %v7095_v55 = vsel %vm6316_vm2, %v2353_v37, 0  ;;  %v5873_v27 = vld [vmem:[#allocation7 + $0x198] sm:$0xff]  }
 0x278   : > { %v7090_v57 = vpack.c.bf16 %v2299_v35, %v2298_v38  ;;  %5431 = vmatpush3.bf16.msra.mxu0 %v5865_v40  ;;  %v7098_v10 = vsel %vm575_vm3, %v2518_v18, %v2522_v6  ;;  %v2534_v16 = vrot.slane %v2532_v9, 1  ;;  %v2361_v42 = vshll.u32 %v7062_v54, 16 }
 0x279   : > { %v2324_v19 = vpack.c.bf16 %v2297_v14, %v2296_v44  ;;  %v5594_v29 = vpop.f32.mrb[140].mxu0  ;;  %5432 = vmatprep.subr.bf16.mxu0 %v5868_v23  ;;  %3439 = vmatprep.mubr.bf16.mxu1 %v7098_v10  ;;  %v7105_v1 = vsel %vm6316_vm2, 0, %v2356_v56  ;;  %v7113_v54 = vsel %vm816_vm4, %v2737_v24, %v2738_v21  ;;  %v2544_v37 = vshll.u32 %v7095_v55, 16 }
 0x27a   : > { %v2218_v49 = vadd.f32 %v5594_v29, %v6994_v53  ;;  %v2209_v11 = vpop.f32.mrb[141].mxu0  ;;  %3440 = vmatmul.mubr.bf16.gmra.mrb[132].mxu1 %v7070_v8  ;;  %v7110_v25 = vsel %vm575_vm3, %v2530_v62, %v2534_v16  ;;  %v2363_v53 = vor.u32 %v2361_v42, %v2360_v26  ;;  %v2539_v8 = vshll.u32 %v7105_v1, 16  ;;  %v5877_v16 = vld [vmem:[#allocation7 + $0x1a0] sm:$0xff]  }
 0x27b   : > { %v2365_v61 = vshrl.u32 %v2324_v19, 16  ;;  %v2210_v36 = vadd.f32 %v2209_v11, %v6988_v46  ;;  %v5595_v9 = vpop.f32.mrb[142].mxu0  ;;  %3447 = vmatprep.mubr.bf16.mxu1 %v7110_v25  ;;  %3601 = vmatmul.mubr.bf16.gmra.mrb[164].mxu0 %v7113_v54  ;;  %v2537_v28 = vshrl.u32 %v7105_v1, 16  ;;  %v2546_v56 = vrot.slane %v2544_v37, 1 }
 0x27c   : > { %v2221_v52 = vadd.f32 %v5595_v9, %v6996_v15  ;;  %v2212_v40 = vpop.f32.mrb[143].mxu0  ;;  %3608 = vmatprep.mubr.bf16.mxu0 %v7105_v1  ;;  %5433 = vmatpush3.bf16.msra.mxu0 %v5869_v48  ;;  %v2302_v21 = vmax.f32 %v2218_v49, 0.0  ;;  %v5876_v15 = vld [vmem:[#allocation7 + $0x1e0] sm:$0xff]   ;;  %v2541_v6 = vrot.slane %v2539_v8, 1  ;;  %v7128_v44 = vsel %vm6316_vm2, 0, %v2363_v53 }
 0x27d   : > { %v2213_v46 = vadd.f32 %v2212_v40, %v6990_v32  ;;  %5434 = vmatprep.subr.bf16.mxu0 %v5872_v20  ;;  %v2367_v23 = vrot.slane %v2365_v61, 7  ;;  %v2300_v38 = vmax.f32 %v2210_v36, 0.0  ;;  %v2740_v32 = vrot.slane %v7066_v12, 1  ;;  %v5878_v20 = vld [vmem:[#allocation7 + $0x1e8] sm:$0xff]  }
 0x27e   : > { %v2303_v51 = vmax.f32 %v2221_v52, 0.0  ;;  %v2542_v62 = vor.u32 %v2541_v6, %v2537_v28  ;;  %v2741_v24 = vrot.slane %v7056_v60, 1  ;;  %v2551_v29 = vshll.u32 %v7128_v44, 16 }
 0x27f   : > { %v2301_v35 = vmax.f32 %v2213_v46, 0.0  ;;  %v7136_v48 = vsel %vm6316_vm2, %v2360_v26, 0  ;;  %v2368_v42 = vshll.u32 %v2324_v19, 16  ;;  %v2372_v26 = vshrl.u32 %v7090_v57, 16  ;;  %v5879_v46 = vld [vmem:[#allocation7 + $0x1a8] sm:$0xff]  }
 0x280   : > { %v7123_v30 = vpack.c.bf16 %v2303_v51, %v2302_v21  ;;  %5435 = vmatpush3.bf16.msra.mxu0 %v5873_v27  ;;  %v7142_v60 = vsel %vm575_vm3, %v2542_v62, %v2546_v56  ;;  %v7145_v9 = vsel %vm816_vm4, %v2740_v32, %v2741_v24  ;;  %v2549_v40 = vshrl.u32 %v7128_v44, 16  ;;  %v5881_v24 = vld [vmem:[#allocation7 + $0x1b0] sm:$0xff]  }
 0x281   : > { %v7130_v14 = vpack.c.bf16 %v2301_v35, %v2300_v38  ;;  %v5598_v18 = vpop.f32.mrb[144].mxu0  ;;  %5436 = vmatprep.subr.bf16.mxu0 %v5876_v15  ;;  %v2370_v53 = vor.u32 %v2368_v42, %v2367_v23  ;;  %v2556_v37 = vshll.u32 %v7136_v48, 16  ;;  %v2374_v15 = vrot.slane %v2372_v26, 7 }
 0x282   : > { %v2234_v49 = vadd.f32 %v5598_v18, %v7006_v7  ;;  %v2225_v11 = vpop.f32.mrb[145].mxu0  ;;  %3448 = vmatmul.mubr.bf16.gmra.mrb[136].mxu1 %v7066_v12  ;;  %v2744_v18 = vrot.slane %v7095_v55, 1 }
 0x283   : > { %v2226_v61 = vadd.f32 %v2225_v11, %v7000_v39  ;;  %v5599_v36 = vpop.f32.mrb[146].mxu0  ;;  %3455 = vmatprep.mubr.bf16.mxu1 %v7142_v60  ;;  %3609 = vmatmul.mubr.bf16.gmra.mrb[168].mxu0 %v7145_v9  ;;  %v2553_v39 = vrot.slane %v2551_v29, 1  ;;  %v7160_v35 = vsel %vm6316_vm2, 0, %v2370_v53  ;;  %v2558_v32 = vrot.slane %v2556_v37, 1  ;;  %v5882_v11 = vld [vmem:[#allocation7 + $0x1f8] sm:$0xff]  }
 0x284   : > { %v2237_v19 = vadd.f32 %v5599_v36, %v7008_v47  ;;  %v2228_v7 = vpop.f32.mrb[147].mxu0  ;;  %3616 = vmatprep.mubr.bf16.mxu0 %v7128_v44  ;;  %5437 = vmatpush3.bf16.msra.mxu0 %v5877_v16  ;;  %v2306_v8 = vmax.f32 %v2234_v49, 0.0  ;;  %v5880_v47 = vld [vmem:[#allocation7 + $0x1f0] sm:$0xff]   ;;  %v2563_v62 = vshll.u32 %v7160_v35, 16  ;;  %v2375_v29 = vshll.u32 %v7090_v57, 16 }
 0x285   : > { %v2229_v52 = vadd.f32 %v2228_v7, %v7002_v45  ;;  %5438 = vmatprep.subr.bf16.mxu0 %v5878_v20  ;;  %v2304_v21 = vmax.f32 %v2226_v61, 0.0  ;;  %v2554_v28 = vor.u32 %v2553_v39, %v2549_v40  ;;  %v2743_v45 = vrot.slane %v7105_v1, 1  ;;  %v5883_v39 = vld [vmem:[#allocation7 + $0x1b8] sm:$0xff]  }
 0x286   : > { %v2307_v27 = vmax.f32 %v2237_v19, 0.0  ;;  %v7169_v16 = vsel %vm6316_vm2, %v2367_v23, 0  ;;  %v2565_v57 = vrot.slane %v2563_v62, 1  ;;  %v2377_v26 = vor.u32 %v2375_v29, %v2374_v15 }
 0x287   : > { %v2305_v51 = vmax.f32 %v2229_v52, 0.0  ;;  %v7175_v61 = vsel %vm575_vm3, %v2554_v28, %v2558_v32  ;;  %v7178_v36 = vsel %vm816_vm4, %v2743_v45, %v2744_v18  ;;  %v2379_v23 = vshrl.u32 %v7130_v14, 16 }
 0x288   : > { %v7155_v38 = vpack.c.bf16 %v2307_v27, %v2306_v8  ;;  %5439 = vmatpush3.bf16.msra.mxu0 %v5879_v46  ;;  %v2561_v19 = vshrl.u32 %v7160_v35, 16  ;;  %v2568_v7 = vshll.u32 %v7169_v16, 16  ;;  %v2746_v8 = vrot.slane %v7128_v44, 1 }
 0x289   : > { %v7162_v6 = vpack.c.bf16 %v2305_v51, %v2304_v21  ;;  %v5602_v56 = vpop.f32.mrb[148].mxu0  ;;  %5440 = vmatprep.subr.bf16.mxu0 %v5880_v47  ;;  %v2381_v27 = vrot.slane %v2379_v23, 7  ;;  %v2747_v45 = vrot.slane %v7136_v48, 1  ;;  %v7201_v32 = vsel %vm6316_vm2, %v2374_v15, 0 }
 0x28a   : > { %v2250_v42 = vadd.f32 %v5602_v56, %v7018_v3  ;;  %v2241_v49 = vpop.f32.mrb[149].mxu0  ;;  %3456 = vmatmul.mubr.bf16.gmra.mrb[140].mxu1 %v7105_v1  ;;  %v2566_v46 = vor.u32 %v2565_v57, %v2561_v19  ;;  %v2570_v28 = vrot.slane %v2568_v7, 1  ;;  %v2382_v18 = vshll.u32 %v7130_v14, 16 }
 0x28b   : > { %v2242_v20 = vadd.f32 %v2241_v49, %v7012_v59  ;;  %v5603_v55 = vpop.f32.mrb[150].mxu0  ;;  %3463 = vmatprep.mubr.bf16.mxu1 %v7175_v61  ;;  %3617 = vmatmul.mubr.bf16.gmra.mrb[172].mxu0 %v7178_v36  ;;  %v7211_v48 = vsel %vm816_vm4, %v2746_v8, %v2747_v45  ;;  %v2386_v15 = vshrl.u32 %v7123_v30, 16  ;;  %v2580_v57 = vshll.u32 %v7201_v32, 16 }
 0x28c   : > { %v2253_v3 = vadd.f32 %v5603_v55, %v7020_v5  ;;  %v2244_v59 = vpop.f32.mrb[151].mxu0  ;;  %3624 = vmatprep.mubr.bf16.mxu0 %v7160_v35  ;;  %5441 = vmatpush3.bf16.msra.mxu0 %v5881_v24  ;;  %v2310_v52 = vmax.f32 %v2250_v42, 0.0  ;;  %v7208_v49 = vsel %vm575_vm3, %v2566_v46, %v2570_v28  ;;  %v2393_v7 = vshrl.u32 %v7162_v6, 16 }
 0x28d   : > { %v2245_v53 = vadd.f32 %v2244_v59, %v7014_v4  ;;  %5442 = vmatprep.subr.bf16.mxu0 %v5882_v11  ;;  %v2308_v37 = vmax.f32 %v2242_v20, 0.0  ;;  %v7193_v4 = vsel %vm6316_vm2, 0, %v2377_v26  ;;  %v2384_v20 = vor.u32 %v2382_v18, %v2381_v27 }
 0x28e   : > { %v2311_v40 = vmax.f32 %v2253_v3, 0.0  ;;  %v2575_v56 = vshll.u32 %v7193_v4, 16  ;;  %v2573_v55 = vshrl.u32 %v7193_v4, 16  ;;  %v2388_v19 = vrot.slane %v2386_v15, 7 }
 0x28f   : > { %v2309_v5 = vmax.f32 %v2245_v53, 0.0  ;;  %v2389_v8 = vshll.u32 %v7123_v30, 16  ;;  %v2395_v30 = vrot.slane %v2393_v7, 7  ;;  %v2396_v15 = vshll.u32 %v7162_v6, 16 }
 0x290   : > { %v7189_v47 = vpack.c.bf16 %v2311_v40, %v2310_v52  ;;  %5443 = vmatpush3.bf16.msra.mxu0 %v5883_v39  ;;  %v2577_v11 = vrot.slane %v2575_v56, 1  ;;  %v2753_v6 = vrot.slane %v7201_v32, 1 }
 0x291   : > { %v7195_v21 = vpack.c.bf16 %v2309_v5, %v2308_v37  ;;  %v5606_v51 = vpop.f32.mrb[152].mxu0  ;;  %v2582_v37 = vrot.slane %v2580_v57, 1  ;;  %v2750_v5 = vrot.slane %v7169_v16, 1  ;;  %v2400_v57 = vshrl.u32 %v7155_v38, 16 }
 0x292   : > { %v2266_v62 = vadd.f32 %v5606_v51, %v7030_v31  ;;  %v2257_v24 = vpop.f32.mrb[153].mxu0  ;;  %3464 = vmatmul.mubr.bf16.gmra.mrb[144].mxu1 %v7128_v44  ;;  %v2578_v53 = vor.u32 %v2577_v11, %v2573_v55  ;;  %v2502_v51 = vsel %vm6316_vm2, %v2381_v27, 0 }
 0x293   : > { %v2258_v29 = vadd.f32 %v2257_v24, %v7024_v43  ;;  %v5607_v42 = vpop.f32.mrb[154].mxu0  ;;  %3471 = vmatprep.mubr.bf16.mxu1 %v7208_v49  ;;  %3625 = vmatmul.mubr.bf16.gmra.mrb[176].mxu0 %v7211_v48  ;;  %v2592_v11 = vshll.u32 %v2502_v51, 16 }
 0x294   : > { %v2269_v14 = vadd.f32 %v5607_v42, %v7032_v0  ;;  %v2260_v43 = vpop.f32.mrb[155].mxu0  ;;  %3632 = vmatprep.mubr.bf16.mxu0 %v7193_v4  ;;  %v2314_v26 = vmax.f32 %v2266_v62, 0.0  ;;  %v2749_v0 = vrot.slane %v7160_v35, 1  ;;  %v7240_v62 = vsel %vm575_vm3, %v2578_v53, %v2582_v37 }
 0x295   : > { %v2261_v31 = vadd.f32 %v2260_v43, %v7026_v63  ;;  %v2312_v3 = vmax.f32 %v2258_v29, 0.0  ;;  %v7227_v63 = vsel %vm6316_vm2, 0, %v2384_v20  ;;  %v2391_v29 = vor.u32 %v2389_v8, %v2388_v19 }
 0x296   : > { %v2315_v23 = vmax.f32 %v2269_v14, 0.0  ;;  %v2587_v46 = vshll.u32 %v7227_v63, 16  ;;  %v7243_v16 = vsel %vm816_vm4, %v2749_v0, %v2750_v5  ;;  %v2585_v27 = vshrl.u32 %v7227_v63, 16 }
 0x297   : > { %v2313_v59 = vmax.f32 %v2261_v31, 0.0  ;;  %v2503_v0 = vsel %vm6316_vm2, %v2388_v19, 0  ;;  %v2402_v5 = vrot.slane %v2400_v57, 7  ;;  %v2403_v8 = vshll.u32 %v7155_v38, 16 }
 0x298   : > { %v7223_v39 = vpack.c.bf16 %v2315_v23, %v2314_v26  ;;  %v2589_v24 = vrot.slane %v2587_v46, 1  ;;  %v2398_v26 = vor.u32 %v2396_v15, %v2395_v30  ;;  %v2604_v46 = vshll.u32 %v2503_v0, 16 }
 0x299   : > { %v7229_v52 = vpack.c.bf16 %v2313_v59, %v2312_v3  ;;  %v5610_v40 = vpop.f32.mrb[156].mxu0  ;;  %v2594_v59 = vrot.slane %v2592_v11, 1 }
 0x29a   : > { %v2282_v28 = vadd.f32 %v5610_v40, %v7042_v33  ;;  %v2273_v45 = vpop.f32.mrb[157].mxu0  ;;  %3472 = vmatmul.mubr.bf16.gmra.mrb[148].mxu1 %v7160_v35  ;;  %v2590_v55 = vor.u32 %v2589_v24, %v2585_v27  ;;  %v7277_v32 = vsel %vm6316_vm2, 0, %v2398_v26  ;;  %v2407_v24 = vshrl.u32 %v7195_v21, 16 }
 0x29b   : > { %v2274_v56 = vadd.f32 %v2273_v45, %v7036_v34  ;;  %v5611_v18 = vpop.f32.mrb[158].mxu0  ;;  %3479 = vmatprep.mubr.bf16.mxu1 %v7240_v62  ;;  %3633 = vmatmul.mubr.bf16.gmra.mrb[180].mxu0 %v7243_v16  ;;  %v2755_v45 = vrot.slane %v7227_v63, 1  ;;  %v2759_v26 = vrot.slane %v2503_v0, 1 }
 0x29c   : > { %v2285_v42 = vadd.f32 %v5611_v18, %v7044_v58  ;;  %v2276_v33 = vpop.f32.mrb[159].mxu0  ;;  %3640 = vmatprep.mubr.bf16.mxu0 %v7227_v63  ;;  %v2318_v20 = vmax.f32 %v2282_v28, 0.0  ;;  %v2752_v58 = vrot.slane %v7193_v4, 1  ;;  %v7268_v7 = vsel %vm575_vm3, %v2590_v55, %v2594_v59 }
 0x29d   : > { %v2277_v34 = vadd.f32 %v2276_v33, %v7038_v13  ;;  %v2316_v43 = vmax.f32 %v2274_v56, 0.0  ;;  %v7258_v13 = vsel %vm6316_vm2, 0, %v2391_v29  ;;  %v2611_v56 = vshll.u32 %v7277_v32, 16 }
 0x29e   : > { %v2319_v14 = vmax.f32 %v2285_v42, 0.0  ;;  %v2599_v53 = vshll.u32 %v7258_v13, 16  ;;  %v7271_v40 = vsel %vm816_vm4, %v2752_v58, %v2753_v6  ;;  %v2597_v19 = vshrl.u32 %v7258_v13, 16 }
 0x29f   : > { %v2317_v31 = vmax.f32 %v2277_v34, 0.0  ;;  %v2405_v18 = vor.u32 %v2403_v8, %v2402_v5  ;;  %v2606_v29 = vrot.slane %v2604_v46, 1  ;;  %v2756_v42 = vrot.slane %v2502_v51, 1 }
 0x2a0   : > { %v7254_v23 = vpack.c.bf16 %v2319_v14, %v2318_v20  ;;  %v2601_v37 = vrot.slane %v2599_v53, 1  ;;  %v2504_v33 = vsel %vm6316_vm2, %v2395_v30, 0  ;;  %v2613_v27 = vrot.slane %v2611_v56, 1 }
 0x2a1   : > { %v7260_v3 = vpack.c.bf16 %v2317_v31, %v2316_v43  ;;  %v7292_v38 = vsel %vm816_vm4, %v2755_v45, %v2756_v42  ;;  %v2409_v11 = vrot.slane %v2407_v24, 7  ;;  %v7298_v51 = vsel %vm6316_vm2, 0, %v2405_v18 }
 0x2a2   : > { %3480 = vmatmul.mubr.bf16.gmra.mrb[152].mxu1 %v7193_v4  ;;  %v2602_v28 = vor.u32 %v2601_v37, %v2597_v19  ;;  %v2609_v30 = vshrl.u32 %v7277_v32, 16  ;;  %v2616_v15 = vshll.u32 %v2504_v33, 16  ;;  %v2410_v20 = vshll.u32 %v7195_v21, 16 }
 0x2a3   : > { %3487 = vmatprep.mubr.bf16.mxu1 %v7268_v7  ;;  %3641 = vmatmul.mubr.bf16.gmra.mrb[184].mxu0 %v7271_v40  ;;  %v2758_v43 = vrot.slane %v7258_v13, 1  ;;  %v2623_v31 = vshll.u32 %v7298_v51, 16  ;;  %v2414_v55 = vshrl.u32 %v7189_v47, 16  ;;  %v2505_v59 = vsel %vm6316_vm2, %v2402_v5, 0 }
 0x2a4   : > { %3648 = vmatprep.mubr.bf16.mxu0 %v7258_v13  ;;  %v7289_v34 = vsel %vm575_vm3, %v2602_v28, %v2606_v29  ;;  %v2614_v14 = vor.u32 %v2613_v27, %v2609_v30  ;;  %v2412_v58 = vor.u32 %v2410_v20, %v2409_v11  ;;  %v2618_v57 = vrot.slane %v2616_v15, 1 }
 0x2a5   : > { %v7313_v21 = vsel %vm816_vm4, %v2758_v43, %v2759_v26  ;;  %v2625_v53 = vrot.slane %v2623_v31, 1  ;;  %v2416_v37 = vrot.slane %v2414_v55, 7  ;;  %v2621_v5 = vshrl.u32 %v7298_v51, 16 }
 0x2a6   : > { %v7310_v6 = vsel %vm575_vm3, %v2614_v14, %v2618_v57  ;;  %v7319_v0 = vsel %vm6316_vm2, 0, %v2412_v58  ;;  %v2628_v19 = vshll.u32 %v2505_v59, 16  ;;  %v2417_v46 = vshll.u32 %v7189_v47, 16 }
 0x2a7   : > { %v2626_v8 = vor.u32 %v2625_v53, %v2621_v5  ;;  %v2761_v28 = vrot.slane %v7277_v32, 1  ;;  %v2635_v45 = vshll.u32 %v7319_v0, 16  ;;  %v2421_v18 = vshrl.u32 %v7229_v52, 16 }
 0x2a8   : > { %v2419_v56 = vor.u32 %v2417_v46, %v2416_v37  ;;  %v2630_v24 = vrot.slane %v2628_v19, 1  ;;  %v2762_v29 = vrot.slane %v2504_v33, 1  ;;  %v2506_v42 = vsel %vm6316_vm2, %v2409_v11, 0 }
 0x2a9   : > { %v2637_v30 = vrot.slane %v2635_v45, 1  ;;  %v2423_v15 = vrot.slane %v2421_v18, 7  ;;  %v2633_v11 = vshrl.u32 %v7319_v0, 16  ;;  %v2640_v20 = vshll.u32 %v2506_v42, 16 }
 0x2aa   : > { %3488 = vmatmul.mubr.bf16.gmra.mrb[156].mxu1 %v7227_v63  ;;  %v7331_v27 = vsel %vm575_vm3, %v2626_v8, %v2630_v24  ;;  %v7334_v47 = vsel %vm816_vm4, %v2761_v28, %v2762_v29  ;;  %v7340_v33 = vsel %vm6316_vm2, 0, %v2419_v56  ;;  %v2424_v14 = vshll.u32 %v7229_v52, 16 }
 0x2ab   : > { %3495 = vmatprep.mubr.bf16.mxu1 %v7289_v34  ;;  %3649 = vmatmul.mubr.bf16.gmra.mrb[188].mxu0 %v7292_v38  ;;  %v2638_v43 = vor.u32 %v2637_v30, %v2633_v11  ;;  %v2764_v31 = vrot.slane %v7298_v51, 1  ;;  %v2647_v55 = vshll.u32 %v7340_v33, 16  ;;  %v2428_v58 = vshrl.u32 %v7223_v39, 16 }
 0x2ac   : > { %3656 = vmatprep.mubr.bf16.mxu0 %v7277_v32  ;;  %v2426_v57 = vor.u32 %v2424_v14, %v2423_v15  ;;  %v2642_v26 = vrot.slane %v2640_v20, 1  ;;  %v2765_v53 = vrot.slane %v2505_v59, 1  ;;  %v2507_v5 = vsel %vm6316_vm2, %v2416_v37, 0 }
 0x2ad   : > { %v2649_v46 = vrot.slane %v2647_v55, 1  ;;  %v2430_v28 = vrot.slane %v2428_v58, 7  ;;  %v2645_v45 = vshrl.u32 %v7340_v33, 16  ;;  %v2652_v56 = vshll.u32 %v2507_v5, 16 }
 0x2ae   : > { %v7352_v19 = vsel %vm575_vm3, %v2638_v43, %v2642_v26  ;;  %v7355_v52 = vsel %vm816_vm4, %v2764_v31, %v2765_v53  ;;  %v7361_v59 = vsel %vm6316_vm2, 0, %v2426_v57  ;;  %v2431_v29 = vshll.u32 %v7223_v39, 16 }
 0x2af   : > { %v2650_v11 = vor.u32 %v2649_v46, %v2645_v45  ;;  %v2767_v20 = vrot.slane %v7319_v0, 1  ;;  %v2659_v14 = vshll.u32 %v7361_v59, 16  ;;  %v2435_v55 = vshrl.u32 %v7260_v3, 16 }
 0x2b0   : > { %v2433_v31 = vor.u32 %v2431_v29, %v2430_v28  ;;  %v2654_v58 = vrot.slane %v2652_v56, 1  ;;  %v2768_v57 = vrot.slane %v2506_v42, 1  ;;  %v2508_v26 = vsel %vm6316_vm2, %v2423_v15, 0 }
 0x2b1   : > { %v2661_v46 = vrot.slane %v2659_v14, 1  ;;  %v2657_v15 = vshrl.u32 %v7361_v59, 16  ;;  %v2438_v45 = vshll.u32 %v7260_v3, 16  ;;  %v2509_v14 = vsel %vm6316_vm2, %v2430_v28, 0 }
 0x2b2   : > { %3496 = vmatmul.mubr.bf16.gmra.mrb[160].mxu1 %v7258_v13  ;;  %v7377_v39 = vsel %vm575_vm3, %v2650_v11, %v2654_v58  ;;  %v7380_v53 = vsel %vm816_vm4, %v2767_v20, %v2768_v57  ;;  %v7386_v42 = vsel %vm6316_vm2, 0, %v2433_v31  ;;  %v2771_v20 = vrot.slane %v2507_v5, 1 }
 0x2b3   : > { %3503 = vmatprep.mubr.bf16.mxu1 %v7310_v6  ;;  %3657 = vmatmul.mubr.bf16.gmra.mrb[192].mxu0 %v7313_v21  ;;  %v2662_v56 = vor.u32 %v2661_v46, %v2657_v15  ;;  %v2671_v29 = vshll.u32 %v7386_v42, 16  ;;  %v2669_v5 = vshrl.u32 %v7386_v42, 16  ;;  %v2676_v28 = vshll.u32 %v2509_v14, 16 }
 0x2b4   : > { %3664 = vmatprep.mubr.bf16.mxu0 %v7298_v51  ;;  %v2773_v46 = vrot.slane %v7361_v59, 1 }
 0x2b5   : > { %v2673_v3 = vrot.slane %v2671_v29, 1 }
 0x2b7   : > { %v2674_v57 = vor.u32 %v2673_v3, %v2669_v5  ;;  %v2445_v3 = vshll.u32 %v7254_v23, 16 }
 0x2ba   : > { %3504 = vmatmul.mubr.bf16.gmra.mrb[164].mxu1 %v7277_v32 }
 0x2bb   : > { %3511 = vmatprep.mubr.bf16.mxu1 %v7331_v27  ;;  %3665 = vmatmul.mubr.bf16.gmra.mrb[196].mxu0 %v7334_v47 }
 0x2bc   : > { %3672 = vmatprep.mubr.bf16.mxu0 %v7319_v0  ;;  %v5108_v8 = vpop.f32.mrb[128].mxu1 }
 0x2bd   : > { %v5109_v37 = vpop.f32.mrb[129].mxu1 }
 0x2be   : > { %v7365_v18 = vadd.f32 %v5109_v37, %v5108_v8  ;;  %v5111_v24 = vpop.f32.mrb[130].mxu1  ;;  %v2437_v8 = vrot.slane %v2435_v55, 7  ;;  %v2664_v37 = vshll.u32 %v2508_v26, 16 }
 0x2bf   : > { %v5112_v30 = vpop.f32.mrb[131].mxu1 }
 0x2c0   : > { %v7370_v43 = vadd.f32 %v5112_v30, %v5111_v24  ;;  %v2770_v24 = vrot.slane %v7340_v33, 1  ;;  %v2440_v30 = vor.u32 %v2438_v45, %v2437_v8  ;;  %v2666_v11 = vrot.slane %v2664_v37, 1 }
 0x2c1   : > { %v2442_v37 = vshrl.u32 %v7254_v23, 16  ;;  %v2678_v45 = vrot.slane %v2676_v28, 1  ;;  %v2776_v28 = vrot.slane %v7386_v42, 1 }
 0x2c2   : > { %3512 = vmatmul.mubr.bf16.gmra.mrb[168].mxu1 %v7298_v51  ;;  %v7397_v31 = vsel %vm575_vm3, %v2662_v56, %v2666_v11  ;;  %v7400_v55 = vsel %vm816_vm4, %v2770_v24, %v2771_v20  ;;  %v7406_v58 = vsel %vm6316_vm2, 0, %v2440_v30  ;;  %v2774_v56 = vrot.slane %v2508_v26, 1 }
 0x2c3   : > { %3519 = vmatprep.mubr.bf16.mxu1 %v7352_v19  ;;  %3673 = vmatmul.mubr.bf16.gmra.mrb[200].mxu0 %v7355_v52  ;;  %v2683_v15 = vshll.u32 %v7406_v58, 16  ;;  %v2510_v24 = vsel %vm6316_vm2, %v2437_v8, 0  ;;  %v7417_v29 = vsel %vm575_vm3, %v2674_v57, %v2678_v45  ;;  %v7422_v20 = vrot.slane %v2442_v37, 7 }
 0x2c4   : > { %3680 = vmatprep.mubr.bf16.mxu0 %v7340_v33  ;;  %v7420_v30 = vsel %vm816_vm4, %v2773_v46, %v2774_v56  ;;  %v2681_v26 = vshrl.u32 %v7406_v58, 16  ;;  %v2688_v8 = vshll.u32 %v2510_v24, 16  ;;  %v2780_v56 = vrot.slane %v2510_v24, 1  ;;  %v5886_v24 = vld [vmem:[#allocation7 + $0x210] sm:$0xff]  }
 0x2c5   : > { %v2685_v11 = vrot.slane %v2683_v15, 1  ;;  %v2447_v57 = vor.u32 %v2445_v3, %v7422_v20  ;;  %v2777_v15 = vrot.slane %v2509_v14, 1  ;;  %v2779_v14 = vrot.slane %v7406_v58, 1 }
 0x2c6   : > { %v2690_v46 = vrot.slane %v2688_v8, 1  ;;  %v5887_v8 = vld [vmem:[#allocation7 + $0x218] sm:$0xff]  }
 0x2c7   : > { %v2686_v5 = vor.u32 %v2685_v11, %v2681_v26  ;;  %v7436_v45 = vsel %vm816_vm4, %v2776_v28, %v2777_v15  ;;  %v7442_v23 = vsel %vm6316_vm2, 0, %v2447_v57  ;;  %v7448_v11 = vsel %vm816_vm4, %v2779_v14, %v2780_v56  ;;  %v5885_v26 = vld [vmem:[#allocation7 + $0x208] sm:$0xff]  }
 0x2c8   : > { %v2798_v2 = vshrl.u32 %v7442_v23, 16 }
 0x2c9   : > { %v7433_v37 = vsel %vm575_vm3, %v2686_v5, %v2690_v46 }
 0x2ca   : > { %3520 = vmatmul.mubr.bf16.gmra.mrb[172].mxu1 %v7319_v0 }
 0x2cb   : > { %3527 = vmatprep.mubr.bf16.mxu1 %v7377_v39  ;;  %3681 = vmatmul.mubr.bf16.gmra.mrb[204].mxu0 %v7380_v53 }
 0x2cc   : > { %3688 = vmatprep.mubr.bf16.mxu0 %v7361_v59 }
 0x2d2   : > { %3528 = vmatmul.mubr.bf16.gmra.mrb[176].mxu1 %v7340_v33 }
 0x2d3   : > { %3535 = vmatprep.mubr.bf16.mxu1 %v7397_v31  ;;  %3689 = vmatmul.mubr.bf16.gmra.mrb[208].mxu0 %v7400_v55 }
 0x2d4   : > { %3696 = vmatprep.mubr.bf16.mxu0 %v7386_v42 }
 0x2da   : > { %3536 = vmatmul.mubr.bf16.gmra.mrb[180].mxu1 %v7361_v59 }
 0x2db   : > { %3543 = vmatprep.mubr.bf16.mxu1 %v7417_v29  ;;  %3697 = vmatmul.mubr.bf16.gmra.mrb[212].mxu0 %v7420_v30 }
 0x2dc   : > { %3704 = vmatprep.mubr.bf16.mxu0 %v7406_v58 }
 0x2e2   : > { %3544 = vmatmul.mubr.bf16.gmra.mrb[184].mxu1 %v7386_v42 }
 0x2e3   : > { %3551 = vmatprep.mubr.bf16.mxu1 %v7433_v37  ;;  %3705 = vmatmul.mubr.bf16.gmra.mrb[216].mxu0 %v7436_v45 }
 0x2e4   : > { %3712 = vmatprep.mubr.bf16.mxu0 %v7442_v23 }
 0x2ea   : > { %3552 = vmatmul.mubr.bf16.gmra.mrb[188].mxu1 %v7406_v58 }
 0x2eb   : > { %3713 = vmatmul.mubr.bf16.gmra.mrb[220].mxu0 %v7448_v11  ;;  %3753 = vmatprep.mubr.bf16.mxu1 %v7113_v54 }
 0x2ec   : > { %3914 = vmatprep.mubr.bf16.mxu0 %v7110_v25 }
 0x2f2   : > { %3754 = vmatmul.mubr.bf16.vlgmr.msra.gmra.mrb[192].mxu1 %v7098_v10  ;;  %v5890_v10 = vld [vmem:[#allocation7 + $0x230] sm:$0xff]  }
 0x2f3   : > { %3761 = vmatprep.mubr.bf16.mxu1 %v7145_v9  ;;  %3915 = vmatmul.mubr.bf16.vlgmr.msra.gmra.mrb[224].mxu0 %v7066_v12  ;;  %v5888_v12 = vld [vmem:[#allocation7 + $0x220] sm:$0xff]  }
 0x2f4   : > { %5613 = vmatpush3.bf16.msra.mxu1 %v7081_v41  ;;  %3922 = vmatprep.mubr.bf16.mxu0 %v7142_v60  ;;  %v5889_v41 = vld [vmem:[#allocation7 + $0x228] sm:$0xff]  }
 0x2f5   : > { %5614 = vmatprep.subr.bf16.mxu1 %v5885_v26 }
 0x2f8   : > { %5615 = vmatpush3.bf16.msra.mxu1 %v5885_v26 }
 0x2f9   : > { %5616 = vmatprep.subr.bf16.mxu1 %v5886_v24 }
 0x2fa   : > { %3762 = vmatmul.mubr.bf16.gmra.mrb[196].mxu1 %v7110_v25  ;;  %v7498_v25 = vld [vmem:[%s7877_s4] ss:$0 sm:$0xff] }
 0x2fb   : > { %3769 = vmatprep.mubr.bf16.mxu1 %v7178_v36  ;;  %3923 = vmatmul.mubr.bf16.gmra.mrb[228].mxu0 %v7105_v1  ;;  %v5891_v1 = vld [vmem:[#allocation7 + $0x238] sm:$0xff]   ;;  %v3434_v54 = vadd.f32 %v7365_v18, %v7498_v25 }
 0x2fc   : > { %3930 = vmatprep.mubr.bf16.mxu0 %v7175_v61  ;;  %5617 = vmatpush3.bf16.msra.mxu1 %v5886_v24 }
 0x2fd   : > { %5618 = vmatprep.subr.bf16.mxu1 %v5887_v8 }
 0x300   : > { %5619 = vmatpush3.bf16.msra.mxu1 %v5887_v8 }
 0x301   : > { %5620 = vmatprep.subr.bf16.mxu1 %v5888_v12 }
 0x302   : > { %3770 = vmatmul.mubr.bf16.gmra.mrb[200].mxu1 %v7142_v60 }
 0x303   : > { %3777 = vmatprep.mubr.bf16.mxu1 %v7211_v48  ;;  %3931 = vmatmul.mubr.bf16.gmra.mrb[232].mxu0 %v7128_v44 }
 0x304   : > { %3938 = vmatprep.mubr.bf16.mxu0 %v7208_v49  ;;  %5621 = vmatpush3.bf16.msra.mxu1 %v5888_v12 }
 0x305   : > { %5622 = vmatprep.subr.bf16.mxu1 %v5889_v41 }
 0x308   : > { %5623 = vmatpush3.bf16.msra.mxu1 %v5889_v41 }
 0x309   : > { %5624 = vmatprep.subr.bf16.mxu1 %v5890_v10 }
 0x30a   : > { %3778 = vmatmul.mubr.bf16.gmra.mrb[204].mxu1 %v7175_v61 }
 0x30b   : > { %3785 = vmatprep.mubr.bf16.mxu1 %v7243_v16  ;;  %3939 = vmatmul.mubr.bf16.gmra.mrb[236].mxu0 %v7160_v35 }
 0x30c   : > { %3946 = vmatprep.mubr.bf16.mxu0 %v7240_v62  ;;  %5625 = vmatpush3.bf16.msra.mxu1 %v5890_v10 }
 0x30d   : > { %5626 = vmatprep.subr.bf16.mxu1 %v5891_v1 }
 0x310   : > { %5627 = vmatpush3.bf16.msra.mxu1 %v5891_v1 }
 0x312   : > { %3786 = vmatmul.mubr.bf16.gmra.mrb[208].mxu1 %v7208_v49  ;;  %v3437_v49 = vadd.f32 %v7370_v43, %v7498_v25 }
 0x313   : > { %3793 = vmatprep.mubr.bf16.mxu1 %v7271_v40  ;;  %3947 = vmatmul.mubr.bf16.gmra.mrb[240].mxu0 %v7193_v4 }
 0x314   : > { %3954 = vmatprep.mubr.bf16.mxu0 %v7268_v7 }
 0x31a   : > { %3794 = vmatmul.mubr.bf16.gmra.mrb[212].mxu1 %v7240_v62 }
 0x31b   : > { %3801 = vmatprep.mubr.bf16.mxu1 %v7292_v38  ;;  %3955 = vmatmul.mubr.bf16.gmra.mrb[244].mxu0 %v7227_v63 }
 0x31c   : > { %3962 = vmatprep.mubr.bf16.mxu0 %v7289_v34 }
 0x322   : > { %3802 = vmatmul.mubr.bf16.gmra.mrb[216].mxu1 %v7268_v7 }
 0x323   : > { %3809 = vmatprep.mubr.bf16.mxu1 %v7313_v21  ;;  %3963 = vmatmul.mubr.bf16.gmra.mrb[248].mxu0 %v7258_v13 }
 0x324   : > { %3970 = vmatprep.mubr.bf16.mxu0 %v7310_v6 }
 0x32a   : > { %3810 = vmatmul.mubr.bf16.gmra.mrb[220].mxu1 %v7289_v34 }
 0x32b   : > { %3817 = vmatprep.mubr.bf16.mxu1 %v7334_v47  ;;  %3971 = vmatmul.mubr.bf16.gmra.mrb[252].mxu0 %v7277_v32 }
 0x32c   : > { %3978 = vmatprep.mubr.bf16.mxu0 %v7331_v27 }
 0x332   : > { %3818 = vmatmul.mubr.bf16.gmra.mrb[224].mxu1 %v7310_v6 }
 0x333   : > { %3825 = vmatprep.mubr.bf16.mxu1 %v7355_v52  ;;  %3979 = vmatmul.mubr.bf16.gmra.mrb[0].mxu0 %v7298_v51 }
 0x334   : > { %3986 = vmatprep.mubr.bf16.mxu0 %v7352_v19 }
 0x33a   : > { %3826 = vmatmul.mubr.bf16.gmra.mrb[228].mxu1 %v7331_v27  ;;  %v2800_v27 = vshll.u32 %v7442_v23, 16 }
 0x33b   : > { %3833 = vmatprep.mubr.bf16.mxu1 %v7380_v53  ;;  %3987 = vmatmul.mubr.bf16.gmra.mrb[4].mxu0 %v7319_v0 }
 0x33c   : > { %3994 = vmatprep.mubr.bf16.mxu0 %v7377_v39  ;;  %v2802_v46 = vrot.slane %v2800_v27, 1 }
 0x33e   : > { %v2803_v12 = vor.u32 %v2802_v46, %v2798_v2 }
 0x342   : > { %3834 = vmatmul.mubr.bf16.gmra.mrb[232].mxu1 %v7352_v19 }
 0x343   : > { %3841 = vmatprep.mubr.bf16.mxu1 %v7400_v55  ;;  %3995 = vmatmul.mubr.bf16.gmra.mrb[8].mxu0 %v7340_v33 }
 0x344   : > { %4002 = vmatprep.mubr.bf16.mxu0 %v7397_v31 }
 0x346   : > { %v5220_v44 = vpop.f32.mrb[160].mxu0 }
 0x347   : > { %v5221_v60 = vpop.f32.mrb[161].mxu0 }
 0x348   : > { %v5222_v35 = vadd.f32 %v5221_v60, %v5220_v44  ;;  %v5223_v61 = vpop.f32.mrb[162].mxu0 }
 0x349   : > { %v5224_v4 = vpop.f32.mrb[163].mxu0 }
 0x34a   : > { %v7507_v63 = vadd.f32 %v5222_v35, %v3434_v54  ;;  %v5225_v62 = vadd.f32 %v5224_v4, %v5223_v61  ;;  %3842 = vmatmul.mubr.bf16.gmra.mrb[236].mxu1 %v7377_v39 }
 0x34b   : > { %3849 = vmatprep.mubr.bf16.mxu1 %v7420_v30  ;;  %4003 = vmatmul.mubr.bf16.gmra.mrb[12].mxu0 %v7361_v59  ;;  %v2511_v59 = vsel %vm6316_vm2, %v7422_v20, 0 }
 0x34c   : > { %v7510_v13 = vadd.f32 %v5225_v62, %v3437_v49  ;;  %4010 = vmatprep.mubr.bf16.mxu0 %v7417_v29  ;;  %v2805_v20 = vshll.u32 %v2511_v59, 16 }
 0x34d   : > { %v5114_v7 = vpop.f32.mrb[132].mxu1 }
 0x34e   : > { %v5115_v32 = vpop.f32.mrb[133].mxu1  ;;  %v5226_v34 = vpop.f32.mrb[164].mxu0  ;;  %v2807_v60 = vrot.slane %v2805_v20, 1 }
 0x34f   : > { %v5116_v51 = vadd.f32 %v5115_v32, %v5114_v7  ;;  %v5117_v6 = vpop.f32.mrb[134].mxu1  ;;  %v5227_v0 = vpop.f32.mrb[165].mxu0 }
 0x350   : > { %v5228_v33 = vadd.f32 %v5227_v0, %v5226_v34  ;;  %v5118_v19 = vpop.f32.mrb[135].mxu1  ;;  %v5229_v18 = vpop.f32.mrb[166].mxu0  ;;  %v2808_v49 = vsel %vm575_vm3, %v2803_v12, %v2807_v60 }
 0x351   : > { %v3442_v43 = vadd.f32 %v5116_v51, %v7498_v25  ;;  %v5119_v39 = vadd.f32 %v5118_v19, %v5117_v6  ;;  %v5230_v3 = vpop.f32.mrb[167].mxu0  ;;  %v2812_v51 = vrot.slane %v7442_v23, 1 }
 0x352   : > { %v5231_v5 = vadd.f32 %v5230_v3, %v5229_v18  ;;  %3850 = vmatmul.mubr.bf16.gmra.mrb[240].mxu1 %v7397_v31  ;;  %v2813_v18 = vrot.slane %v2511_v59, 1 }
 0x353   : > { %v7521_v28 = vadd.f32 %v5228_v33, %v3442_v43  ;;  %v3445_v57 = vadd.f32 %v5119_v39, %v7498_v25  ;;  %3857 = vmatprep.mubr.bf16.mxu1 %v7436_v45  ;;  %4011 = vmatmul.mubr.bf16.gmra.mrb[16].mxu0 %v7386_v42 }
 0x354   : > { %4018 = vmatprep.mubr.bf16.mxu0 %v7433_v37 }
 0x355   : > { %v7527_v15 = vadd.f32 %v5231_v5, %v3445_v57  ;;  %v5120_v14 = vpop.f32.mrb[136].mxu1  ;;  %v7544_v5 = vsel %vm816_vm4, %v2812_v51, %v2813_v18 }
 0x356   : > { %v5121_v56 = vpop.f32.mrb[137].mxu1  ;;  %v5232_v26 = vpop.f32.mrb[168].mxu0 }
 0x357   : > { %v5122_v31 = vadd.f32 %v5121_v56, %v5120_v14  ;;  %v5123_v24 = vpop.f32.mrb[138].mxu1  ;;  %v5233_v8 = vpop.f32.mrb[169].mxu0 }
 0x358   : > { %v5234_v41 = vadd.f32 %v5233_v8, %v5232_v26  ;;  %v5124_v10 = vpop.f32.mrb[139].mxu1  ;;  %v5235_v1 = vpop.f32.mrb[170].mxu0 }
 0x359   : > { %v3450_v42 = vadd.f32 %v5122_v31, %v7498_v25  ;;  %v5125_v54 = vadd.f32 %v5124_v10, %v5123_v24  ;;  %v5236_v44 = vpop.f32.mrb[171].mxu0 }
 0x35a   : > { %v5237_v35 = vadd.f32 %v5236_v44, %v5235_v1  ;;  %3858 = vmatmul.mubr.bf16.gmra.mrb[244].mxu1 %v7417_v29 }
 0x35b   : > { %v7532_v61 = vadd.f32 %v5234_v41, %v3450_v42  ;;  %v3453_v4 = vadd.f32 %v5125_v54, %v7498_v25  ;;  %3865 = vmatprep.mubr.bf16.mxu1 %v7448_v11  ;;  %4019 = vmatmul.mubr.bf16.gmra.mrb[20].mxu0 %v7406_v58 }
 0x35c   : > { %4026 = vmatprep.mubr.bf16.mxu0 %v2808_v49 }
 0x35d   : > { %v7538_v62 = vadd.f32 %v5237_v35, %v3453_v4  ;;  %v5126_v7 = vpop.f32.mrb[140].mxu1 }
 0x35e   : > { %v5127_v32 = vpop.f32.mrb[141].mxu1  ;;  %v5238_v34 = vpop.f32.mrb[172].mxu0 }
 0x35f   : > { %v5128_v6 = vadd.f32 %v5127_v32, %v5126_v7  ;;  %v5129_v29 = vpop.f32.mrb[142].mxu1  ;;  %v5239_v0 = vpop.f32.mrb[173].mxu0 }
 0x360   : > { %v5240_v27 = vadd.f32 %v5239_v0, %v5238_v34  ;;  %v5130_v33 = vpop.f32.mrb[143].mxu1  ;;  %v5241_v19 = vpop.f32.mrb[174].mxu0 }
 0x361   : > { %v3458_v43 = vadd.f32 %v5128_v6, %v7498_v25  ;;  %v5131_v58 = vadd.f32 %v5130_v33, %v5129_v29  ;;  %v5242_v39 = vpop.f32.mrb[175].mxu0 }
 0x362   : > { %v5243_v3 = vadd.f32 %v5242_v39, %v5241_v19  ;;  %3866 = vmatmul.mubr.bf16.gmra.mrb[248].mxu1 %v7433_v37 }
 0x363   : > { %v7546_v57 = vadd.f32 %v5240_v27, %v3458_v43  ;;  %v3461_v46 = vadd.f32 %v5131_v58, %v7498_v25  ;;  %3873 = vmatprep.mubr.bf16.mxu1 %v7544_v5  ;;  %4027 = vmatmul.mubr.bf16.gmra.mrb[24].mxu0 %v7442_v23 }
 0x364   : > { %4034 = vmatprep.mubr.bf16.mxu0 %v7941_v17 }
 0x365   : > { %v7552_v59 = vadd.f32 %v5243_v3, %v3461_v46  ;;  %v5132_v14 = vpop.f32.mrb[144].mxu1 }
 0x366   : > { %v5133_v2 = vpop.f32.mrb[145].mxu1  ;;  %v5244_v20 = vpop.f32.mrb[176].mxu0 }
 0x367   : > { %v5134_v56 = vadd.f32 %v5133_v2, %v5132_v14  ;;  %v5135_v37 = vpop.f32.mrb[146].mxu1  ;;  %v5245_v26 = vpop.f32.mrb[177].mxu0 }
 0x368   : > { %v5246_v31 = vadd.f32 %v5245_v26, %v5244_v20  ;;  %v5136_v24 = vpop.f32.mrb[147].mxu1  ;;  %v5247_v8 = vpop.f32.mrb[178].mxu0 }
 0x369   : > { %v3466_v12 = vadd.f32 %v5134_v56, %v7498_v25  ;;  %v5137_v41 = vadd.f32 %v5136_v24, %v5135_v37  ;;  %v5248_v10 = vpop.f32.mrb[179].mxu0 }
 0x36a   : > { %v5249_v1 = vadd.f32 %v5248_v10, %v5247_v8  ;;  %3874 = vmatmul.mubr.bf16.gmra.mrb[252].mxu1 %v2808_v49 }
 0x36b   : > { %v7555_v23 = vadd.f32 %v5246_v31, %v3466_v12  ;;  %v3469_v17 = vadd.f32 %v5137_v41, %v7498_v25  ;;  %5628 = vmatprep.mubr.bf16.mxu1 %v7145_v9  ;;  %4035 = vmatmul.mubr.bf16.gmra.mrb[28].mxu0 %v7942_v50 }
 0x36d   : > { %v7560_v42 = vadd.f32 %v5249_v1, %v3469_v17  ;;  %v5138_v54 = vpop.f32.mrb[148].mxu1 }
 0x36e   : > { %v5139_v44 = vpop.f32.mrb[149].mxu1  ;;  %v5250_v60 = vpop.f32.mrb[180].mxu0 }
 0x36f   : > { %v5140_v35 = vadd.f32 %v5139_v44, %v5138_v54  ;;  %v5141_v4 = vpop.f32.mrb[150].mxu1  ;;  %v5251_v7 = vpop.f32.mrb[181].mxu0 }
 0x370   : > { %v5252_v32 = vadd.f32 %v5251_v7, %v5250_v60  ;;  %v5142_v34 = vpop.f32.mrb[151].mxu1  ;;  %v5253_v51 = vpop.f32.mrb[182].mxu0 }
 0x371   : > { %v3474_v49 = vadd.f32 %v5140_v35, %v7498_v25  ;;  %v5143_v6 = vadd.f32 %v5142_v34, %v5141_v4  ;;  %v5254_v29 = vpop.f32.mrb[183].mxu0 }
 0x372   : > { %v5255_v0 = vadd.f32 %v5254_v29, %v5253_v51  ;;  %5629 = vmatmul.mubr.bf16.vlgmr.msra.gmra.mrb[0].mxu1 %v7178_v36 }
 0x373   : > { %v7564_v9 = vadd.f32 %v5252_v32, %v3474_v49  ;;  %v3477_v50 = vadd.f32 %v5143_v6, %v7498_v25  ;;  %5632 = vmatprep.mubr.bf16.mxu1 %v7211_v48 }
 0x375   : > { %v7568_v27 = vadd.f32 %v5255_v0, %v3477_v50  ;;  %v5144_v33 = vpop.f32.mrb[152].mxu1 }
 0x376   : > { %v5145_v19 = vpop.f32.mrb[153].mxu1  ;;  %v5256_v18 = vpop.f32.mrb[184].mxu0 }
 0x377   : > { %v5146_v43 = vadd.f32 %v5145_v19, %v5144_v33  ;;  %v5147_v58 = vpop.f32.mrb[154].mxu1  ;;  %v5257_v39 = vpop.f32.mrb[185].mxu0 }
 0x378   : > { %v5258_v3 = vadd.f32 %v5257_v39, %v5256_v18  ;;  %v5148_v46 = vpop.f32.mrb[155].mxu1  ;;  %v5259_v14 = vpop.f32.mrb[186].mxu0 }
 0x379   : > { %v3482_v2 = vadd.f32 %v5146_v43, %v7498_v25  ;;  %v5149_v36 = vadd.f32 %v5148_v46, %v5147_v58  ;;  %v5260_v20 = vpop.f32.mrb[187].mxu0 }
 0x37a   : > { %v5261_v56 = vadd.f32 %v5260_v20, %v5259_v14  ;;  %5633 = vmatmul.mubr.bf16.gmra.mrb[4].mxu1 %v7243_v16 }
 0x37b   : > { %v7572_v37 = vadd.f32 %v5258_v3, %v3482_v2  ;;  %v3485_v48 = vadd.f32 %v5149_v36, %v7498_v25  ;;  %5636 = vmatprep.mubr.bf16.mxu1 %v7271_v40 }
 0x37d   : > { %v7576_v26 = vadd.f32 %v5261_v56, %v3485_v48  ;;  %v5150_v31 = vpop.f32.mrb[156].mxu1 }
 0x37e   : > { %v5151_v24 = vpop.f32.mrb[157].mxu1  ;;  %v5262_v8 = vpop.f32.mrb[188].mxu0 }
 0x37f   : > { %v5152_v12 = vadd.f32 %v5151_v24, %v5150_v31  ;;  %v5153_v41 = vpop.f32.mrb[158].mxu1  ;;  %v5263_v10 = vpop.f32.mrb[189].mxu0 }
 0x380   : > { %v5264_v1 = vadd.f32 %v5263_v10, %v5262_v8  ;;  %v5154_v17 = vpop.f32.mrb[159].mxu1  ;;  %v5265_v54 = vpop.f32.mrb[190].mxu0 }
 0x381   : > { %v3490_v44 = vadd.f32 %v5152_v12, %v7498_v25  ;;  %v5155_v16 = vadd.f32 %v5154_v17, %v5153_v41  ;;  %v5266_v60 = vpop.f32.mrb[191].mxu0 }
 0x382   : > { %v5267_v35 = vadd.f32 %v5266_v60, %v5265_v54  ;;  %5637 = vmatmul.mubr.bf16.gmra.mrb[8].mxu1 %v7292_v38 }
 0x383   : > { %v7580_v4 = vadd.f32 %v5264_v1, %v3490_v44  ;;  %v3493_v40 = vadd.f32 %v5155_v16, %v7498_v25  ;;  %5640 = vmatprep.mubr.bf16.mxu1 %v7313_v21 }
 0x385   : > { %v7584_v7 = vadd.f32 %v5267_v35, %v3493_v40  ;;  %v5156_v32 = vpop.f32.mrb[160].mxu1 }
 0x386   : > { %v5157_v34 = vpop.f32.mrb[161].mxu1  ;;  %v5268_v51 = vpop.f32.mrb[192].mxu0 }
 0x387   : > { %v5158_v49 = vadd.f32 %v5157_v34, %v5156_v32  ;;  %v5159_v6 = vpop.f32.mrb[162].mxu1  ;;  %v5269_v29 = vpop.f32.mrb[193].mxu0 }
 0x388   : > { %v5270_v0 = vadd.f32 %v5269_v29, %v5268_v51  ;;  %v5160_v50 = vpop.f32.mrb[163].mxu1  ;;  %v5271_v33 = vpop.f32.mrb[194].mxu0 }
 0x389   : > { %v3498_v19 = vadd.f32 %v5158_v49, %v7498_v25  ;;  %v5161_v38 = vadd.f32 %v5160_v50, %v5159_v6  ;;  %v5272_v18 = vpop.f32.mrb[195].mxu0 }
 0x38a   : > { %v5273_v43 = vadd.f32 %v5272_v18, %v5271_v33  ;;  %5641 = vmatmul.mubr.bf16.gmra.mrb[12].mxu1 %v7334_v47 }
 0x38b   : > { %v7588_v58 = vadd.f32 %v5270_v0, %v3498_v19  ;;  %v3501_v21 = vadd.f32 %v5161_v38, %v7498_v25  ;;  %5644 = vmatprep.mubr.bf16.mxu1 %v7355_v52 }
 0x38d   : > { %v7592_v39 = vadd.f32 %v5273_v43, %v3501_v21  ;;  %v5162_v3 = vpop.f32.mrb[164].mxu1 }
 0x38e   : > { %v5163_v46 = vpop.f32.mrb[165].mxu1  ;;  %v5274_v14 = vpop.f32.mrb[196].mxu0 }
 0x38f   : > { %v5164_v2 = vadd.f32 %v5163_v46, %v5162_v3  ;;  %v5165_v36 = vpop.f32.mrb[166].mxu1  ;;  %v5275_v20 = vpop.f32.mrb[197].mxu0 }
 0x390   : > { %v5276_v56 = vadd.f32 %v5275_v20, %v5274_v14  ;;  %v5166_v48 = vpop.f32.mrb[167].mxu1  ;;  %v5277_v31 = vpop.f32.mrb[198].mxu0 }
 0x391   : > { %v3506_v24 = vadd.f32 %v5164_v2, %v7498_v25  ;;  %v5167_v47 = vadd.f32 %v5166_v48, %v5165_v36  ;;  %v5278_v8 = vpop.f32.mrb[199].mxu0 }
 0x392   : > { %v5279_v12 = vadd.f32 %v5278_v8, %v5277_v31  ;;  %5645 = vmatmul.mubr.bf16.gmra.mrb[16].mxu1 %v7380_v53 }
 0x393   : > { %v7596_v41 = vadd.f32 %v5276_v56, %v3506_v24  ;;  %v3509_v52 = vadd.f32 %v5167_v47, %v7498_v25  ;;  %5648 = vmatprep.mubr.bf16.mxu1 %v7400_v55 }
 0x395   : > { %v7600_v10 = vadd.f32 %v5279_v12, %v3509_v52  ;;  %v5168_v1 = vpop.f32.mrb[168].mxu1 }
 0x396   : > { %v5169_v17 = vpop.f32.mrb[169].mxu1  ;;  %v5280_v54 = vpop.f32.mrb[200].mxu0 }
 0x397   : > { %v5170_v44 = vadd.f32 %v5169_v17, %v5168_v1  ;;  %v5171_v16 = vpop.f32.mrb[170].mxu1  ;;  %v5281_v60 = vpop.f32.mrb[201].mxu0 }
 0x398   : > { %v5282_v35 = vadd.f32 %v5281_v60, %v5280_v54  ;;  %v5172_v40 = vpop.f32.mrb[171].mxu1  ;;  %v5283_v32 = vpop.f32.mrb[202].mxu0 }
 0x399   : > { %v3514_v34 = vadd.f32 %v5170_v44, %v7498_v25  ;;  %v5173_v53 = vadd.f32 %v5172_v40, %v5171_v16  ;;  %v5284_v51 = vpop.f32.mrb[203].mxu0 }
 0x39a   : > { %v5285_v49 = vadd.f32 %v5284_v51, %v5283_v32  ;;  %5649 = vmatmul.mubr.bf16.gmra.mrb[20].mxu1 %v7420_v30 }
 0x39b   : > { %v7604_v6 = vadd.f32 %v5282_v35, %v3514_v34  ;;  %v3517_v55 = vadd.f32 %v5173_v53, %v7498_v25  ;;  %5652 = vmatprep.mubr.bf16.mxu1 %v7436_v45 }
 0x39d   : > { %v7608_v29 = vadd.f32 %v5285_v49, %v3517_v55  ;;  %v5174_v0 = vpop.f32.mrb[172].mxu1 }
 0x39e   : > { %v5175_v50 = vpop.f32.mrb[173].mxu1  ;;  %v5286_v33 = vpop.f32.mrb[204].mxu0 }
 0x39f   : > { %v5176_v19 = vadd.f32 %v5175_v50, %v5174_v0  ;;  %v5177_v38 = vpop.f32.mrb[174].mxu1  ;;  %v5287_v18 = vpop.f32.mrb[205].mxu0 }
 0x3a0   : > { %v5288_v43 = vadd.f32 %v5287_v18, %v5286_v33  ;;  %v5178_v21 = vpop.f32.mrb[175].mxu1  ;;  %v5289_v3 = vpop.f32.mrb[206].mxu0 }
 0x3a1   : > { %v3522_v46 = vadd.f32 %v5176_v19, %v7498_v25  ;;  %v5179_v30 = vadd.f32 %v5178_v21, %v5177_v38  ;;  %v5290_v14 = vpop.f32.mrb[207].mxu0 }
 0x3a2   : > { %v5291_v2 = vadd.f32 %v5290_v14, %v5289_v3  ;;  %5653 = vmatmul.mubr.bf16.gmra.mrb[24].mxu1 %v7448_v11 }
 0x3a3   : > { %v7612_v36 = vadd.f32 %v5288_v43, %v3522_v46  ;;  %v3525_v45 = vadd.f32 %v5179_v30, %v7498_v25  ;;  %5656 = vmatprep.mubr.bf16.mxu1 %v7544_v5 }
 0x3a5   : > { %v7616_v20 = vadd.f32 %v5291_v2, %v3525_v45  ;;  %v5180_v56 = vpop.f32.mrb[176].mxu1 }
 0x3a6   : > { %v5181_v48 = vpop.f32.mrb[177].mxu1  ;;  %v5292_v31 = vpop.f32.mrb[208].mxu0 }
 0x3a7   : > { %v5182_v24 = vadd.f32 %v5181_v48, %v5180_v56  ;;  %v5183_v47 = vpop.f32.mrb[178].mxu1  ;;  %v5293_v8 = vpop.f32.mrb[209].mxu0 }
 0x3a8   : > { %v5294_v12 = vadd.f32 %v5293_v8, %v5292_v31  ;;  %v5184_v52 = vpop.f32.mrb[179].mxu1  ;;  %v5295_v1 = vpop.f32.mrb[210].mxu0 }
 0x3a9   : > { %v3530_v17 = vadd.f32 %v5182_v24, %v7498_v25  ;;  %v5185_v11 = vadd.f32 %v5184_v52, %v5183_v47  ;;  %v5296_v54 = vpop.f32.mrb[211].mxu0 }
 0x3aa   : > { %v5297_v44 = vadd.f32 %v5296_v54, %v5295_v1  ;;  %5657 = vmatmul.mubr.bf16.gmra.mrb[28].mxu1 %v7943_v22 }
 0x3ab   : > { %v7620_v16 = vadd.f32 %v5294_v12, %v3530_v17  ;;  %v3533_v5 = vadd.f32 %v5185_v11, %v7498_v25 }
 0x3ad   : > { %v7623_v60 = vadd.f32 %v5297_v44, %v3533_v5  ;;  %v5186_v35 = vpop.f32.mrb[180].mxu1 }
 0x3ae   : > { %v5187_v40 = vpop.f32.mrb[181].mxu1  ;;  %v5298_v32 = vpop.f32.mrb[212].mxu0 }
 0x3af   : > { %v5188_v34 = vadd.f32 %v5187_v40, %v5186_v35  ;;  %v5189_v53 = vpop.f32.mrb[182].mxu1  ;;  %v5299_v51 = vpop.f32.mrb[213].mxu0 }
 0x3b0   : > { %v5300_v49 = vadd.f32 %v5299_v51, %v5298_v32  ;;  %v5190_v55 = vpop.f32.mrb[183].mxu1  ;;  %v5301_v0 = vpop.f32.mrb[214].mxu0 }
 0x3b1   : > { %v3538_v50 = vadd.f32 %v5188_v34, %v7498_v25  ;;  %v5191_v33 = vadd.f32 %v5190_v55, %v5189_v53  ;;  %v5302_v19 = vpop.f32.mrb[215].mxu0 }
 0x3b2   : > { %v5303_v22 = vadd.f32 %v5302_v19, %v5301_v0 }
 0x3b3   : > { %v7626_v38 = vadd.f32 %v5300_v49, %v3538_v50  ;;  %v3541_v18 = vadd.f32 %v5191_v33, %v7498_v25 }
 0x3b5   : > { %v7629_v43 = vadd.f32 %v5303_v22, %v3541_v18  ;;  %v5192_v21 = vpop.f32.mrb[184].mxu1 }
 0x3b6   : > { %v5193_v3 = vpop.f32.mrb[185].mxu1  ;;  %v5304_v46 = vpop.f32.mrb[216].mxu0 }
 0x3b7   : > { %v5194_v30 = vadd.f32 %v5193_v3, %v5192_v21  ;;  %v5195_v14 = vpop.f32.mrb[186].mxu1  ;;  %v5305_v2 = vpop.f32.mrb[217].mxu0 }
 0x3b8   : > { %v5306_v45 = vadd.f32 %v5305_v2, %v5304_v46  ;;  %v5196_v56 = vpop.f32.mrb[187].mxu1  ;;  %v5307_v48 = vpop.f32.mrb[218].mxu0 }
 0x3b9   : > { %v3546_v31 = vadd.f32 %v5194_v30, %v7498_v25  ;;  %v5197_v24 = vadd.f32 %v5196_v56, %v5195_v14  ;;  %v5308_v47 = vpop.f32.mrb[219].mxu0 }
 0x3ba   : > { %v5309_v8 = vadd.f32 %v5308_v47, %v5307_v48 }
 0x3bb   : > { %v7632_v12 = vadd.f32 %v5306_v45, %v3546_v31  ;;  %v3549_v52 = vadd.f32 %v5197_v24, %v7498_v25 }
 0x3bd   : > { %v7635_v1 = vadd.f32 %v5309_v8, %v3549_v52  ;;  %v5198_v17 = vpop.f32.mrb[188].mxu1 }
 0x3be   : > { %v5199_v11 = vpop.f32.mrb[189].mxu1  ;;  %v5310_v54 = vpop.f32.mrb[220].mxu0 }
 0x3bf   : > { %v5200_v44 = vadd.f32 %v5199_v11, %v5198_v17  ;;  %v5201_v5 = vpop.f32.mrb[190].mxu1  ;;  %v5311_v35 = vpop.f32.mrb[221].mxu0 }
 0x3c0   : > { %v5312_v40 = vadd.f32 %v5311_v35, %v5310_v54  ;;  %v5202_v32 = vpop.f32.mrb[191].mxu1  ;;  %v5313_v34 = vpop.f32.mrb[222].mxu0 }
 0x3c1   : > { %v3554_v53 = vadd.f32 %v5200_v44, %v7498_v25  ;;  %v5203_v51 = vadd.f32 %v5202_v32, %v5201_v5  ;;  %v5314_v49 = vpop.f32.mrb[223].mxu0 }
 0x3c2   : > { %v5315_v55 = vadd.f32 %v5314_v49, %v5313_v34 }
 0x3c3   : > { %v7638_v0 = vadd.f32 %v5312_v40, %v3554_v53  ;;  %v3557_v50 = vadd.f32 %v5203_v51, %v7498_v25 }
 0x3c5   : > { %v7641_v33 = vadd.f32 %v5315_v55, %v3557_v50  ;;  %v5332_v19 = vpop.f32.mrb[192].mxu1 }
 0x3c6   : > { %v5333_v22 = vpop.f32.mrb[193].mxu1  ;;  %v5444_v18 = vpop.f32.mrb[224].mxu0 }
 0x3c7   : > { %v5334_v21 = vadd.f32 %v5333_v22, %v5332_v19  ;;  %v5335_v3 = vpop.f32.mrb[194].mxu1  ;;  %v5445_v46 = vpop.f32.mrb[225].mxu0 }
 0x3c8   : > { %v5446_v30 = vadd.f32 %v5445_v46, %v5444_v18  ;;  %v5336_v14 = vpop.f32.mrb[195].mxu1  ;;  %v5447_v2 = vpop.f32.mrb[226].mxu0 }
 0x3c9   : > { %v3756_v45 = vadd.f32 %v5334_v21, %v7507_v63  ;;  %v5337_v56 = vadd.f32 %v5336_v14, %v5335_v3  ;;  %v5448_v48 = vpop.f32.mrb[227].mxu0 }
 0x3ca   : > { %v5449_v31 = vadd.f32 %v5448_v48, %v5447_v2 }
 0x3cb   : > { %v3759_v24 = vadd.f32 %v5337_v56, %v7510_v13  ;;  %v7645_v47 = vadd.f32 %v5446_v30, %v3756_v45 }
 0x3cd   : > { %v5338_v25 = vpop.f32.mrb[196].mxu1  ;;  %v7647_v8 = vadd.f32 %v5449_v31, %v3759_v24 }
 0x3ce   : > { %v5339_v52 = vpop.f32.mrb[197].mxu1  ;;  %v5450_v17 = vpop.f32.mrb[228].mxu0 }
 0x3cf   : > { %v5340_v11 = vadd.f32 %v5339_v52, %v5338_v25  ;;  %v5341_v54 = vpop.f32.mrb[198].mxu1  ;;  %v5451_v44 = vpop.f32.mrb[229].mxu0 }
 0x3d0   : > { %v5452_v5 = vadd.f32 %v5451_v44, %v5450_v17  ;;  %v5342_v35 = vpop.f32.mrb[199].mxu1  ;;  %v5453_v40 = vpop.f32.mrb[230].mxu0 }
 0x3d1   : > { %v3764_v63 = vadd.f32 %v5340_v11, %v7521_v28  ;;  %v5343_v32 = vadd.f32 %v5342_v35, %v5341_v54  ;;  %v5454_v34 = vpop.f32.mrb[231].mxu0 }
 0x3d2   : > { %v5455_v53 = vadd.f32 %v5454_v34, %v5453_v40 }
 0x3d3   : > { %v3767_v13 = vadd.f32 %v5343_v32, %v7527_v15  ;;  %v7651_v51 = vadd.f32 %v5452_v5, %v3764_v63 }
 0x3d5   : > { %v5344_v49 = vpop.f32.mrb[200].mxu1  ;;  %v7653_v55 = vadd.f32 %v5455_v53, %v3767_v13 }
 0x3d6   : > { %v5345_v50 = vpop.f32.mrb[201].mxu1  ;;  %v5456_v19 = vpop.f32.mrb[232].mxu0 }
 0x3d7   : > { %v5346_v22 = vadd.f32 %v5345_v50, %v5344_v49  ;;  %v5347_v18 = vpop.f32.mrb[202].mxu1  ;;  %v5457_v21 = vpop.f32.mrb[233].mxu0 }
 0x3d8   : > { %v5458_v3 = vadd.f32 %v5457_v21, %v5456_v19  ;;  %v5348_v46 = vpop.f32.mrb[203].mxu1  ;;  %v5459_v30 = vpop.f32.mrb[234].mxu0 }
 0x3d9   : > { %v3772_v28 = vadd.f32 %v5346_v22, %v7532_v61  ;;  %v5349_v14 = vadd.f32 %v5348_v46, %v5347_v18  ;;  %v5460_v2 = vpop.f32.mrb[235].mxu0 }
 0x3da   : > { %v5461_v45 = vadd.f32 %v5460_v2, %v5459_v30 }
 0x3db   : > { %v3775_v15 = vadd.f32 %v5349_v14, %v7538_v62  ;;  %v7657_v56 = vadd.f32 %v5458_v3, %v3772_v28 }
 0x3dd   : > { %v5350_v48 = vpop.f32.mrb[204].mxu1  ;;  %v7659_v31 = vadd.f32 %v5461_v45, %v3775_v15 }
 0x3de   : > { %v5351_v24 = vpop.f32.mrb[205].mxu1  ;;  %v5462_v25 = vpop.f32.mrb[236].mxu0 }
 0x3df   : > { %v5352_v52 = vadd.f32 %v5351_v24, %v5350_v48  ;;  %v5353_v17 = vpop.f32.mrb[206].mxu1  ;;  %v5463_v11 = vpop.f32.mrb[237].mxu0 }
 0x3e0   : > { %v5464_v54 = vadd.f32 %v5463_v11, %v5462_v25  ;;  %v5354_v44 = vpop.f32.mrb[207].mxu1  ;;  %v5465_v5 = vpop.f32.mrb[238].mxu0 }
 0x3e1   : > { %v3780_v61 = vadd.f32 %v5352_v52, %v7546_v57  ;;  %v5355_v35 = vadd.f32 %v5354_v44, %v5353_v17  ;;  %v5466_v40 = vpop.f32.mrb[239].mxu0 }
 0x3e2   : > { %v5467_v63 = vadd.f32 %v5466_v40, %v5465_v5 }
 0x3e3   : > { %v3783_v62 = vadd.f32 %v5355_v35, %v7552_v59  ;;  %v7663_v32 = vadd.f32 %v5464_v54, %v3780_v61 }
 0x3e5   : > { %v5356_v34 = vpop.f32.mrb[208].mxu1  ;;  %v7665_v53 = vadd.f32 %v5467_v63, %v3783_v62 }
 0x3e6   : > { %v5357_v13 = vpop.f32.mrb[209].mxu1  ;;  %v5468_v49 = vpop.f32.mrb[240].mxu0 }
 0x3e7   : > { %v5358_v50 = vadd.f32 %v5357_v13, %v5356_v34  ;;  %v5359_v19 = vpop.f32.mrb[210].mxu1  ;;  %v5469_v22 = vpop.f32.mrb[241].mxu0 }
 0x3e8   : > { %v5470_v18 = vadd.f32 %v5469_v22, %v5468_v49  ;;  %v5360_v21 = vpop.f32.mrb[211].mxu1  ;;  %v5471_v3 = vpop.f32.mrb[242].mxu0 }
 0x3e9   : > { %v3788_v57 = vadd.f32 %v5358_v50, %v7555_v23  ;;  %v5361_v46 = vadd.f32 %v5360_v21, %v5359_v19  ;;  %v5472_v30 = vpop.f32.mrb[243].mxu0 }
 0x3ea   : > { %v5473_v28 = vadd.f32 %v5472_v30, %v5471_v3 }
 0x3eb   : > { %v3791_v59 = vadd.f32 %v5361_v46, %v7560_v42  ;;  %v7669_v14 = vadd.f32 %v5470_v18, %v3788_v57 }
 0x3ed   : > { %v5362_v2 = vpop.f32.mrb[212].mxu1  ;;  %v7671_v45 = vadd.f32 %v5473_v28, %v3791_v59 }
 0x3ee   : > { %v5363_v15 = vpop.f32.mrb[213].mxu1  ;;  %v5474_v48 = vpop.f32.mrb[244].mxu0 }
 0x3ef   : > { %v5364_v24 = vadd.f32 %v5363_v15, %v5362_v2  ;;  %v5365_v25 = vpop.f32.mrb[214].mxu1  ;;  %v5475_v52 = vpop.f32.mrb[245].mxu0 }
 0x3f0   : > { %v5476_v17 = vadd.f32 %v5475_v52, %v5474_v48  ;;  %v5366_v11 = vpop.f32.mrb[215].mxu1  ;;  %v5477_v54 = vpop.f32.mrb[246].mxu0 }
 0x3f1   : > { %v3796_v23 = vadd.f32 %v5364_v24, %v7564_v9  ;;  %v5367_v44 = vadd.f32 %v5366_v11, %v5365_v25  ;;  %v5478_v5 = vpop.f32.mrb[247].mxu0 }
 0x3f2   : > { %v5479_v61 = vadd.f32 %v5478_v5, %v5477_v54 }
 0x3f3   : > { %v3799_v42 = vadd.f32 %v5367_v44, %v7568_v27  ;;  %v7675_v35 = vadd.f32 %v5476_v17, %v3796_v23 }
 0x3f5   : > { %v5368_v40 = vpop.f32.mrb[216].mxu1  ;;  %v7677_v63 = vadd.f32 %v5479_v61, %v3799_v42 }
 0x3f6   : > { %v5369_v62 = vpop.f32.mrb[217].mxu1  ;;  %v5480_v34 = vpop.f32.mrb[248].mxu0 }
 0x3f7   : > { %v5370_v13 = vadd.f32 %v5369_v62, %v5368_v40  ;;  %v5371_v49 = vpop.f32.mrb[218].mxu1  ;;  %v5481_v50 = vpop.f32.mrb[249].mxu0 }
 0x3f8   : > { %v5482_v19 = vadd.f32 %v5481_v50, %v5480_v34  ;;  %v5372_v22 = vpop.f32.mrb[219].mxu1  ;;  %v5483_v18 = vpop.f32.mrb[250].mxu0 }
 0x3f9   : > { %v3804_v9 = vadd.f32 %v5370_v13, %v7572_v37  ;;  %v5373_v21 = vadd.f32 %v5372_v22, %v5371_v49  ;;  %v5484_v3 = vpop.f32.mrb[251].mxu0 }
 0x3fa   : > { %v5485_v57 = vadd.f32 %v5484_v3, %v5483_v18 }
 0x3fb   : > { %v3807_v27 = vadd.f32 %v5373_v21, %v7576_v26  ;;  %v7681_v46 = vadd.f32 %v5482_v19, %v3804_v9 }
 0x3fd   : > { %v5374_v30 = vpop.f32.mrb[220].mxu1  ;;  %v7683_v28 = vadd.f32 %v5485_v57, %v3807_v27 }
 0x3fe   : > { %v5375_v59 = vpop.f32.mrb[221].mxu1  ;;  %v5486_v2 = vpop.f32.mrb[252].mxu0 }
 0x3ff   : > { %v5376_v15 = vadd.f32 %v5375_v59, %v5374_v30  ;;  %v5377_v48 = vpop.f32.mrb[222].mxu1  ;;  %v5487_v24 = vpop.f32.mrb[253].mxu0 }
 0x400   : > { %v5488_v25 = vadd.f32 %v5487_v24, %v5486_v2  ;;  %v5378_v52 = vpop.f32.mrb[223].mxu1  ;;  %v5489_v17 = vpop.f32.mrb[254].mxu0 }
 0x401   : > { %v3812_v37 = vadd.f32 %v5376_v15, %v7580_v4  ;;  %v5379_v11 = vadd.f32 %v5378_v52, %v5377_v48  ;;  %v5490_v54 = vpop.f32.mrb[255].mxu0 }
 0x402   : > { %v5491_v23 = vadd.f32 %v5490_v54, %v5489_v17 }
 0x403   : > { %v3815_v26 = vadd.f32 %v5379_v11, %v7584_v7  ;;  %v7687_v44 = vadd.f32 %v5488_v25, %v3812_v37 }
 0x405   : > { %v5380_v5 = vpop.f32.mrb[224].mxu1  ;;  %v7689_v61 = vadd.f32 %v5491_v23, %v3815_v26 }
 0x406   : > { %v5381_v42 = vpop.f32.mrb[225].mxu1  ;;  %v5492_v40 = vpop.f32.mrb[0].mxu0 }
 0x407   : > { %v5382_v62 = vadd.f32 %v5381_v42, %v5380_v5  ;;  %v5383_v34 = vpop.f32.mrb[226].mxu1  ;;  %v5493_v13 = vpop.f32.mrb[1].mxu0 }
 0x408   : > { %v5494_v49 = vadd.f32 %v5493_v13, %v5492_v40  ;;  %v5384_v50 = vpop.f32.mrb[227].mxu1  ;;  %v5495_v19 = vpop.f32.mrb[2].mxu0 }
 0x409   : > { %v3820_v4 = vadd.f32 %v5382_v62, %v7588_v58  ;;  %v5385_v22 = vadd.f32 %v5384_v50, %v5383_v34  ;;  %v5496_v18 = vpop.f32.mrb[3].mxu0 }
 0x40a   : > { %v5497_v9 = vadd.f32 %v5496_v18, %v5495_v19 }
 0x40b   : > { %v3823_v7 = vadd.f32 %v5385_v22, %v7592_v39  ;;  %v7693_v21 = vadd.f32 %v5494_v49, %v3820_v4 }
 0x40d   : > { %v5386_v3 = vpop.f32.mrb[228].mxu1  ;;  %v7695_v57 = vadd.f32 %v5497_v9, %v3823_v7 }
 0x40e   : > { %v5387_v27 = vpop.f32.mrb[229].mxu1  ;;  %v5498_v30 = vpop.f32.mrb[4].mxu0 }
 0x40f   : > { %v5388_v59 = vadd.f32 %v5387_v27, %v5386_v3  ;;  %v5389_v2 = vpop.f32.mrb[230].mxu1  ;;  %v5499_v15 = vpop.f32.mrb[5].mxu0 }
 0x410   : > { %v5500_v48 = vadd.f32 %v5499_v15, %v5498_v30  ;;  %v5390_v24 = vpop.f32.mrb[231].mxu1  ;;  %v5501_v25 = vpop.f32.mrb[6].mxu0 }
 0x411   : > { %v3828_v58 = vadd.f32 %v5388_v59, %v7596_v41  ;;  %v5391_v52 = vadd.f32 %v5390_v24, %v5389_v2  ;;  %v5502_v17 = vpop.f32.mrb[7].mxu0 }
 0x412   : > { %v5503_v37 = vadd.f32 %v5502_v17, %v5501_v25 }
 0x413   : > { %v3831_v39 = vadd.f32 %v5391_v52, %v7600_v10  ;;  %v7699_v11 = vadd.f32 %v5500_v48, %v3828_v58 }
 0x415   : > { %v5392_v54 = vpop.f32.mrb[232].mxu1  ;;  %v7701_v23 = vadd.f32 %v5503_v37, %v3831_v39 }
 0x416   : > { %v5393_v26 = vpop.f32.mrb[233].mxu1  ;;  %v5504_v5 = vpop.f32.mrb[8].mxu0 }
 0x417   : > { %v5394_v42 = vadd.f32 %v5393_v26, %v5392_v54  ;;  %v5395_v40 = vpop.f32.mrb[234].mxu1  ;;  %v5505_v62 = vpop.f32.mrb[9].mxu0 }
 0x418   : > { %v5506_v34 = vadd.f32 %v5505_v62, %v5504_v5  ;;  %v5396_v13 = vpop.f32.mrb[235].mxu1  ;;  %v5507_v49 = vpop.f32.mrb[10].mxu0 }
 0x419   : > { %v3836_v41 = vadd.f32 %v5394_v42, %v7604_v6  ;;  %v5397_v50 = vadd.f32 %v5396_v13, %v5395_v40  ;;  %v5508_v19 = vpop.f32.mrb[11].mxu0 }
 0x41a   : > { %v5509_v4 = vadd.f32 %v5508_v19, %v5507_v49 }
 0x41b   : > { %v3839_v10 = vadd.f32 %v5397_v50, %v7608_v29  ;;  %v7705_v22 = vadd.f32 %v5506_v34, %v3836_v41 }
 0x41d   : > { %v5398_v18 = vpop.f32.mrb[236].mxu1  ;;  %v7707_v9 = vadd.f32 %v5509_v4, %v3839_v10 }
 0x41e   : > { %v5399_v7 = vpop.f32.mrb[237].mxu1  ;;  %v5510_v3 = vpop.f32.mrb[12].mxu0 }
 0x41f   : > { %v5400_v27 = vadd.f32 %v5399_v7, %v5398_v18  ;;  %v5401_v30 = vpop.f32.mrb[238].mxu1  ;;  %v5511_v59 = vpop.f32.mrb[13].mxu0 }
 0x420   : > { %v5512_v2 = vadd.f32 %v5511_v59, %v5510_v3  ;;  %v5402_v15 = vpop.f32.mrb[239].mxu1  ;;  %v5513_v48 = vpop.f32.mrb[14].mxu0 }
 0x421   : > { %v3844_v6 = vadd.f32 %v5400_v27, %v7612_v36  ;;  %v5403_v24 = vadd.f32 %v5402_v15, %v5401_v30  ;;  %v5514_v25 = vpop.f32.mrb[15].mxu0 }
 0x422   : > { %v5515_v58 = vadd.f32 %v5514_v25, %v5513_v48 }
 0x423   : > { %v3847_v29 = vadd.f32 %v5403_v24, %v7616_v20  ;;  %v7711_v52 = vadd.f32 %v5512_v2, %v3844_v6 }
 0x425   : > { %v5404_v17 = vpop.f32.mrb[240].mxu1  ;;  %v7713_v37 = vadd.f32 %v5515_v58, %v3847_v29 }
 0x426   : > { %v5405_v39 = vpop.f32.mrb[241].mxu1  ;;  %v5516_v54 = vpop.f32.mrb[16].mxu0 }
 0x427   : > { %v5406_v26 = vadd.f32 %v5405_v39, %v5404_v17  ;;  %v5407_v5 = vpop.f32.mrb[242].mxu1  ;;  %v5517_v42 = vpop.f32.mrb[17].mxu0 }
 0x428   : > { %v5518_v40 = vadd.f32 %v5517_v42, %v5516_v54  ;;  %v5408_v62 = vpop.f32.mrb[243].mxu1  ;;  %v5519_v34 = vpop.f32.mrb[18].mxu0 }
 0x429   : > { %v3852_v36 = vadd.f32 %v5406_v26, %v7620_v16  ;;  %v5409_v13 = vadd.f32 %v5408_v62, %v5407_v5  ;;  %v5520_v49 = vpop.f32.mrb[19].mxu0 }
 0x42a   : > { %v5521_v41 = vadd.f32 %v5520_v49, %v5519_v34 }
 0x42b   : > { %v3855_v20 = vadd.f32 %v5409_v13, %v7623_v60  ;;  %v7717_v50 = vadd.f32 %v5518_v40, %v3852_v36 }
 0x42d   : > { %v5410_v19 = vpop.f32.mrb[244].mxu1  ;;  %v7719_v4 = vadd.f32 %v5521_v41, %v3855_v20 }
 0x42e   : > { %v5411_v10 = vpop.f32.mrb[245].mxu1  ;;  %v5522_v18 = vpop.f32.mrb[20].mxu0 }
 0x42f   : > { %v5412_v7 = vadd.f32 %v5411_v10, %v5410_v19  ;;  %v5413_v3 = vpop.f32.mrb[246].mxu1  ;;  %v5523_v27 = vpop.f32.mrb[21].mxu0 }
 0x430   : > { %v5524_v30 = vadd.f32 %v5523_v27, %v5522_v18  ;;  %v5414_v59 = vpop.f32.mrb[247].mxu1  ;;  %v5525_v2 = vpop.f32.mrb[22].mxu0 }
 0x431   : > { %v3860_v16 = vadd.f32 %v5412_v7, %v7626_v38  ;;  %v5415_v15 = vadd.f32 %v5414_v59, %v5413_v3  ;;  %v5526_v48 = vpop.f32.mrb[23].mxu0 }
 0x432   : > { %v5527_v6 = vadd.f32 %v5526_v48, %v5525_v2  ;;  %v5908_v48 = vld [vmem:[%s6306_s9 + $0x8] sm:$0xff]  }
 0x433   : > { %v3863_v60 = vadd.f32 %v5415_v15, %v7629_v43  ;;  %v7723_v24 = vadd.f32 %v5524_v30, %v3860_v16 }
 0x435   : > { %v5416_v25 = vpop.f32.mrb[248].mxu1  ;;  %v7725_v58 = vadd.f32 %v5527_v6, %v3863_v60  ;;  %v4206_v6 = vunpack.c.l.bf16 %v5908_v48 }
 0x436   : > { %v5417_v29 = vpop.f32.mrb[249].mxu1  ;;  %v5528_v17 = vpop.f32.mrb[24].mxu0 }
 0x437   : > { %v5418_v39 = vadd.f32 %v5417_v29, %v5416_v25  ;;  %v5419_v54 = vpop.f32.mrb[250].mxu1  ;;  %v5529_v26 = vpop.f32.mrb[25].mxu0  ;;  %v5909_v25 = vld [vmem:[%s6306_s9] sm:$0xff]  }
 0x438   : > { %v5530_v5 = vadd.f32 %v5529_v26, %v5528_v17  ;;  %v5420_v42 = vpop.f32.mrb[251].mxu1  ;;  %v5531_v40 = vpop.f32.mrb[26].mxu0  ;;  %v4204_v29 = vunpack.c.l.bf16 %v5909_v25  ;;  %v4207_v26 = vunpack.c.h.bf16 %v5908_v48 }
 0x439   : > { %v3868_v38 = vadd.f32 %v5418_v39, %v7632_v12  ;;  %v5421_v62 = vadd.f32 %v5420_v42, %v5419_v54  ;;  %v5532_v34 = vpop.f32.mrb[27].mxu0  ;;  %v4205_v42 = vunpack.c.h.bf16 %v5909_v25 }
 0x43a   : > { %v5533_v36 = vadd.f32 %v5532_v34, %v5531_v40 }
 0x43b   : > { %v3871_v43 = vadd.f32 %v5421_v62, %v7635_v1  ;;  %v7729_v13 = vadd.f32 %v5530_v5, %v3868_v38 }
 0x43d   : > { %v5422_v49 = vpop.f32.mrb[252].mxu1  ;;  %v7731_v41 = vadd.f32 %v5533_v36, %v3871_v43 }
 0x43e   : > { %v5423_v20 = vpop.f32.mrb[253].mxu1  ;;  %v5534_v19 = vpop.f32.mrb[28].mxu0 }
 0x43f   : > { %v5424_v10 = vadd.f32 %v5423_v20, %v5422_v49  ;;  %v5425_v18 = vpop.f32.mrb[254].mxu1  ;;  %v5535_v7 = vpop.f32.mrb[29].mxu0 }
 0x440   : > { %v5426_v3 = vpop.f32.mrb[255].mxu1  ;;  %v5536_v12 = vadd.f32 %v5535_v7, %v5534_v19  ;;  %v5537_v27 = vpop.f32.mrb[30].mxu0 }
 0x441   : > { %v3876_v30 = vadd.f32 %v5424_v10, %v7638_v0  ;;  %v5427_v59 = vadd.f32 %v5426_v3, %v5425_v18  ;;  %v5538_v1 = vpop.f32.mrb[31].mxu0  ;;  %v5911_v18 = vld [vmem:[%s6306_s9 + $0x10] sm:$0xff]  }
 0x442   : > { %v5539_v2 = vadd.f32 %v5538_v1, %v5537_v27  ;;  %v4208_v7 = vunpack.c.l.bf16 %v5911_v18 }
 0x443   : > { %v3879_v16 = vadd.f32 %v5427_v59, %v7641_v33  ;;  %v7735_v15 = vadd.f32 %v5536_v12, %v3876_v30  ;;  %v4209_v59 = vunpack.c.h.bf16 %v5911_v18 }
 0x445   : > { %v5630_v60 = vpop.f32.mrb[0].mxu1  ;;  %v7739_v17 = vadd.f32 %v5539_v2, %v3879_v16 }
 0x446   : > { %v4086_v39 = vadd.f32 %v5630_v60, %v7651_v51  ;;  %v4077_v54 = vpop.f32.mrb[1].mxu1  ;;  %v5910_v51 = vld [vmem:[%s6306_s9 + $0x18] sm:$0xff]  }
 0x447   : > { %v4078_v0 = vadd.f32 %v4077_v54, %v7645_v47  ;;  %v5631_v5 = vpop.f32.mrb[2].mxu1  ;;  %v4210_v19 = vunpack.c.l.bf16 %v5910_v51  ;;  %v4211_v12 = vunpack.c.h.bf16 %v5910_v51 }
 0x448   : > { %v4238_v33 = vadd.f32 %v4206_v6, %v4086_v39  ;;  %v4089_v40 = vadd.f32 %v5631_v5, %v7653_v55  ;;  %v4080_v38 = vpop.f32.mrb[3].mxu1  ;;  %v5913_v5 = vld [vmem:[%s6306_s9 + $0x20] sm:$0xff]  }
 0x449   : > { %v4236_v62 = vadd.f32 %v4204_v29, %v4078_v0  ;;  %v4081_v34 = vadd.f32 %v4080_v38, %v7647_v8 }
 0x44a   : > { %v4270_v36 = vmax.f32 %v4238_v33, 0.0  ;;  %v4239_v43 = vadd.f32 %v4207_v26, %v4089_v40 }
 0x44b   : > { %v4268_v49 = vmax.f32 %v4236_v62, 0.0  ;;  %v4237_v20 = vadd.f32 %v4205_v42, %v4081_v34  ;;  %v4212_v42 = vunpack.c.l.bf16 %v5913_v5  ;;  %v4213_v62 = vunpack.c.h.bf16 %v5913_v5 }
 0x44c   : > { %4302 = vst [vmem:[%s7746_s28 + $0x10] sm:$0xff] %v4270_v36  ;;  %v4271_v47 = vmax.f32 %v4239_v43, 0.0 }
 0x44d   : > { %4300 = vst [vmem:[%s7746_s28] sm:$0xff] %v4268_v49  ;;  %v4269_v55 = vmax.f32 %v4237_v20, 0.0  ;;  %v5634_v10 = vpop.f32.mrb[4].mxu1 }
 0x44e   : > { %4303 = vst [vmem:[%s7746_s28 + $0x18] sm:$0xff] %v4271_v47  ;;  %v4102_v8 = vadd.f32 %v5634_v10, %v7663_v32  ;;  %v4093_v3 = vpop.f32.mrb[5].mxu1 }
 0x44f   : > { %4301 = vst [vmem:[%s7746_s28 + $0x8] sm:$0xff] %v4269_v55  ;;  %v4094_v27 = vadd.f32 %v4093_v3, %v7657_v56  ;;  %v5635_v30 = vpop.f32.mrb[6].mxu1  ;;  %v5912_v56 = vld [vmem:[%s6306_s9 + $0x28] sm:$0xff]  }
 0x450   : > { %v4242_v1 = vadd.f32 %v4210_v19, %v4102_v8  ;;  %v4105_v2 = vadd.f32 %v5635_v30, %v7665_v53  ;;  %v4096_v16 = vpop.f32.mrb[7].mxu1  ;;  %v4214_v54 = vunpack.c.l.bf16 %v5912_v56  ;;  %v5915_v8 = vld [vmem:[%s6306_s9 + $0x30] sm:$0xff]  }
 0x451   : > { %v4240_v48 = vadd.f32 %v4208_v7, %v4094_v27  ;;  %v4097_v6 = vadd.f32 %v4096_v16, %v7659_v31  ;;  %v4215_v31 = vunpack.c.h.bf16 %v5912_v56  ;;  %v4216_v3 = vunpack.c.l.bf16 %v5915_v8 }
 0x452   : > { %v4274_v32 = vmax.f32 %v4242_v1, 0.0  ;;  %v4243_v60 = vadd.f32 %v4211_v12, %v4105_v2 }
 0x453   : > { %v4272_v25 = vmax.f32 %v4240_v48, 0.0  ;;  %v4241_v29 = vadd.f32 %v4209_v59, %v4097_v6  ;;  %v4217_v59 = vunpack.c.h.bf16 %v5915_v8 }
 0x454   : > { %4306 = vst [vmem:[%s7746_s28 + $0x30] sm:$0xff] %v4274_v32  ;;  %v4275_v39 = vmax.f32 %v4243_v60, 0.0 }
 0x455   : > { %4304 = vst [vmem:[%s7746_s28 + $0x20] sm:$0xff] %v4272_v25  ;;  %v4273_v26 = vmax.f32 %v4241_v29, 0.0  ;;  %v5638_v0 = vpop.f32.mrb[8].mxu1 }
 0x456   : > { %4307 = vst [vmem:[%s7746_s28 + $0x38] sm:$0xff] %v4275_v39  ;;  %v4118_v53 = vadd.f32 %v5638_v0, %v7675_v35  ;;  %v4109_v33 = vpop.f32.mrb[9].mxu1 }
 0x457   : > { %4305 = vst [vmem:[%s7746_s28 + $0x28] sm:$0xff] %v4273_v26  ;;  %v4110_v40 = vadd.f32 %v4109_v33, %v7669_v14  ;;  %v5639_v38 = vpop.f32.mrb[10].mxu1  ;;  %v5914_v14 = vld [vmem:[%s6306_s9 + $0x38] sm:$0xff]   ;;  %v5917_v26 = vld [vmem:[%s6306_s9 + $0x40] sm:$0xff]  }
 0x458   : > { %v4246_v34 = vadd.f32 %v4214_v54, %v4118_v53  ;;  %v4121_v36 = vadd.f32 %v5639_v38, %v7677_v63  ;;  %v4112_v43 = vpop.f32.mrb[11].mxu1  ;;  %v4218_v10 = vunpack.c.l.bf16 %v5914_v14  ;;  %v4220_v0 = vunpack.c.l.bf16 %v5917_v26 }
 0x459   : > { %v4244_v49 = vadd.f32 %v4212_v42, %v4110_v40  ;;  %v4113_v20 = vadd.f32 %v4112_v43, %v7671_v45  ;;  %v4219_v45 = vunpack.c.h.bf16 %v5914_v14  ;;  %v4221_v33 = vunpack.c.h.bf16 %v5917_v26 }
 0x45a   : > { %v4278_v35 = vmax.f32 %v4246_v34, 0.0  ;;  %v4247_v47 = vadd.f32 %v4215_v31, %v4121_v36 }
 0x45b   : > { %v4276_v51 = vmax.f32 %v4244_v49, 0.0  ;;  %v4245_v19 = vadd.f32 %v4213_v62, %v4113_v20 }
 0x45c   : > { %4310 = vst [vmem:[%s7746_s28 + $0x50] sm:$0xff] %v4278_v35  ;;  %v4279_v55 = vmax.f32 %v4247_v47, 0.0 }
 0x45d   : > { %4308 = vst [vmem:[%s7746_s28 + $0x40] sm:$0xff] %v4276_v51  ;;  %v4277_v18 = vmax.f32 %v4245_v19, 0.0  ;;  %v5642_v7 = vpop.f32.mrb[12].mxu1  ;;  %v5919_v19 = vld [vmem:[%s6306_s9 + $0x50] sm:$0xff]  }
 0x45e   : > { %4311 = vst [vmem:[%s7746_s28 + $0x58] sm:$0xff] %v4279_v55  ;;  %v4134_v63 = vadd.f32 %v5642_v7, %v7687_v44  ;;  %v4125_v12 = vpop.f32.mrb[13].mxu1  ;;  %v4224_v55 = vunpack.c.l.bf16 %v5919_v19  ;;  %v4225_v7 = vunpack.c.h.bf16 %v5919_v19 }
 0x45f   : > { %4309 = vst [vmem:[%s7746_s28 + $0x48] sm:$0xff] %v4277_v18  ;;  %v4126_v27 = vadd.f32 %v4125_v12, %v7681_v46  ;;  %v5643_v30 = vpop.f32.mrb[14].mxu1  ;;  %v5916_v46 = vld [vmem:[%s6306_s9 + $0x48] sm:$0xff]  }
 0x460   : > { %v4250_v1 = vadd.f32 %v4218_v10, %v4134_v63  ;;  %v4137_v2 = vadd.f32 %v5643_v30, %v7689_v61  ;;  %v4128_v16 = vpop.f32.mrb[15].mxu1  ;;  %v4222_v39 = vunpack.c.l.bf16 %v5916_v46 }
 0x461   : > { %v4248_v48 = vadd.f32 %v4216_v3, %v4126_v27  ;;  %v4129_v6 = vadd.f32 %v4128_v16, %v7683_v28  ;;  %v4223_v28 = vunpack.c.h.bf16 %v5916_v46 }
 0x462   : > { %v4282_v44 = vmax.f32 %v4250_v1, 0.0  ;;  %v4251_v32 = vadd.f32 %v4219_v45, %v4137_v2 }
 0x463   : > { %v4280_v60 = vmax.f32 %v4248_v48, 0.0  ;;  %v4249_v25 = vadd.f32 %v4217_v59, %v4129_v6  ;;  %v5921_v6 = vld [vmem:[%s6306_s9 + $0x60] sm:$0xff]  }
 0x464   : > { %4314 = vst [vmem:[%s7746_s28 + $0x70] sm:$0xff] %v4282_v44  ;;  %v4283_v29 = vmax.f32 %v4251_v32, 0.0  ;;  %v4228_v44 = vunpack.c.l.bf16 %v5921_v6 }
 0x465   : > { %4312 = vst [vmem:[%s7746_s28 + $0x60] sm:$0xff] %v4280_v60  ;;  %v4281_v56 = vmax.f32 %v4249_v25, 0.0  ;;  %v5646_v54 = vpop.f32.mrb[16].mxu1 }
 0x466   : > { %4315 = vst [vmem:[%s7746_s28 + $0x78] sm:$0xff] %v4283_v29  ;;  %v4150_v61 = vadd.f32 %v5646_v54, %v7699_v11  ;;  %v4141_v5 = vpop.f32.mrb[17].mxu1  ;;  %v4229_v29 = vunpack.c.h.bf16 %v5921_v6 }
 0x467   : > { %4313 = vst [vmem:[%s7746_s28 + $0x68] sm:$0xff] %v4281_v56  ;;  %v4142_v42 = vadd.f32 %v4141_v5, %v7693_v21  ;;  %v5647_v53 = vpop.f32.mrb[18].mxu1  ;;  %v5918_v21 = vld [vmem:[%s6306_s9 + $0x58] sm:$0xff]  }
 0x468   : > { %v4254_v31 = vadd.f32 %v4222_v39, %v4150_v61  ;;  %v4153_v40 = vadd.f32 %v5647_v53, %v7701_v23  ;;  %v4144_v38 = vpop.f32.mrb[19].mxu1  ;;  %v4226_v35 = vunpack.c.l.bf16 %v5918_v21 }
 0x469   : > { %v4252_v62 = vadd.f32 %v4220_v0, %v4142_v42  ;;  %v4145_v34 = vadd.f32 %v4144_v38, %v7695_v57  ;;  %v4227_v57 = vunpack.c.h.bf16 %v5918_v21 }
 0x46a   : > { %v4286_v11 = vmax.f32 %v4254_v31, 0.0  ;;  %v4255_v36 = vadd.f32 %v4223_v28, %v4153_v40  ;;  %v5923_v31 = vld [vmem:[%s6306_s9 + $0x70] sm:$0xff]  }
 0x46b   : > { %v4284_v43 = vmax.f32 %v4252_v62, 0.0  ;;  %v4253_v49 = vadd.f32 %v4221_v33, %v4145_v34 }
 0x46c   : > { %4318 = vst [vmem:[%s7746_s28 + $0x90] sm:$0xff] %v4286_v11  ;;  %v4287_v20 = vmax.f32 %v4255_v36, 0.0  ;;  %v4233_v11 = vunpack.c.h.bf16 %v5923_v31 }
 0x46d   : > { %4316 = vst [vmem:[%s7746_s28 + $0x80] sm:$0xff] %v4284_v43  ;;  %v4285_v47 = vmax.f32 %v4253_v49, 0.0  ;;  %v5650_v51 = vpop.f32.mrb[20].mxu1 }
 0x46e   : > { %4319 = vst [vmem:[%s7746_s28 + $0x98] sm:$0xff] %v4287_v20  ;;  %v4166_v23 = vadd.f32 %v5650_v51, %v7711_v52  ;;  %v4157_v14 = vpop.f32.mrb[21].mxu1 }
 0x46f   : > { %4317 = vst [vmem:[%s7746_s28 + $0x88] sm:$0xff] %v4285_v47  ;;  %v4158_v10 = vadd.f32 %v4157_v14, %v7705_v22  ;;  %v5651_v18 = vpop.f32.mrb[22].mxu1  ;;  %v5920_v22 = vld [vmem:[%s6306_s9 + $0x68] sm:$0xff]  }
 0x470   : > { %v4258_v8 = vadd.f32 %v4226_v35, %v4166_v23  ;;  %v4169_v3 = vadd.f32 %v5651_v18, %v7713_v37  ;;  %v4160_v63 = vpop.f32.mrb[23].mxu1  ;;  %v4230_v2 = vunpack.c.l.bf16 %v5920_v22 }
 0x471   : > { %v4256_v12 = vadd.f32 %v4224_v55, %v4158_v10  ;;  %v4161_v45 = vadd.f32 %v4160_v63, %v7707_v9  ;;  %v4231_v9 = vunpack.c.h.bf16 %v5920_v22 }
 0x472   : > { %v4290_v52 = vmax.f32 %v4258_v8, 0.0  ;;  %v4259_v27 = vadd.f32 %v4227_v57, %v4169_v3 }
 0x473   : > { %v4288_v30 = vmax.f32 %v4256_v12, 0.0  ;;  %v4257_v59 = vadd.f32 %v4225_v7, %v4161_v45 }
 0x474   : > { %4322 = vst [vmem:[%s7746_s28 + $0xb0] sm:$0xff] %v4290_v52  ;;  %v4291_v1 = vmax.f32 %v4259_v27, 0.0 }
 0x475   : > { %4320 = vst [vmem:[%s7746_s28 + $0xa0] sm:$0xff] %v4288_v30  ;;  %v4289_v16 = vmax.f32 %v4257_v59, 0.0  ;;  %v5654_v48 = vpop.f32.mrb[24].mxu1 }
 0x476   : > { %4323 = vst [vmem:[%s7746_s28 + $0xb8] sm:$0xff] %v4291_v1  ;;  %v4182_v37 = vadd.f32 %v5654_v48, %v7723_v24  ;;  %v4173_v32 = vpop.f32.mrb[25].mxu1 }
 0x477   : > { %4321 = vst [vmem:[%s7746_s28 + $0xa8] sm:$0xff] %v4289_v16  ;;  %v4174_v60 = vadd.f32 %v4173_v32, %v7717_v50  ;;  %v5655_v25 = vpop.f32.mrb[26].mxu1  ;;  %v5922_v50 = vld [vmem:[%s6306_s9 + $0x78] sm:$0xff]   ;;  %s6016_s9 = scalar_lea.vmem %s6015_s8, 8192 }
 0x478   : > { %v4262_v46 = vadd.f32 %v4230_v2, %v4182_v37  ;;  %v4185_v39 = vadd.f32 %v5655_v25, %v7725_v58  ;;  %v4176_v56 = vpop.f32.mrb[27].mxu1  ;;  %v4234_v42 = vunpack.c.l.bf16 %v5922_v50  ;;  %v4232_v58 = vunpack.c.l.bf16 %v5923_v31  ;;  %p6018_p9 = scmp.lt.s32.totalorder %s6016_s9, %s6010_s7 }
 0x479   : > { %v4260_v54 = vadd.f32 %v4228_v44, %v4174_v60  ;;  %v4177_v26 = vadd.f32 %v4176_v56, %v7719_v4  ;;  %v4235_v38 = vunpack.c.h.bf16 %v5922_v50 }
 0x47a   : > { %v4294_v24 = vmax.f32 %v4262_v46, 0.0  ;;  %v4263_v0 = vadd.f32 %v4231_v9, %v4185_v39  ;;  %p6019_p12 = por %p6018_p9, %p6017_p7 }
 0x47b   : > { %v4292_v61 = vmax.f32 %v4260_v54, 0.0  ;;  %v4261_v5 = vadd.f32 %v4229_v29, %v4177_v26 }
 0x47c   : > { %4326 = vst [vmem:[%s7746_s28 + $0xd0] sm:$0xff] %v4294_v24  ;;  %v4295_v28 = vmax.f32 %v4263_v0, 0.0  ;;  %p6020_p1 = pnand %p6019_p12, %p6013_p3 }
 0x47d   : > { %4324 = vst [vmem:[%s7746_s28 + $0xc0] sm:$0xff] %v4292_v61  ;;  %v4293_v53 = vmax.f32 %v4261_v5, 0.0  ;;  %v5658_v33 = vpop.f32.mrb[28].mxu1 }
 0x47e   : > { %4327 = vst [vmem:[%s7746_s28 + $0xd8] sm:$0xff] %v4295_v28  ;;  %v4198_v40 = vadd.f32 %v5658_v33, %v7735_v15  ;;  %v4189_v4 = vpop.f32.mrb[29].mxu1 }
 0x47f   : > { %4325 = vst [vmem:[%s7746_s28 + $0xc8] sm:$0xff] %v4293_v53  ;;  %v4190_v62 = vadd.f32 %v4189_v4, %v7729_v13  ;;  %v5659_v34 = vpop.f32.mrb[30].mxu1 }
 0x480   : > { %v4266_v36 = vadd.f32 %v4234_v42, %v4198_v40  ;;  %v4201_v43 = vadd.f32 %v5659_v34, %v7739_v17  ;;  %v4192_v49 = vpop.f32.mrb[31].mxu1 }
 0x481   : > { %v4264_v20 = vadd.f32 %v4232_v58, %v4190_v62  ;;  %v4193_v21 = vadd.f32 %v4192_v49, %v7731_v41 }
 0x482   : > { %v4298_v15 = vmax.f32 %v4266_v36, 0.0  ;;  %v4267_v35 = vadd.f32 %v4235_v38, %v4201_v43 }
 0x483   : > { %v4296_v47 = vmax.f32 %v4264_v20, 0.0  ;;  %v4265_v13 = vadd.f32 %v4233_v11, %v4193_v21 }
 0x484   : > { %4330 = vst [vmem:[%s7746_s28 + $0xf0] sm:$0xff] %v4298_v15  ;;  %v4299_v51 = vmax.f32 %v4267_v35, 0.0 }
 0x485   : > { %4328 = vst [vmem:[%s7746_s28 + $0xe0] sm:$0xff] %v4296_v47  ;;  %v4297_v41 = vmax.f32 %v4265_v13, 0.0 }
 0x486   : > { %4331 = vst [vmem:[%s7746_s28 + $0xf8] sm:$0xff] %v4299_v51 }
 0x487   : > { %4329 = vst [vmem:[%s7746_s28 + $0xe8] sm:$0xff] %v4297_v41 }
 0x488   : > { %6023 = shalt.err (!%p6020_p1)
}
 0x489   : > { %s6024_s24 = scalar_lea.hbm %s7824_s17, 4096  ;;  %s6028_s16 = scalar_lea.hbm %s7878_s5, 8192 }
 0x48a   : > { %p6025_p13 = scmp.ne.s32.totalorder %s7824_s17, %s6024_s24  ;;  %p6029_p4 = scmp.lt.u32.totalorder %s7824_s17, %s7878_s5 }
 0x48b   : > { %p6030_p5 = scmp.lt.u32.totalorder %s6028_s16, %s6024_s24  ;;  %p6032_p11 = scmp.lt.u32.totalorder %s6024_s24, %s7824_s17 }
 0x48c   : > { %p6026_p6 = pnand %p6025_p13, %p7944_p0 }
 0x48d   : > { %p6031_p8 = por %p6030_p5, %p6029_p4 }
 0x48e   : > { %p6027_p10 = pneg %p6026_p6 }
 0x48f   : > { %p6033_p2 = por %p6032_p11, %p6031_p8 }
 0x491   : > { %p6034_p3 = pnand %p6033_p2, %p6027_p10 }
 0x493   : > { %6037 = shalt.err (!%p6034_p3)
}
 0x494   : > { %s6089_s12 = smov 128   ;;  %s6090_s30 = smov 8  }
 0x495   : > { %5670 = dma.vmem_to_hbm [thread:$0]  (%p7944_p0), %s7826_s13, 4096, %s7824_s17, %s4333_s22, %s6089_s12, %s6089_s12, %s6090_s30  }
 0x496 PF: > { %s4361_s11 = sand.u32 1, %s6068_s18   ;;  %p7945_p7 = scmp.ne.s32.totalorder %s7903_s25, 0 }
 0x497   : > { %p7946_p9 = scmp.ge.s32.totalorder %s6080_s21, 2  ;;  %s4362_s7 = scalar_lea.sflag [#allocation4], %s4361_s11 }
 0x499   : > { %p5684_p12 = pnand %p7946_p9, %p7945_p7 }
 0x49b   : > { %6063 = dma.done.wait (!%p5684_p12), %s4362_s7, 4096  }
 0x49c   : > { %6065 = vsyncadd (!%p5684_p12), %s4362_s7, 4294963200  ;;  %p19_p1 = scmp.ge.s32.totalorder %s6237_s29, 4   ;;  %s7947_s18 = smov %s6072_s19 }
 0x49d   : > { %s7948_s19 = smov %s6076_s20  ;;  %s7949_s20 = smov %s6253_s27 }
 0x49e   : > { %s7950_s21 = smov %s6237_s29  ;;  %21 = sbr.rel (!%p19_p1) target bundleno = 6 (0x6), region = 93 }
 0x4a5   :  { %4367 = vsyncpa [#allocation3], 1 }
 0x4a6   :  { %4369 = vsyncpa [#allocation3 + $0x1], 1 }
 0x4a7   :  { %4370 = vsyncpa [#allocation6], 1 }
 0x4a8   :  { %4371 = vsyncpa [#allocation4], 1 }
 0x4a9   :  { %4373 = vsyncpa [#allocation4 + $0x1], 1 }

</bundles_post_ra>
